<compile_context>
chip_gen: v7x
topology: tpu7x:2x2x1
jax: 0.10.0
libtpu: 0.0.40
codegen_flags: <defaults>
</compile_context>

<pallas_src>
import functools

import jax
import jax.numpy as jnp
from jax.experimental import pallas as pl
from jax.experimental.pallas import tpu as pltpu

D = 2
F1 = 8
OC = F1 * D                  # conv output channels = 16
KW = 16                      # conv kernel width
PW = 8                       # avg-pool width
BN_EPS = 1e-5
DROP_P = 0.5
DROP_SCALE = 1.0 / (1.0 - DROP_P)


def _global_disc_kernel(xpad_ref, wbd_ref, gamma_ref, beta_ref, wloc_ref,
                        globalf_ref, wglob_ref, bias_ref, mask1_ref, mask2_ref,
                        o_ref, *, B, H, Wout, Wp):
    f32 = jnp.float32
    BH = B * H

    # 1) grouped Conv2d: in-kernel im2col (KW shifted width windows, concatenated
    #    along lanes in (k, c) order) feeding ONE block-diagonal MXU matmul.
    #    Windowing is done in f32 (cheap, robust relayouts); the MXU is fed bf16.
    xp = xpad_ref[...].astype(f32)                       # (BH, Wpad, C)
    C = xp.shape[-1]
    xcol = jnp.concatenate(
        [xp[:, k:k + Wout, :] for k in range(KW)], axis=-1)     # (BH, Wout, KW*C)
    xcol = xcol.reshape(BH * Wout, KW * C)
    h = jnp.dot(xcol.astype(jnp.bfloat16), wbd_ref[...],
                preferred_element_type=f32)              # (BH*Wout, OC), f32 acc

    # 2) BatchNorm2d (training): per-channel (lane) stats over all (b, h, x) rows.
    #    One-pass variance, clamped at 0 to guard f32 cancellation.
    mu = jnp.mean(h, axis=0, keepdims=True)
    var = jnp.maximum(jnp.mean(h * h, axis=0, keepdims=True) - mu * mu, 0.0)
    hbn = (h - mu) * jax.lax.rsqrt(var + BN_EPS) * gamma_ref[...] + beta_ref[...]

    # 3) AvgPool2d((1,8)): PW consecutive width rows share (b, h) -> sublane-group
    #    mean (no O((B*H)^2) pooling operator).
    if Wout % PW != 0:       # floor-mode pooling drops the tail (static branch)
        hbn = hbn.reshape(BH, Wout, OC)[:, :Wp * PW, :].reshape(BH * Wp * PW, OC)
    pooled = jnp.mean(hbn.reshape(BH * Wp, PW, OC), axis=1)      # (B*H*Wp, OC)

    # 4) Dropout(p=0.5) on the pooled local features (inverted scaling).
    dpool = pooled * mask1_ref[...] * DROP_SCALE

    # 5) Local half of dense1: broadcast the [H*Wp, OC] weight over batch and do a
    #    per-batch reduction in-kernel (no O(B^2) selector matmul, no B-tiled wloc).
    t = dpool.reshape(B, H * Wp, OC) * wloc_ref[...][None, :, :]
    loc = jnp.sum(jnp.sum(t, axis=1), axis=-1, keepdims=True)    # (B, 1)

    # 6) Global half of dense1 — split weight replaces torch.cat (bf16 MXU, f32 acc).
    glob = jnp.dot(globalf_ref[...], wglob_ref[...], preferred_element_type=f32)

    # 7) dense bias + output Dropout(p=0.5).
    out = (loc + glob + bias_ref[...]) * mask2_ref[...] * DROP_SCALE
    o_ref[...] = out.astype(o_ref.dtype)


def init_params(key, nfeatl, nfeatg):
    """Torch-equivalent parameter init (Conv2d / Linear default uniform bounds)."""
    k1, k2, k3 = jax.random.split(key, 3)
    bc = 1.0 / (KW ** 0.5)                    # conv fan_in = (in/groups)*1*KW = KW
    conv_w = jax.random.uniform(k1, (OC, 1, 1, KW), jnp.float32, -bc, bc)
    fan_in = 2 * nfeatg
    bd = 1.0 / (fan_in ** 0.5)
    dense_w = jax.random.uniform(k2, (1, fan_in), jnp.float32, -bd, bd)
    dense_b = jax.random.uniform(k3, (1,), jnp.float32, -bd, bd)
    return dict(conv_w=conv_w,
                bn_g=jnp.ones((1, OC), jnp.float32),
                bn_b=jnp.zeros((1, OC), jnp.float32),
                dense_w=dense_w, dense_b=dense_b)


def prepare_constants(params, nfeatl, H, W, nfeatg):
    """One-time, parameter-only operand prep — hoisted out of the per-step forward."""
    f32 = jnp.float32
    assert OC % nfeatl == 0, "groups=nfeatl requires nfeatl to divide F1*D"
    opg = OC // nfeatl
    Wout = W + 2 * (KW // 2) - KW + 1
    Wp = Wout // PW
    Fl = OC * H * Wp
    wd = params["dense_w"].astype(f32)
    assert Fl + nfeatg == wd.shape[1], "flattened local features must equal nfeatg"

    # Block-diagonal grouped-conv weight, rows ordered (k, c) to match the in-kernel
    # window concat: wbd[k*C + c, o] = w[o, k] iff c == o // opg.
    # NOTE: single MXU pass holds while C*KW <= 128 (v5e) / 256 (v6e/v7x); beyond
    # that switch to a grouped contraction with K = KW.
    w2d = params["conv_w"][:, 0, 0, :].astype(f32)                        # (OC, KW)
    grp = (jnp.arange(nfeatl)[:, None] == (jnp.arange(OC)[None, :] // opg)).astype(f32)
    wbd = (w2d.T[:, None, :] * grp[None, :, :]).reshape(KW * nfeatl, OC)

    # dense1 weight split (replaces torch.cat): local half rearranged to the pooled
    # layout rows=(h,p), lanes=o (PyTorch flatten order o*H*Wp + h*Wp + p); NOT
    # tiled over batch.  Global half as a [G, 1] column.
    wloc = wd[0, :Fl].reshape(OC, H, Wp).transpose(1, 2, 0).reshape(H * Wp, OC)
    wglob = wd[0, Fl:].reshape(nfeatg, 1)

    return dict(wbd=wbd.astype(jnp.bfloat16),
                bn_g=params["bn_g"].astype(f32),
                bn_b=params["bn_b"].astype(f32),
                wloc=wloc,
                wglob=wglob.astype(jnp.bfloat16),
                bias=params["dense_b"].astype(f32).reshape(1, 1))


def global_disc_forward(prep, localf, globalf, key):
    """Forward pass.  `key` drives the two training-mode dropout masks."""
    B, C, H, W = localf.shape
    PAD = KW // 2
    Wpad = W + 2 * PAD
    Wout = Wpad - KW + 1
    Wp = Wout // PW
    f32 = jnp.float32
    assert prep["wloc"].shape == (H * Wp, OC)

    # Raw (1x-byte) zero-padded input, rows=(b,h,x_pad), lanes=c; bf16 for DMA/MXU.
    xpad = jnp.pad(localf.astype(f32), ((0, 0), (0, 0), (0, 0), (PAD, PAD)))
    xpad_t = xpad.transpose(0, 2, 3, 1).reshape(B * H, Wpad, C).astype(jnp.bfloat16)
    globalf_b = globalf.astype(jnp.bfloat16)

    # Dropout masks (p=0.5, training), drawn host-side with jax.random.
    # TODO(synk): cannot bit-match torch's RNG stream; thread a fresh key per step.
    k1, k2 = jax.random.split(key)
    mask1 = jax.random.bernoulli(k1, 1.0 - DROP_P, (B * H * Wp, OC)).astype(f32)
    mask2 = jax.random.bernoulli(k2, 1.0 - DROP_P, (B, 1)).astype(f32)

    kernel = functools.partial(_global_disc_kernel, B=B, H=H, Wout=Wout, Wp=Wp)
    vmem = pl.BlockSpec(memory_space=pltpu.MemorySpace.VMEM)
    args = (xpad_t, prep["wbd"], prep["bn_g"], prep["bn_b"], prep["wloc"],
            globalf_b, prep["wglob"], prep["bias"], mask1, mask2)

    return pl.pallas_call(
        kernel,
        out_shape=jax.ShapeDtypeStruct((B, 1), jnp.float32),
        in_specs=[vmem] * len(args),
        out_specs=vmem,
    )(*args)


if __name__ == "__main__":
    # Small shapes consistent with the module: nfeatl must divide F1*D=16, and the
    # flattened local feature count (16*H*Wp) must equal nfeatg (globalf width).
    B, nfeatl, H, W = 2, 4, 4, 31
    Wout = W + 2 * (KW // 2) - KW + 1        # 32
    Wp = Wout // PW                          # 4
    nfeatg = OC * H * Wp                     # 256  -> dense1 input = 2*nfeatg = 512

    key = jax.random.PRNGKey(0)
    kl, kg, kp, kd = jax.random.split(key, 4)
    localf = jax.random.normal(kl, (B, nfeatl, H, W), jnp.float32)
    globalf = jax.random.normal(kg, (B, nfeatg), jnp.float32)

    params = init_params(kp, nfeatl, nfeatg)
    prep = prepare_constants(params, nfeatl, H, W, nfeatg)   # hoisted: done once

    fwd = jax.jit(global_disc_forward)
    out = jax.block_until_ready(fwd(prep, localf, globalf, kd))

    assert out.shape == (B, 1), out.shape
    assert bool(jnp.all(jnp.isfinite(out))), "non-finite output"
    print("KERNEL_OK")
</pallas_src>

<mosaic_0001>
module attributes {stable_mosaic.version = 11 : i64} {
  func.func @_global_disc_kernel(%arg0: memref<8x47x4xbf16, #tpu.memory_space<vmem>>, %arg1: memref<64x16xbf16, #tpu.memory_space<vmem>>, %arg2: memref<1x16xf32, #tpu.memory_space<vmem>>, %arg3: memref<1x16xf32, #tpu.memory_space<vmem>>, %arg4: memref<16x16xf32, #tpu.memory_space<vmem>>, %arg5: memref<2x256xbf16, #tpu.memory_space<vmem>>, %arg6: memref<256x1xbf16, #tpu.memory_space<vmem>>, %arg7: memref<1x1xf32, #tpu.memory_space<vmem>>, %arg8: memref<32x16xf32, #tpu.memory_space<vmem>>, %arg9: memref<2x1xf32, #tpu.memory_space<vmem>>, %arg10: memref<2x1xf32, #tpu.memory_space<vmem>>) attributes {dimension_semantics = [], scalar_prefetch = 0 : i64, scratch_operands = 0 : i64, tpu.core_type = #tpu.core_type<tc>} {
    %c0 = arith.constant 0 : index
    %c0_0 = arith.constant 0 : index
    %c0_1 = arith.constant 0 : index
    %0 = vector.load %arg0[%c0, %c0_0, %c0_1] : memref<8x47x4xbf16, #tpu.memory_space<vmem>>, vector<8x47x4xbf16>
    %1 = arith.extf %0 : vector<8x47x4xbf16> to vector<8x47x4xf32>
    %2 = vector.extract_strided_slice %1 {offsets = [0, 0, 0], sizes = [8, 32, 4], strides = [1, 1, 1]} : vector<8x47x4xf32> to vector<8x32x4xf32>
    %3 = vector.extract_strided_slice %1 {offsets = [0, 1, 0], sizes = [8, 32, 4], strides = [1, 1, 1]} : vector<8x47x4xf32> to vector<8x32x4xf32>
    %4 = vector.extract_strided_slice %1 {offsets = [0, 2, 0], sizes = [8, 32, 4], strides = [1, 1, 1]} : vector<8x47x4xf32> to vector<8x32x4xf32>
    %5 = vector.extract_strided_slice %1 {offsets = [0, 3, 0], sizes = [8, 32, 4], strides = [1, 1, 1]} : vector<8x47x4xf32> to vector<8x32x4xf32>
    %6 = vector.extract_strided_slice %1 {offsets = [0, 4, 0], sizes = [8, 32, 4], strides = [1, 1, 1]} : vector<8x47x4xf32> to vector<8x32x4xf32>
    %7 = vector.extract_strided_slice %1 {offsets = [0, 5, 0], sizes = [8, 32, 4], strides = [1, 1, 1]} : vector<8x47x4xf32> to vector<8x32x4xf32>
    %8 = vector.extract_strided_slice %1 {offsets = [0, 6, 0], sizes = [8, 32, 4], strides = [1, 1, 1]} : vector<8x47x4xf32> to vector<8x32x4xf32>
    %9 = vector.extract_strided_slice %1 {offsets = [0, 7, 0], sizes = [8, 32, 4], strides = [1, 1, 1]} : vector<8x47x4xf32> to vector<8x32x4xf32>
    %10 = vector.extract_strided_slice %1 {offsets = [0, 8, 0], sizes = [8, 32, 4], strides = [1, 1, 1]} : vector<8x47x4xf32> to vector<8x32x4xf32>
    %11 = vector.extract_strided_slice %1 {offsets = [0, 9, 0], sizes = [8, 32, 4], strides = [1, 1, 1]} : vector<8x47x4xf32> to vector<8x32x4xf32>
    %12 = vector.extract_strided_slice %1 {offsets = [0, 10, 0], sizes = [8, 32, 4], strides = [1, 1, 1]} : vector<8x47x4xf32> to vector<8x32x4xf32>
    %13 = vector.extract_strided_slice %1 {offsets = [0, 11, 0], sizes = [8, 32, 4], strides = [1, 1, 1]} : vector<8x47x4xf32> to vector<8x32x4xf32>
    %14 = vector.extract_strided_slice %1 {offsets = [0, 12, 0], sizes = [8, 32, 4], strides = [1, 1, 1]} : vector<8x47x4xf32> to vector<8x32x4xf32>
    %15 = vector.extract_strided_slice %1 {offsets = [0, 13, 0], sizes = [8, 32, 4], strides = [1, 1, 1]} : vector<8x47x4xf32> to vector<8x32x4xf32>
    %16 = vector.extract_strided_slice %1 {offsets = [0, 14, 0], sizes = [8, 32, 4], strides = [1, 1, 1]} : vector<8x47x4xf32> to vector<8x32x4xf32>
    %17 = vector.extract_strided_slice %1 {offsets = [0, 15, 0], sizes = [8, 32, 4], strides = [1, 1, 1]} : vector<8x47x4xf32> to vector<8x32x4xf32>
    %18 = tpu.concatenate %2, %3, %4, %5, %6, %7, %8, %9, %10, %11, %12, %13, %14, %15, %16, %17 in 2 : vector<8x32x4xf32>, vector<8x32x4xf32>, vector<8x32x4xf32>, vector<8x32x4xf32>, vector<8x32x4xf32>, vector<8x32x4xf32>, vector<8x32x4xf32>, vector<8x32x4xf32>, vector<8x32x4xf32>, vector<8x32x4xf32>, vector<8x32x4xf32>, vector<8x32x4xf32>, vector<8x32x4xf32>, vector<8x32x4xf32>, vector<8x32x4xf32>, vector<8x32x4xf32> -> vector<8x32x64xf32>
    %19 = vector.shape_cast %18 : vector<8x32x64xf32> to vector<256x64xf32>
    %20 = arith.truncf %19 : vector<256x64xf32> to vector<256x64xbf16>
    %c0_2 = arith.constant 0 : index
    %c0_3 = arith.constant 0 : index
    %21 = vector.load %arg1[%c0_2, %c0_3] : memref<64x16xbf16, #tpu.memory_space<vmem>>, vector<64x16xbf16>
    %cst = arith.constant dense<0.000000e+00> : vector<256x16xf32>
    %22 = tpu.matmul %20, %21, %cst {dimension_numbers = #tpu.dot_dimension_numbers<[1], [0], [0], [1], [0, 0, 1, 1], [], []>} : vector<256x64xbf16>, vector<64x16xbf16>, vector<256x16xf32> -> vector<256x16xf32>
    %cst_4 = arith.constant dense<0.000000e+00> : vector<16xf32>
    %23 = vector.multi_reduction <add>, %22, %cst_4 [0] : vector<256x16xf32> to vector<16xf32>
    %24 = vector.shape_cast %23 : vector<16xf32> to vector<1x16xf32>
    %cst_5 = arith.constant 2.560000e+02 : f32
    %25 = vector.broadcast %cst_5 : f32 to vector<1x16xf32>
    %26 = arith.divf %24, %25 : vector<1x16xf32>
    %27 = arith.mulf %22, %22 : vector<256x16xf32>
    %cst_6 = arith.constant dense<0.000000e+00> : vector<16xf32>
    %28 = vector.multi_reduction <add>, %27, %cst_6 [0] : vector<256x16xf32> to vector<16xf32>
    %29 = vector.shape_cast %28 : vector<16xf32> to vector<1x16xf32>
    %cst_7 = arith.constant 2.560000e+02 : f32
    %30 = vector.broadcast %cst_7 : f32 to vector<1x16xf32>
    %31 = arith.divf %29, %30 : vector<1x16xf32>
    %32 = arith.mulf %26, %26 : vector<1x16xf32>
    %33 = arith.subf %31, %32 : vector<1x16xf32>
    %cst_8 = arith.constant 0.000000e+00 : f32
    %34 = vector.broadcast %cst_8 : f32 to vector<1x16xf32>
    %35 = arith.maximumf %33, %34 : vector<1x16xf32>
    %36 = vector.broadcast %26 : vector<1x16xf32> to vector<256x16xf32>
    %37 = arith.subf %22, %36 : vector<256x16xf32>
    %cst_9 = arith.constant 9.99999974E-6 : f32
    %38 = vector.broadcast %cst_9 : f32 to vector<1x16xf32>
    %39 = arith.addf %35, %38 : vector<1x16xf32>
    %40 = math.rsqrt %39 : vector<1x16xf32>
    %41 = vector.broadcast %40 : vector<1x16xf32> to vector<256x16xf32>
    %42 = arith.mulf %37, %41 : vector<256x16xf32>
    %c0_10 = arith.constant 0 : index
    %c0_11 = arith.constant 0 : index
    %43 = vector.load %arg2[%c0_10, %c0_11] : memref<1x16xf32, #tpu.memory_space<vmem>>, vector<1x16xf32>
    %44 = vector.broadcast %43 : vector<1x16xf32> to vector<256x16xf32>
    %45 = arith.mulf %42, %44 : vector<256x16xf32>
    %c0_12 = arith.constant 0 : index
    %c0_13 = arith.constant 0 : index
    %46 = vector.load %arg3[%c0_12, %c0_13] : memref<1x16xf32, #tpu.memory_space<vmem>>, vector<1x16xf32>
    %47 = vector.broadcast %46 : vector<1x16xf32> to vector<256x16xf32>
    %48 = arith.addf %45, %47 : vector<256x16xf32>
    %49 = vector.shape_cast %48 : vector<256x16xf32> to vector<32x8x16xf32>
    %cst_14 = arith.constant dense<0.000000e+00> : vector<32x16xf32>
    %50 = vector.multi_reduction <add>, %49, %cst_14 [1] : vector<32x8x16xf32> to vector<32x16xf32>
    %cst_15 = arith.constant 8.000000e+00 : f32
    %51 = vector.broadcast %cst_15 : f32 to vector<32x16xf32>
    %52 = arith.divf %50, %51 : vector<32x16xf32>
    %c0_16 = arith.constant 0 : index
    %c0_17 = arith.constant 0 : index
    %53 = vector.load %arg8[%c0_16, %c0_17] : memref<32x16xf32, #tpu.memory_space<vmem>>, vector<32x16xf32>
    %54 = arith.mulf %52, %53 : vector<32x16xf32>
    %cst_18 = arith.constant 2.000000e+00 : f32
    %55 = vector.broadcast %cst_18 : f32 to vector<32x16xf32>
    %56 = arith.mulf %54, %55 : vector<32x16xf32>
    %57 = vector.shape_cast %56 : vector<32x16xf32> to vector<2x16x16xf32>
    %c0_19 = arith.constant 0 : index
    %c0_20 = arith.constant 0 : index
    %58 = vector.load %arg4[%c0_19, %c0_20] : memref<16x16xf32, #tpu.memory_space<vmem>>, vector<16x16xf32>
    %59 = vector.shape_cast %58 : vector<16x16xf32> to vector<1x16x16xf32>
    %60 = vector.broadcast %59 : vector<1x16x16xf32> to vector<2x16x16xf32>
    %61 = arith.mulf %57, %60 : vector<2x16x16xf32>
    %cst_21 = arith.constant dense<0.000000e+00> : vector<2x16xf32>
    %62 = vector.multi_reduction <add>, %61, %cst_21 [1] : vector<2x16x16xf32> to vector<2x16xf32>
    %cst_22 = arith.constant dense<0.000000e+00> : vector<2xf32>
    %63 = vector.multi_reduction <add>, %62, %cst_22 [1] : vector<2x16xf32> to vector<2xf32>
    %64 = vector.shape_cast %63 : vector<2xf32> to vector<2x1xf32>
    %c0_23 = arith.constant 0 : index
    %c0_24 = arith.constant 0 : index
    %65 = vector.load %arg5[%c0_23, %c0_24] : memref<2x256xbf16, #tpu.memory_space<vmem>>, vector<2x256xbf16>
    %c0_25 = arith.constant 0 : index
    %c0_26 = arith.constant 0 : index
    %66 = vector.load %arg6[%c0_25, %c0_26] : memref<256x1xbf16, #tpu.memory_space<vmem>>, vector<256x1xbf16>
    %cst_27 = arith.constant dense<0.000000e+00> : vector<2x1xf32>
    %67 = tpu.matmul %65, %66, %cst_27 {dimension_numbers = #tpu.dot_dimension_numbers<[1], [0], [0], [1], [0, 0, 1, 1], [], []>} : vector<2x256xbf16>, vector<256x1xbf16>, vector<2x1xf32> -> vector<2x1xf32>
    %68 = arith.addf %64, %67 : vector<2x1xf32>
    %c0_28 = arith.constant 0 : index
    %c0_29 = arith.constant 0 : index
    %69 = vector.load %arg7[%c0_28, %c0_29] : memref<1x1xf32, #tpu.memory_space<vmem>>, vector<1x1xf32>
    %70 = vector.broadcast %69 : vector<1x1xf32> to vector<2x1xf32>
    %71 = arith.addf %68, %70 : vector<2x1xf32>
    %c0_30 = arith.constant 0 : index
    %c0_31 = arith.constant 0 : index
    %72 = vector.load %arg9[%c0_30, %c0_31] : memref<2x1xf32, #tpu.memory_space<vmem>>, vector<2x1xf32>
    %73 = arith.mulf %71, %72 : vector<2x1xf32>
    %cst_32 = arith.constant 2.000000e+00 : f32
    %74 = vector.broadcast %cst_32 : f32 to vector<2x1xf32>
    %75 = arith.mulf %73, %74 : vector<2x1xf32>
    %c0_33 = arith.constant 0 : index
    %c0_34 = arith.constant 0 : index
    %76 = vector.load %arg10[%c0_33, %c0_34] : memref<2x1xf32, #tpu.memory_space<vmem>>, vector<2x1xf32>
    tpu.vector_store %arg10[%c0_33, %c0_34], %75 {strides = array<i32>} : memref<2x1xf32, #tpu.memory_space<vmem>>, vector<2x1xf32>,
    return
  }
}

</mosaic_0001>

<bundles_post_ra>
// kernel: global_disc_forward.3
= control target key start
LH: loop header
LB: loop body
LE: loop exit
PB: predicated region body
PF: predicated region fallthrough
CT: control target
= control target key end

     0   :  { %vm174_vm0 = vcmask 1046528   ;;  %s5592_s29 = smov 4   ;;  %vm343_vm1 = vcmask 1045504   ;;  %vm512_vm2 = vcmask 1044480   ;;  %vm681_vm3 = vcmask 1043456   ;;  %s5595_s23 = smov 16   ;;  %s10306_s0 = inlined_call_operand.vmem [shape: bf16[8,47,4], index: 0, kind: input, shape index: {}]   ;;  %s10307_s1 = inlined_call_operand.vmem [shape: bf16[64,16], index: 1, kind: input, shape index: {}]   ;;  %s10308_s6 = inlined_call_operand.vmem [shape: bf16[256,1], index: 6, kind: input, shape index: {}]   ;;  %s10309_s5 = inlined_call_operand.vmem [shape: bf16[2,256], index: 5, kind: input, shape index: {}]   ;;  %s10310_s4 = inlined_call_operand.vmem [shape: f32[16,16], index: 4, kind: input, shape index: {}]   ;;  %s10311_s8 = inlined_call_operand.vmem [shape: f32[32,16], index: 8, kind: input, shape index: {}]   ;;  %s10312_s2 = inlined_call_operand.vmem [shape: f32[1,16], index: 2, kind: input, shape index: {}]   ;;  %s10313_s3 = inlined_call_operand.vmem [shape: f32[1,16], index: 3, kind: input, shape index: {}]   ;;  %s10314_s7 = inlined_call_operand.<no memory space> [shape: f32[1,1], index: 7, kind: input, shape index: {}]   ;;  %s10315_s9 = inlined_call_operand.vmem [shape: f32[2,1], index: 9, kind: input, shape index: {}]   ;;  %s10316_s10 = inlined_call_operand.vmem [shape: f32[2,1], index: 10, kind: output, shape index: {}]  }
   0x1   :  { %v4249_v0 = vld [vmem:[%s10306_s0 + $0x18] sm:$0xff]   ;;  %v4250_v1 = vld [vmem:[%s10306_s0 + $0x20] sm:$0xff]   ;;  %v4247_v7 = vld [vmem:[%s10306_s0 + $0x8] sm:$0xff]   ;;  %vm850_vm4 = vcmask 1042432   ;;  %s5596_s24 = smov 20   ;;  %vm2245_vm5 = vcmask 31744  }
   0x2   :  { %v4152_v2 = vld [vmem:[%s10306_s0] sm:$0xff]   ;;  %v5672_v3 = vunpack.c.h.bf16 %v4249_v0  ;;  %v5674_v4 = vunpack.c.l.bf16 %v4250_v1  ;;  %v5676_v5 = vunpack.c.h.bf16 %v4250_v1  ;;  %v5678_v6 = vunpack.c.l.bf16 %v4249_v0  ;;  %v4251_v12 = vld [vmem:[%s10306_s0 + $0x28] sm:$0xff]   ;;  %v4248_v25 = vld [vmem:[%s10306_s0 + $0x10] sm:$0xff]   ;;  %s5597_s25 = smov 24   ;;  %s5598_s26 = smov 28  }
   0x3   :  { %v5683_v8 = vunpack.c.h.bf16 %v4152_v2  ;;  %v5685_v9 = vunpack.c.l.bf16 %v4247_v7  ;;  %v5687_v10 = vunpack.c.h.bf16 %v4247_v7  ;;  %v5689_v11 = vunpack.c.l.bf16 %v4152_v2  ;;  %v4253_v26 = vld [vmem:[%s10306_s0 + $0x38] sm:$0xff]   ;;  %v4254_v31 = vld [vmem:[%s10306_s0 + $0x40] sm:$0xff]   ;;  %v4252_v44 = vld [vmem:[%s10306_s0 + $0x30] sm:$0xff]   ;;  %s5599_s27 = smov 32   ;;  %s5600_s28 = smov 36  }
   0x4   :  { %10670 = vst [vmem:[#allocation3_spill] sm:$0xff] %v5672_v3  ;;  %10671 = vst [vmem:[#allocation4_spill] sm:$0xff] %v5674_v4  ;;  %v185_v13 = vrot.slane %v5672_v3, 1  ;;  %v187_v14 = vrot.slane %v5674_v4, 1  ;;  %v189_v15 = vrot.slane %v5676_v5, 1  ;;  %v184_v16 = vrot.slane %v5678_v6, 1 }
   0x5   :  { %10672 = vst [vmem:[#allocation5_spill] sm:$0xff] %v5676_v5  ;;  %10673 = vst [vmem:[#allocation6_spill] sm:$0xff] %v5678_v6  ;;  %v176_v17 = vrot.slane %v5683_v8, 1  ;;  %v178_v18 = vrot.slane %v5685_v9, 1  ;;  %v180_v19 = vrot.slane %v5687_v10, 1  ;;  %v175_v20 = vrot.slane %v5689_v11, 1 }
   0x6   :  { %10674 = vst [vmem:[#allocation7_spill] sm:$0xff] %v5683_v8  ;;  %10675 = vst [vmem:[#allocation8_spill] sm:$0xff] %v5689_v11  ;;  %v5703_v21 = vsel %vm174_vm0, %v185_v13, %v187_v14  ;;  %v5706_v22 = vsel %vm174_vm0, %v187_v14, %v189_v15  ;;  %v186_v23 = vsel %vm174_vm0, %v184_v16, %v185_v13  ;;  %v5709_v24 = vunpack.c.l.bf16 %v4251_v12  ;;  %v4256_v57 = vld [vmem:[%s10306_s0 + $0x50] sm:$0xff]   ;;  %v4257_v58 = vld [vmem:[%s10306_s0 + $0x58] sm:$0xff]   ;;  %s5601_s12 = smov 40   ;;  %s5602_s15 = smov 44  }
   0x7   :  { %10676 = vst [vmem:[#allocation9_spill] sm:$0xff] %v5703_v21  ;;  %10677 = vst [vmem:[#allocation10_spill] sm:$0xff] %v5706_v22  ;;  %v4378_v28 = vpack.i.bf16 %v5703_v21, %v186_v23  ;;  %v5721_v29 = vsel %vm174_vm0, %v176_v17, %v178_v18  ;;  %v5724_v30 = vsel %vm174_vm0, %v178_v18, %v180_v19  ;;  %v5732_v34 = vunpack.c.h.bf16 %v4251_v12  ;;  %v4255_v63 = vld [vmem:[%s10306_s0 + $0x48] sm:$0xff]   ;;  %v4261_v59 = vld [vmem:[%s10306_s0 + $0x78] sm:$0xff]   ;;  %s5603_s18 = smov 48   ;;  %s5605_s21 = smov 56  }
   0x8   :  { %10678 = vst [vmem:[#allocation11_spill] sm:$0xff] %v5709_v24  ;;  %10679 = vst [vmem:[#allocation12_spill] sm:$0xff] %v5721_v29  ;;  %v177_v33 = vsel %vm174_vm0, %v175_v20, %v176_v17  ;;  %v191_v35 = vrot.slane %v5709_v24, 1  ;;  %v5737_v37 = vunpack.c.l.bf16 %v4248_v25  ;;  %v5739_v38 = vunpack.c.h.bf16 %v4248_v25  ;;  %v4259_v20 = vld [vmem:[%s10306_s0 + $0x68] sm:$0xff]   ;;  %s5606_s22 = smov 60  }
   0x9   :  { %10680 = vst [vmem:[#allocation13_spill] sm:$0xff] %v5724_v30  ;;  %10681 = vst [vmem:[#allocation14_spill] sm:$0xff] %v5732_v34  ;;  %4379 = vrot.lane.b32.xlu1 %v4378_v28, %s5592_s29  ;;  %v4368_v36 = vpack.i.bf16 %v5721_v29, %v177_v33  ;;  %v5741_v39 = vunpack.c.h.bf16 %v4253_v26  ;;  %v1463_v41 = vrot.slane %v5732_v34, 1  ;;  %v5747_v42 = vunpack.c.l.bf16 %v4254_v31 }
   0xa   :  { %10682 = vst [vmem:[#allocation15_spill] sm:$0xff] %v5739_v38  ;;  %v5744_v40 = vsel %vm174_vm0, %v189_v15, %v191_v35  ;;  %v5749_v43 = vunpack.c.h.bf16 %v4254_v31  ;;  %v182_v46 = vrot.slane %v5737_v37, 1  ;;  %v1461_v47 = vrot.slane %v5739_v38, 1  ;;  %v4260_v31 = vld [vmem:[%s10306_s0 + $0x70] sm:$0xff]  }
   0xb   :  { %10683 = vst [vmem:[#allocation16_spill] sm:$0xff] %v5741_v39  ;;  %10684 = vst [vmem:[#allocation17_spill] sm:$0xff] %v5744_v40  ;;  %4369 = vrot.lane.b32.xlu0 %v4368_v36, %s5592_s29  ;;  %v4383_v45 = vpack.i.bf16 %v5744_v40, %v5706_v22  ;;  %v198_v48 = vrot.slane %v5741_v39, 1  ;;  %v5761_v49 = vsel %vm174_vm0, %v191_v35, %v1463_v41  ;;  %v200_v50 = vrot.slane %v5747_v42, 1 }
   0xc   :  { %10685 = vst [vmem:[#allocation18_spill] sm:$0xff] %v5747_v42  ;;  %10686 = vst [vmem:[#allocation19_spill] sm:$0xff] %v5749_v43  ;;  %v1465_v51 = vrot.slane %v5749_v43, 1  ;;  %v5765_v52 = vunpack.c.l.bf16 %v4253_v26  ;;  %v5771_v54 = vsel %vm174_vm0, %v180_v19, %v182_v46  ;;  %v5774_v55 = vsel %vm174_vm0, %v182_v46, %v1461_v47 }
   0xd   :  { %10687 = vst [vmem:[#allocation20_spill] sm:$0xff] %v5761_v49  ;;  %4384 = vrot.lane.b32.xlu1 %v4383_v45, %s5592_s29  ;;  %10689 = vst [vmem:[#allocation22_spill] sm:$0xff] %v5771_v54  ;;  %v5776_v56 = vunpack.c.h.bf16 %v4252_v44  ;;  %v4373_v60 = vpack.i.bf16 %v5771_v54, %v5724_v30  ;;  %v5789_v61 = vsel %vm174_vm0, %v198_v48, %v200_v50  ;;  %v5801_v7 = vunpack.c.l.bf16 %v4252_v44 }
   0xe   :  { %10688 = vst [vmem:[#allocation21_spill] sm:$0xff] %v5765_v52  ;;  %10690 = vst [vmem:[#allocation23_spill] sm:$0xff] %v5774_v55  ;;  %v5792_v62 = vsel %vm174_vm0, %v200_v50, %v1465_v51  ;;  %v196_v1 = vrot.slane %v5765_v52, 1  ;;  %v5804_v12 = vunpack.c.h.bf16 %v4256_v57  ;;  %v5806_v13 = vunpack.c.l.bf16 %v4257_v58 }
   0xf   :  { %10691 = vst [vmem:[#allocation24_spill] sm:$0xff] %v5776_v56  ;;  %10692 = vst [vmem:[#allocation25_spill] sm:$0xff] %v5789_v61  ;;  %v194_v2 = vrot.slane %v5776_v56, 1  ;;  %4374 = vrot.lane.b32.xlu0 %v4373_v60, %s5592_s29  ;;  %v5808_v14 = vunpack.c.h.bf16 %v4257_v58  ;;  %v5810_v15 = vunpack.c.l.bf16 %v4256_v57  ;;  %v193_v18 = vrot.slane %v5801_v7, 1  ;;  %v4258_v58 = vld [vmem:[%s10306_s0 + $0x60] sm:$0xff]  }
  0x10   :  { %10693 = vst [vmem:[#allocation26_spill] sm:$0xff] %v5792_v62  ;;  %10694 = vst [vmem:[#allocation27_spill] sm:$0xff] %v5801_v7  ;;  %v5813_v16 = vsel %vm174_vm0, %v196_v1, %v198_v48  ;;  %v5819_v19 = vunpack.c.h.bf16 %v4255_v63  ;;  %v207_v26 = vrot.slane %v5804_v12, 1  ;;  %v209_v28 = vrot.slane %v5806_v13, 1  ;;  %v4262_v60 = vld [vmem:[%s10306_s0 + $0x80] sm:$0xff]  }
  0x11   :  { %10695 = vst [vmem:[#allocation28_spill] sm:$0xff] %v5804_v12  ;;  %10696 = vst [vmem:[#allocation29_spill] sm:$0xff] %v5806_v13  ;;  %v5816_v17 = vsel %vm174_vm0, %v194_v2, %v196_v1  ;;  %v4393_v23 = vpack.i.bf16 %v5789_v61, %v5813_v16  ;;  %v195_v33 = vsel %vm174_vm0, %v193_v18, %v194_v2  ;;  %v1467_v35 = vrot.slane %v5808_v14, 1  ;;  %v4269_v61 = vld [vmem:[%s10306_s0 + $0xb8] sm:$0xff]  }
  0x12   :  { %10697 = vst [vmem:[#allocation30_spill] sm:$0xff] %v5808_v14  ;;  %10698 = vst [vmem:[#allocation31_spill] sm:$0xff] %v5810_v15  ;;  %v205_v36 = vrot.slane %v5810_v15, 1  ;;  %v203_v41 = vrot.slane %v5819_v19, 1  ;;  %v4388_v44 = vpack.i.bf16 %v5816_v17, %v195_v33  ;;  %v5840_v45 = vsel %vm174_vm0, %v207_v26, %v209_v28 }
  0x13   :  { %10699 = vst [vmem:[#allocation32_spill] sm:$0xff] %v5813_v16  ;;  %10700 = vst [vmem:[#allocation33_spill] sm:$0xff] %v5816_v17  ;;  %4394 = vrot.lane.b32.xlu1 %v4393_v23, %s5592_s29  ;;  %v5842_v46 = vunpack.c.l.bf16 %v4255_v63  ;;  %v5844_v47 = vunpack.c.h.bf16 %v4259_v20  ;;  %v5847_v48 = vsel %vm174_vm0, %v209_v28, %v1467_v35  ;;  %v5855_v57 = vunpack.c.l.bf16 %v4260_v31  ;;  %v4263_v35 = vld [vmem:[%s10306_s0 + $0x88] sm:$0xff]  }
  0x14   :  { %10701 = vst [vmem:[#allocation34_spill] sm:$0xff] %v5819_v19  ;;  %10702 = vst [vmem:[#allocation35_spill] sm:$0xff] %v5840_v45  ;;  %v5850_v50 = vsel %vm174_vm0, %v205_v36, %v207_v26  ;;  %v5853_v51 = vsel %vm174_vm0, %v203_v41, %v205_v36  ;;  %4389 = vrot.lane.b32.xlu0 %v4388_v44, %s5592_s29  ;;  %v5871_v23 = vunpack.c.h.bf16 %v4260_v31  ;;  %v5875_v33 = vunpack.c.l.bf16 %v4259_v20 }
  0x15   :  { %10703 = vst [vmem:[#allocation36_spill] sm:$0xff] %v5842_v46  ;;  %10704 = vst [vmem:[#allocation37_spill] sm:$0xff] %v5844_v47  ;;  %v4403_v1 = vpack.i.bf16 %v5840_v45, %v5850_v50  ;;  %v202_v18 = vrot.slane %v5842_v46, 1  ;;  %v216_v26 = vrot.slane %v5844_v47, 1  ;;  %v218_v28 = vrot.slane %v5855_v57, 1 }
  0x16   :  { %10705 = vst [vmem:[#allocation38_spill] sm:$0xff] %v5847_v48  ;;  %10706 = vst [vmem:[#allocation39_spill] sm:$0xff] %v5850_v50  ;;  %v5882_v44 = vunpack.c.h.bf16 %v4258_v58  ;;  %v5884_v2 = vunpack.c.l.bf16 %v4258_v58  ;;  %v5886_v31 = vunpack.c.h.bf16 %v4262_v60  ;;  %v1469_v20 = vrot.slane %v5871_v23, 1 }
  0x17   :  { %10707 = vst [vmem:[#allocation40_spill] sm:$0xff] %v5853_v51  ;;  %10708 = vst [vmem:[#allocation41_spill] sm:$0xff] %v5855_v57  ;;  %4404 = vrot.lane.b32.xlu1 %v4403_v1, %s5592_s29  ;;  %v204_v36 = vsel %vm174_vm0, %v202_v18, %v203_v41  ;;  %v5890_v25 = vsel %vm174_vm0, %v216_v26, %v218_v28  ;;  %v214_v0 = vrot.slane %v5875_v33, 1  ;;  %v5896_v41 = vunpack.c.l.bf16 %v4263_v35 }
  0x18   :  { %10709 = vst [vmem:[#allocation42_spill] sm:$0xff] %v5871_v23  ;;  %10710 = vst [vmem:[#allocation43_spill] sm:$0xff] %v5875_v33  ;;  %v4398_v63 = vpack.i.bf16 %v5853_v51, %v204_v36  ;;  %v212_v27 = vrot.slane %v5882_v44, 1  ;;  %v211_v1 = vrot.slane %v5884_v2, 1  ;;  %v5898_v18 = vunpack.c.h.bf16 %v4263_v35  ;;  %v4265_v35 = vld [vmem:[%s10306_s0 + $0x98] sm:$0xff]  }
  0x19   :  { %10711 = vst [vmem:[#allocation44_spill] sm:$0xff] %v5882_v44  ;;  %10712 = vst [vmem:[#allocation45_spill] sm:$0xff] %v5884_v2  ;;  %v5902_v58 = vsel %vm174_vm0, %v218_v28, %v1469_v20  ;;  %v5905_v36 = vsel %vm174_vm0, %v214_v0, %v216_v26  ;;  %v225_v53 = vrot.slane %v5886_v31, 1  ;;  %v5908_v32 = vunpack.c.l.bf16 %v4262_v60  ;;  %v4266_v20 = vld [vmem:[%s10306_s0 + $0xa0] sm:$0xff]  }
  0x1a   :  { %10713 = vst [vmem:[#allocation46_spill] sm:$0xff] %v5886_v31  ;;  %10714 = vst [vmem:[#allocation47_spill] sm:$0xff] %v5890_v25  ;;  %4399 = vrot.lane.b32.xlu0 %v4398_v63, %s5592_s29  ;;  %v4413_v28 = vpack.i.bf16 %v5890_v25, %v5905_v36  ;;  %v5921_v26 = vsel %vm174_vm0, %v212_v27, %v214_v0  ;;  %v213_v60 = vsel %vm174_vm0, %v211_v1, %v212_v27  ;;  %vm2278_vm6 = vcmask 64512  }
  0x1b   :  { %10715 = vst [vmem:[#allocation48_spill] sm:$0xff] %v5896_v41  ;;  %10716 = vst [vmem:[#allocation49_spill] sm:$0xff] %v5898_v18  ;;  %v4408_v50 = vpack.i.bf16 %v5921_v26, %v213_v60  ;;  %v227_v45 = vrot.slane %v5896_v41, 1  ;;  %v1471_v63 = vrot.slane %v5898_v18, 1  ;;  %v223_v0 = vrot.slane %v5908_v32, 1 }
  0x1c   :  { %10717 = vst [vmem:[#allocation50_spill] sm:$0xff] %v5902_v58  ;;  %10718 = vst [vmem:[#allocation51_spill] sm:$0xff] %v5905_v36  ;;  %4414 = vrot.lane.b32.xlu1 %v4413_v28, %s5592_s29  ;;  %v5934_v25 = vunpack.c.h.bf16 %v4261_v59  ;;  %v5936_v27 = vunpack.c.l.bf16 %v4261_v59  ;;  %v5938_v1 = vunpack.c.h.bf16 %v4265_v35  ;;  %v5949_v36 = vunpack.c.h.bf16 %v4266_v20  ;;  %v4264_v28 = vld [vmem:[%s10306_s0 + $0x90] sm:$0xff]  }
  0x1d   :  { %10719 = vst [vmem:[#allocation52_spill] sm:$0xff] %v5908_v32  ;;  %10720 = vst [vmem:[#allocation53_spill] sm:$0xff] %v5921_v26  ;;  %v5942_v51 = vsel %vm174_vm0, %v225_v53, %v227_v45  ;;  %v5945_v60 = vsel %vm174_vm0, %v227_v45, %v1471_v63  ;;  %v5947_v26 = vunpack.c.l.bf16 %v4266_v20  ;;  %v5957_v58 = vsel %vm174_vm0, %v223_v0, %v225_v53 }
  0x1e   :  { %10721 = vst [vmem:[#allocation54_spill] sm:$0xff] %v5934_v25  ;;  %10722 = vst [vmem:[#allocation55_spill] sm:$0xff] %v5936_v27  ;;  %4409 = vrot.lane.b32.xlu0 %v4408_v50, %s5592_s29  ;;  %v221_v50 = vrot.slane %v5934_v25, 1  ;;  %v220_v48 = vrot.slane %v5936_v27, 1  ;;  %v4423_v45 = vpack.i.bf16 %v5942_v51, %v5957_v58  ;;  %v234_v63 = vrot.slane %v5938_v1, 1 }
  0x1f   :  { %10723 = vst [vmem:[#allocation56_spill] sm:$0xff] %v5938_v1  ;;  %10724 = vst [vmem:[#allocation57_spill] sm:$0xff] %v5942_v51  ;;  %v236_v20 = vrot.slane %v5947_v26, 1  ;;  %v1473_v17 = vrot.slane %v5949_v36, 1  ;;  %v5970_v59 = vunpack.c.l.bf16 %v4265_v35  ;;  %v4268_v51 = vld [vmem:[%s10306_s0 + $0xb0] sm:$0xff]   ;;  %vm1019_vm7 = vcmask 1041408  }
  0x20   :  { %10725 = vst [vmem:[#allocation58_spill] sm:$0xff] %v5945_v60  ;;  %10726 = vst [vmem:[#allocation59_spill] sm:$0xff] %v5947_v26  ;;  %v5967_v16 = vsel %vm174_vm0, %v221_v50, %v223_v0  ;;  %v222_v53 = vsel %vm174_vm0, %v220_v48, %v221_v50  ;;  %v5972_v60 = vunpack.c.h.bf16 %v4264_v28  ;;  %4424 = vrot.lane.b32.xlu1 %v4423_v45, %s5592_s29  ;;  %v4267_v50 = vld [vmem:[%s10306_s0 + $0xa8] sm:$0xff]   ;;  %v5997_v0 = vunpack.c.l.bf16 %v4264_v28  ;;  %s5593_s0 = smov 8  }
  0x21   :  { %10727 = vst [vmem:[#allocation60_spill] sm:$0xff] %v5949_v36  ;;  %10728 = vst [vmem:[#allocation61_spill] sm:$0xff] %v5957_v58  ;;  %v4418_v62 = vpack.i.bf16 %v5967_v16, %v222_v53  ;;  %v5985_v48 = vsel %vm174_vm0, %v234_v63, %v236_v20  ;;  %v5988_v35 = vsel %vm174_vm0, %v236_v20, %v1473_v17  ;;  %v232_v45 = vrot.slane %v5970_v59, 1 }
  0x22   :  { %10729 = vst [vmem:[#allocation62_spill] sm:$0xff] %v5967_v16  ;;  %10730 = vst [vmem:[#allocation63_spill] sm:$0xff] %v5970_v59  ;;  %v230_v22 = vrot.slane %v5972_v60, 1  ;;  %v6000_v53 = vunpack.c.h.bf16 %v4268_v51  ;;  %v6002_v16 = vunpack.c.l.bf16 %v4269_v61  ;;  %v6004_v17 = vunpack.c.h.bf16 %v4269_v61 }
  0x23   :  { %10731 = vst [vmem:[#allocation64_spill] sm:$0xff] %v5972_v60  ;;  %10732 = vst [vmem:[#allocation65_spill] sm:$0xff] %v5985_v48  ;;  %4419 = vrot.lane.b32.xlu0 %v4418_v62, %s5592_s29  ;;  %v6006_v20 = vunpack.c.l.bf16 %v4268_v51  ;;  %v6009_v58 = vsel %vm174_vm0, %v232_v45, %v234_v63  ;;  %v6015_v28 = vunpack.c.h.bf16 %v4267_v50  ;;  %v6032_v40 = vunpack.c.l.bf16 %v4267_v50 }
  0x24   :  { %10733 = vst [vmem:[#allocation66_spill] sm:$0xff] %v5988_v35  ;;  %10734 = vst [vmem:[#allocation67_spill] sm:$0xff] %v5997_v0  ;;  %v6012_v21 = vsel %vm174_vm0, %v230_v22, %v232_v45  ;;  %v229_v35 = vrot.slane %v5997_v0, 1  ;;  %v4433_v62 = vpack.i.bf16 %v5985_v48, %v6009_v58  ;;  %v243_v61 = vrot.slane %v6000_v53, 1 }
  0x25   :  { %10735 = vst [vmem:[#allocation68_spill] sm:$0xff] %v6000_v53  ;;  %10736 = vst [vmem:[#allocation69_spill] sm:$0xff] %v6002_v16  ;;  %v245_v51 = vrot.slane %v6002_v16, 1  ;;  %v1475_v49 = vrot.slane %v6004_v17, 1  ;;  %v241_v45 = vrot.slane %v6006_v20, 1  ;;  %v239_v29 = vrot.slane %v6015_v28, 1 }
  0x26   :  { %10737 = vst [vmem:[#allocation70_spill] sm:$0xff] %v6004_v17  ;;  %10738 = vst [vmem:[#allocation71_spill] sm:$0xff] %v6006_v20  ;;  %v231_v63 = vsel %vm174_vm0, %v229_v35, %v230_v22  ;;  %4434 = vrot.lane.b32.xlu1 %v4433_v62, %s5592_s29  ;;  %v351_v62 = vrot.slane %v5737_v37, 2  ;;  %vm2311_vm8 = vcmask 97280   ;;  %vm10668_vm9 = vcmask 1040384  }
  0x27   :  { %10739 = vst [vmem:[#allocation72_spill] sm:$0xff] %v6009_v58  ;;  %10740 = vst [vmem:[#allocation73_spill] sm:$0xff] %v6012_v21  ;;  %v4428_v30 = vpack.i.bf16 %v6012_v21, %v231_v63  ;;  %v6030_v48 = vsel %vm174_vm0, %v243_v61, %v245_v51  ;;  %v349_v58 = vrot.slane %v5687_v10, 2  ;;  %v6036_v54 = vsel %vm174_vm0, %v245_v51, %v1475_v49 }
  0x28   :  { %10741 = vst [vmem:[#allocation74_spill] sm:$0xff] %v6015_v28  ;;  %10742 = vst [vmem:[#allocation75_spill] sm:$0xff] %v6030_v48  ;;  %v6039_v22 = vsel %vm174_vm0, %v241_v45, %v243_v61  ;;  %v6042_v35 = vsel %vm174_vm0, %v239_v29, %v241_v45  ;;  %v238_v51 = vrot.slane %v6032_v40, 1  ;;  %v1573_v45 = vrot.slane %v5739_v38, 2 }
  0x29   :  { %10743 = vst [vmem:[#allocation76_spill] sm:$0xff] %v6032_v40  ;;  %10744 = vst [vmem:[#allocation77_spill] sm:$0xff] %v6036_v54  ;;  %4429 = vrot.lane.b32.xlu0 %v4428_v30, %s5592_s29  ;;  %v4443_v50 = vpack.i.bf16 %v6030_v48, %v6039_v22  ;;  %v6054_v61 = vsel %vm343_vm1, %v349_v58, %v351_v62  ;;  %v347_v21 = vrot.slane %v5685_v9, 2  ;;  %v345_v30 = vrot.slane %v5683_v8, 2 }
  0x2a   :  { %10745 = vst [vmem:[#allocation78_spill] sm:$0xff] %v6039_v22  ;;  %10746 = vst [vmem:[#allocation79_spill] sm:$0xff] %v6042_v35  ;;  %v240_v63 = vsel %vm174_vm0, %v238_v51, %v239_v29  ;;  %v344_v48 = vrot.slane %v5689_v11, 2  ;;  %v358_v54 = vrot.slane %v5676_v5, 2  ;;  %v360_v49 = vrot.slane %v5709_v24, 2 }
  0x2b   :  { %10747 = vst [vmem:[#allocation80_spill] sm:$0xff] %v6054_v61  ;;  %4444 = vrot.lane.b32.xlu1 %v4443_v50, %s5592_s29  ;;  %v4438_v22 = vpack.i.bf16 %v6042_v35, %v240_v63  ;;  %v6066_v55 = vsel %vm343_vm1, %v351_v62, %v1573_v45  ;;  %v6069_v38 = vsel %vm343_vm1, %v347_v21, %v349_v58  ;;  %v356_v45 = vrot.slane %v5674_v4, 2 }
  0x2c   :  { %10748 = vst [vmem:[#allocation81_spill] sm:$0xff] %v6066_v55  ;;  %10749 = vst [vmem:[#allocation82_spill] sm:$0xff] %v6069_v38  ;;  %v6072_v8 = vsel %vm343_vm1, %v345_v30, %v347_v21  ;;  %v4453_v50 = vpack.i.bf16 %v6054_v61, %v6069_v38  ;;  %v346_v63 = vsel %vm343_vm1, %v344_v48, %v345_v30  ;;  %v1575_v21 = vrot.slane %v5732_v34, 2 }
  0x2d   :  { %10750 = vst [vmem:[#allocation83_spill] sm:$0xff] %v6072_v8  ;;  %4439 = vrot.lane.b32.xlu0 %v4438_v22, %s5592_s29  ;;  %v4448_v62 = vpack.i.bf16 %v6072_v8, %v346_v63  ;;  %v6084_v58 = vsel %vm343_vm1, %v358_v54, %v360_v49  ;;  %v354_v29 = vrot.slane %v5672_v3, 2  ;;  %v353_v51 = vrot.slane %v5678_v6, 2  ;;  %s5594_s29 = smov 12  }
  0x2e   :  { %10751 = vst [vmem:[#allocation84_spill] sm:$0xff] %v6084_v58  ;;  %v367_v48 = vrot.slane %v5741_v39, 2  ;;  %v369_v22 = vrot.slane %v5747_v42, 2  ;;  %v6094_v30 = vsel %vm343_vm1, %v360_v49, %v1575_v21  ;;  %v6097_v63 = vsel %vm343_vm1, %v356_v45, %v358_v54 }
  0x2f   :  { %4454 = vrot.lane.b32.xlu1 %v4453_v50, %s5593_s0  ;;  %10752 = vst [vmem:[#allocation85_spill] sm:$0xff] %v6094_v30  ;;  %10753 = vst [vmem:[#allocation86_spill] sm:$0xff] %v6097_v63  ;;  %v1577_v35 = vrot.slane %v5749_v43, 2  ;;  %v365_v8 = vrot.slane %v5765_v52, 2  ;;  %v4463_v38 = vpack.i.bf16 %v6084_v58, %v6097_v63  ;;  %v6106_v61 = vsel %vm343_vm1, %v354_v29, %v356_v45 }
  0x30   :  { %10754 = vst [vmem:[#allocation87_spill] sm:$0xff] %v6106_v61  ;;  %v355_v55 = vsel %vm343_vm1, %v353_v51, %v354_v29  ;;  %v6114_v21 = vsel %vm343_vm1, %v367_v48, %v369_v22  ;;  %v363_v51 = vrot.slane %v5776_v56, 2  ;;  %v376_v54 = vrot.slane %v5804_v12, 2 }
  0x31   :  { %4449 = vrot.lane.b32.xlu0 %v4448_v62, %s5593_s0  ;;  %v4458_v49 = vpack.i.bf16 %v6106_v61, %v355_v55  ;;  %10755 = vst [vmem:[#allocation88_spill] sm:$0xff] %v6114_v21  ;;  %v6117_v50 = vsel %vm343_vm1, %v369_v22, %v1577_v35  ;;  %v6123_v29 = vsel %vm343_vm1, %v365_v8, %v367_v48  ;;  %v362_v62 = vrot.slane %v5801_v7, 2 }
  0x32   :  { %10756 = vst [vmem:[#allocation89_spill] sm:$0xff] %v6117_v50  ;;  %10757 = vst [vmem:[#allocation90_spill] sm:$0xff] %v6123_v29  ;;  %v4473_v55 = vpack.i.bf16 %v6114_v21, %v6123_v29  ;;  %v378_v35 = vrot.slane %v5806_v13, 2  ;;  %v1579_v22 = vrot.slane %v5808_v14, 2  ;;  %v374_v48 = vrot.slane %v5810_v15, 2 }
  0x33   :  { %4464 = vrot.lane.b32.xlu1 %v4463_v38, %s5593_s0  ;;  %v6133_v38 = vsel %vm343_vm1, %v363_v51, %v365_v8  ;;  %v364_v45 = vsel %vm343_vm1, %v362_v62, %v363_v51  ;;  %v372_v50 = vrot.slane %v5819_v19, 2  ;;  %v371_v62 = vrot.slane %v5842_v46, 2 }
  0x34   :  { %10758 = vst [vmem:[#allocation91_spill] sm:$0xff] %v6133_v38  ;;  %v4468_v61 = vpack.i.bf16 %v6133_v38, %v364_v45  ;;  %v6143_v63 = vsel %vm343_vm1, %v376_v54, %v378_v35  ;;  %v6146_v58 = vsel %vm343_vm1, %v378_v35, %v1579_v22  ;;  %v6152_v51 = vsel %vm343_vm1, %v374_v48, %v376_v54 }
  0x35   :  { %4459 = vrot.lane.b32.xlu0 %v4458_v49, %s5593_s0  ;;  %10759 = vst [vmem:[#allocation92_spill] sm:$0xff] %v6143_v63  ;;  %10760 = vst [vmem:[#allocation93_spill] sm:$0xff] %v6146_v58  ;;  %v6155_v49 = vsel %vm343_vm1, %v372_v50, %v374_v48  ;;  %v4483_v45 = vpack.i.bf16 %v6143_v63, %v6152_v51  ;;  %v385_v22 = vrot.slane %v5844_v47, 2  ;;  %v1581_v54 = vrot.slane %v5871_v23, 2 }
  0x36   :  { %10761 = vst [vmem:[#allocation94_spill] sm:$0xff] %v6152_v51  ;;  %10762 = vst [vmem:[#allocation95_spill] sm:$0xff] %v6155_v49  ;;  %v373_v8 = vsel %vm343_vm1, %v371_v62, %v372_v50  ;;  %v383_v21 = vrot.slane %v5875_v33, 2  ;;  %v381_v48 = vrot.slane %v5882_v44, 2  ;;  %v380_v35 = vrot.slane %v5884_v2, 2 }
  0x37   :  { %4474 = vrot.lane.b32.xlu1 %v4473_v55, %s5593_s0  ;;  %v387_v55 = vrot.slane %v5855_v57, 2  ;;  %v4478_v58 = vpack.i.bf16 %v6155_v49, %v373_v8  ;;  %v394_v51 = vrot.slane %v5886_v31, 2  ;;  %v392_v29 = vrot.slane %v5908_v32, 2 }
  0x38   :  { %v6180_v62 = vsel %vm343_vm1, %v383_v21, %v385_v22  ;;  %v6183_v38 = vsel %vm343_vm1, %v381_v48, %v383_v21  ;;  %v1583_v21 = vrot.slane %v5898_v18, 2  ;;  %v390_v8 = vrot.slane %v5934_v25, 2 }
  0x39   :  { %4469 = vrot.lane.b32.xlu0 %v4468_v61, %s5593_s0  ;;  %v6171_v63 = vsel %vm343_vm1, %v385_v22, %v387_v55  ;;  %v6177_v50 = vsel %vm343_vm1, %v387_v55, %v1581_v54  ;;  %10765 = vst [vmem:[#allocation98_spill] sm:$0xff] %v6180_v62  ;;  %10766 = vst [vmem:[#allocation99_spill] sm:$0xff] %v6183_v38  ;;  %v396_v61 = vrot.slane %v5896_v41, 2  ;;  %vm2344_vm10 = vcmask 130048  }
  0x3a   :  { %10763 = vst [vmem:[#allocation96_spill] sm:$0xff] %v6171_v63  ;;  %10764 = vst [vmem:[#allocation97_spill] sm:$0xff] %v6177_v50  ;;  %v4493_v49 = vpack.i.bf16 %v6171_v63, %v6180_v62  ;;  %v382_v55 = vsel %vm343_vm1, %v380_v35, %v381_v48  ;;  %v389_v63 = vrot.slane %v5936_v27, 2  ;;  %v403_v50 = vrot.slane %v5938_v1, 2 }
  0x3b   :  { %4484 = vrot.lane.b32.xlu1 %v4483_v45, %s5593_s0  ;;  %v4488_v54 = vpack.i.bf16 %v6183_v38, %v382_v55  ;;  %v6195_v22 = vsel %vm343_vm1, %v394_v51, %v396_v61  ;;  %v405_v45 = vrot.slane %v5947_v26, 2  ;;  %v6206_v35 = vsel %vm343_vm1, %v396_v61, %v1583_v21 }
  0x3c   :  { %10767 = vst [vmem:[#allocation100_spill] sm:$0xff] %v6195_v22  ;;  %10768 = vst [vmem:[#allocation101_spill] sm:$0xff] %v6206_v35  ;;  %v6209_v48 = vsel %vm343_vm1, %v392_v29, %v394_v51  ;;  %v1585_v55 = vrot.slane %v5949_v36, 2  ;;  %v6218_v30 = vsel %vm343_vm1, %v390_v8, %v392_v29  ;;  %v410_v61 = vrot.slane %v6006_v20, 2 }
  0x3d   :  { %4479 = vrot.lane.b32.xlu0 %v4478_v58, %s5593_s0  ;;  %10769 = vst [vmem:[#allocation102_spill] sm:$0xff] %v6209_v48  ;;  %v401_v58 = vrot.slane %v5970_v59, 2  ;;  %v4503_v62 = vpack.i.bf16 %v6195_v22, %v6209_v48  ;;  %10770 = vst [vmem:[#allocation103_spill] sm:$0xff] %v6218_v30  ;;  %v6225_v21 = vsel %vm343_vm1, %v403_v50, %v405_v45  ;;  %vm2377_vm11 = vcmask 162816  }
  0x3e   :  { %10771 = vst [vmem:[#allocation104_spill] sm:$0xff] %v6225_v21  ;;  %v6228_v59 = vsel %vm343_vm1, %v405_v45, %v1585_v55  ;;  %v412_v45 = vrot.slane %v6000_v53, 2  ;;  %v414_v55 = vrot.slane %v6002_v16, 2  ;;  %vm2410_vm12 = vcmask 195584  }
  0x3f   :  { %4494 = vrot.lane.b32.xlu1 %v4493_v49, %s5593_s0  ;;  %v391_v49 = vsel %vm343_vm1, %v389_v63, %v390_v8  ;;  %10772 = vst [vmem:[#allocation105_spill] sm:$0xff] %v6228_v59  ;;  %v6234_v29 = vsel %vm343_vm1, %v401_v58, %v403_v50  ;;  %v399_v63 = vrot.slane %v5972_v60, 2  ;;  %v398_v8 = vrot.slane %v5997_v0, 2 }
  0x40   :  { %v4498_v51 = vpack.i.bf16 %v6218_v30, %v391_v49  ;;  %10773 = vst [vmem:[#allocation106_spill] sm:$0xff] %v6234_v29  ;;  %v4513_v49 = vpack.i.bf16 %v6225_v21, %v6234_v29  ;;  %v408_v59 = vrot.slane %v6015_v28, 2  ;;  %v6254_v30 = vsel %vm343_vm1, %v412_v45, %v414_v55 }
  0x41   :  { %4489 = vrot.lane.b32.xlu0 %v4488_v54, %s5593_s0  ;;  %v1587_v54 = vrot.slane %v6004_v17, 2  ;;  %v6245_v38 = vsel %vm343_vm1, %v399_v63, %v401_v58  ;;  %v400_v50 = vsel %vm343_vm1, %v398_v8, %v399_v63  ;;  %10775 = vst [vmem:[#allocation108_spill] sm:$0xff] %v6254_v30  ;;  %v6263_v63 = vsel %vm343_vm1, %v410_v61, %v412_v45  ;;  %v10779_v58 = vld [vmem:[#allocation15_spill] sm:$0xff] }
  0x42   :  { %10774 = vst [vmem:[#allocation107_spill] sm:$0xff] %v6245_v38  ;;  %v4508_v21 = vpack.i.bf16 %v6245_v38, %v400_v50  ;;  %10777 = vst [vmem:[#allocation110_spill] sm:$0xff] %v6263_v63  ;;  %v6266_v8 = vsel %vm343_vm1, %v408_v59, %v410_v61  ;;  %v4523_v50 = vpack.i.bf16 %v6254_v30, %v6263_v63  ;;  %v516_v61 = vrot.slane %v5685_v9, 3  ;;  %v10780_v38 = vld [vmem:[#allocation7_spill] sm:$0xff] }
  0x43   :  { %4504 = vrot.lane.b32.xlu1 %v4503_v62, %s5593_s0  ;;  %v6257_v48 = vsel %vm343_vm1, %v414_v55, %v1587_v54  ;;  %10778 = vst [vmem:[#allocation111_spill] sm:$0xff] %v6266_v8  ;;  %v407_v62 = vrot.slane %v6032_v40, 2  ;;  %v520_v54 = vrot.slane %v5737_v37, 3  ;;  %v514_v29 = vrot.slane %v10780_v38, 3 }
  0x44   :  { %10776 = vst [vmem:[#allocation109_spill] sm:$0xff] %v6257_v48  ;;  %v1685_v48 = vrot.slane %v10779_v58, 3  ;;  %v513_v30 = vrot.slane %v5689_v11, 3  ;;  %v527_v55 = vrot.slane %v5676_v5, 3  ;;  %vm2443_vm13 = vcmask 228352  }
  0x45   :  { %4499 = vrot.lane.b32.xlu0 %v4498_v51, %s5593_s0  ;;  %v518_v51 = vrot.slane %v5687_v10, 3  ;;  %v409_v45 = vsel %vm343_vm1, %v407_v62, %v408_v59  ;;  %v6294_v62 = vsel %vm512_vm2, %v514_v29, %v516_v61  ;;  %vm2476_vm14 = vcmask 261120  }
  0x46   :  { %v6288_v63 = vsel %vm512_vm2, %v520_v54, %v1685_v48  ;;  %10784 = vst [vmem:[#allocation113_spill] sm:$0xff] %v6294_v62  ;;  %v534_v48 = vrot.slane %v5765_v52, 3  ;;  %vm2509_vm15 = vcmask 293888   ;;  %vm2542_vm0 = vcmask 326656  }
  0x47   :  { %4514 = vrot.lane.b32.xlu1 %v4513_v49, %s5593_s0  ;;  %v4518_v49 = vpack.i.bf16 %v6266_v8, %v409_v45  ;;  %v6282_v22 = vsel %vm512_vm2, %v518_v51, %v520_v54  ;;  %10782 = vst [vmem:[#allocation7_spill] sm:$0xff] %v6288_v63  ;;  %v6291_v59 = vsel %vm512_vm2, %v516_v61, %v518_v51  ;;  %v529_v45 = vrot.slane %v5709_v24, 3 }
  0x48   :  { %10781 = vst [vmem:[#allocation15_spill] sm:$0xff] %v6282_v22  ;;  %10783 = vst [vmem:[#allocation112_spill] sm:$0xff] %v6291_v59  ;;  %v4533_v35 = vpack.i.bf16 %v6282_v22, %v6291_v59  ;;  %v1687_v61 = vrot.slane %v5732_v34, 3  ;;  %v523_v24 = vrot.slane %v5672_v3, 3  ;;  %v522_v8 = vrot.slane %v5678_v6, 3 }
  0x49   :  { %4509 = vrot.lane.b32.xlu0 %v4508_v21, %s5593_s0  ;;  %v515_v21 = vsel %vm512_vm2, %v513_v30, %v514_v29  ;;  %v6307_v54 = vsel %vm512_vm2, %v527_v55, %v529_v45  ;;  %v536_v22 = vrot.slane %v5741_v39, 3  ;;  %v538_v63 = vrot.slane %v5747_v42, 3 }
  0x4a   :  { %v4528_v51 = vpack.i.bf16 %v6294_v62, %v515_v21  ;;  %10785 = vst [vmem:[#allocation114_spill] sm:$0xff] %v6307_v54  ;;  %v6317_v30 = vsel %vm512_vm2, %v529_v45, %v1687_v61  ;;  %v1689_v21 = vrot.slane %v5749_v43, 3  ;;  %v524_v45 = vsel %vm512_vm2, %v522_v8, %v523_v24 }
  0x4b   :  { %4524 = vrot.lane.b32.xlu1 %v4523_v50, %s5593_s0  ;;  %v525_v50 = vrot.slane %v5674_v4, 3  ;;  %10786 = vst [vmem:[#allocation115_spill] sm:$0xff] %v6317_v30  ;;  %v6337_v52 = vsel %vm512_vm2, %v536_v22, %v538_v63  ;;  %vm2575_vm1 = vcmask 359424  }
  0x4c   :  { %10789 = vst [vmem:[#allocation118_spill] sm:$0xff] %v6337_v52 }
  0x4d   :  { %4519 = vrot.lane.b32.xlu0 %v4518_v49, %s5593_s0  ;;  %v6320_v29 = vsel %vm512_vm2, %v525_v50, %v527_v55  ;;  %v6330_v49 = vsel %vm512_vm2, %v523_v24, %v525_v50  ;;  %v532_v50 = vrot.slane %v5776_v56, 3  ;;  %v531_v24 = vrot.slane %v5801_v7, 3 }
  0x4e   :  { %10787 = vst [vmem:[#allocation116_spill] sm:$0xff] %v6320_v29  ;;  %v4543_v59 = vpack.i.bf16 %v6307_v54, %v6320_v29  ;;  %10788 = vst [vmem:[#allocation117_spill] sm:$0xff] %v6330_v49  ;;  %v4538_v61 = vpack.i.bf16 %v6330_v49, %v524_v45  ;;  %v6345_v54 = vsel %vm512_vm2, %v534_v48, %v536_v22  ;;  %v545_v45 = vrot.slane %v5804_v12, 3 }
  0x4f   :  { %4534 = vrot.lane.b32.xlu1 %v4533_v35, %s5594_s29  ;;  %v6340_v35 = vsel %vm512_vm2, %v538_v63, %v1689_v21  ;;  %10791 = vst [vmem:[#allocation120_spill] sm:$0xff] %v6345_v54  ;;  %v4553_v8 = vpack.i.bf16 %v6337_v52, %v6345_v54  ;;  %v547_v63 = vrot.slane %v5806_v13, 3  ;;  %v1691_v21 = vrot.slane %v5808_v14, 3 }
  0x50   :  { %10790 = vst [vmem:[#allocation119_spill] sm:$0xff] %v6340_v35  ;;  %v6357_v22 = vsel %vm512_vm2, %v532_v50, %v534_v48  ;;  %v533_v62 = vsel %vm512_vm2, %v531_v24, %v532_v50  ;;  %v543_v55 = vrot.slane %v5810_v15, 3  ;;  %v540_v24 = vrot.slane %v5842_v46, 3 }
  0x51   :  { %4529 = vrot.lane.b32.xlu0 %v4528_v51, %s5594_s29  ;;  %10792 = vst [vmem:[#allocation121_spill] sm:$0xff] %v6357_v22  ;;  %v541_v51 = vrot.slane %v5819_v19, 3  ;;  %v4548_v35 = vpack.i.bf16 %v6357_v22, %v533_v62  ;;  %v6366_v49 = vsel %vm512_vm2, %v545_v45, %v547_v63  ;;  %v6369_v29 = vsel %vm512_vm2, %v547_v63, %v1691_v21 }
  0x52   :  { %10793 = vst [vmem:[#allocation122_spill] sm:$0xff] %v6366_v49  ;;  %10794 = vst [vmem:[#allocation123_spill] sm:$0xff] %v6369_v29  ;;  %v6374_v48 = vsel %vm512_vm2, %v543_v55, %v545_v45  ;;  %v554_v21 = vrot.slane %v5844_v47, 3  ;;  %v552_v52 = vrot.slane %v5875_v33, 3  ;;  %v563_v63 = vrot.slane %v5886_v31, 3 }
  0x53   :  { %4544 = vrot.lane.b32.xlu1 %v4543_v59, %s5594_s29  ;;  %10795 = vst [vmem:[#allocation124_spill] sm:$0xff] %v6374_v48  ;;  %v6377_v50 = vsel %vm512_vm2, %v541_v51, %v543_v55  ;;  %v4563_v62 = vpack.i.bf16 %v6366_v49, %v6374_v48  ;;  %v556_v59 = vrot.slane %v5855_v57, 3  ;;  %v542_v45 = vsel %vm512_vm2, %v540_v24, %v541_v51 }
  0x54   :  { %10796 = vst [vmem:[#allocation125_spill] sm:$0xff] %v6377_v50  ;;  %v1693_v55 = vrot.slane %v5871_v23, 3  ;;  %v549_v49 = vrot.slane %v5884_v2, 3  ;;  %v565_v24 = vrot.slane %v5896_v41, 3  ;;  %v4558_v22 = vpack.i.bf16 %v6377_v50, %v542_v45 }
  0x55   :  { %4539 = vrot.lane.b32.xlu0 %v4538_v61, %s5594_s29  ;;  %v550_v61 = vrot.slane %v5882_v44, 3  ;;  %v6393_v29 = vsel %vm512_vm2, %v554_v21, %v556_v59  ;;  %v561_v45 = vrot.slane %v5908_v32, 3  ;;  %v558_v54 = vrot.slane %v5936_v27, 3 }
  0x56   :  { %10797 = vst [vmem:[#allocation126_spill] sm:$0xff] %v6393_v29  ;;  %v6398_v48 = vsel %vm512_vm2, %v556_v59, %v1693_v55  ;;  %v559_v55 = vrot.slane %v5934_v25, 3  ;;  %v10804_v59 = vld [vmem:[#allocation63_spill] sm:$0xff] }
  0x57   :  { %4554 = vrot.lane.b32.xlu1 %v4553_v8, %s5594_s29  ;;  %10798 = vst [vmem:[#allocation127_spill] sm:$0xff] %v6398_v48  ;;  %v6401_v8 = vsel %vm512_vm2, %v552_v52, %v554_v21  ;;  %v6404_v51 = vsel %vm512_vm2, %v550_v61, %v552_v52  ;;  %v551_v52 = vsel %vm512_vm2, %v549_v49, %v550_v61  ;;  %v574_v48 = vrot.slane %v5947_v26, 3 }
  0x58   :  { %10799 = vst [vmem:[#allocation128_spill] sm:$0xff] %v6401_v8  ;;  %10800 = vst [vmem:[#allocation129_spill] sm:$0xff] %v6404_v51  ;;  %v4573_v30 = vpack.i.bf16 %v6393_v29, %v6401_v8  ;;  %v6418_v21 = vsel %vm512_vm2, %v563_v63, %v565_v24  ;;  %v572_v29 = vrot.slane %v5938_v1, 3  ;;  %v6430_v49 = vsel %vm512_vm2, %v561_v45, %v563_v63 }
  0x59   :  { %4549 = vrot.lane.b32.xlu0 %v4548_v35, %s5594_s29  ;;  %10801 = vst [vmem:[#allocation130_spill] sm:$0xff] %v6418_v21  ;;  %v1695_v35 = vrot.slane %v5898_v18, 3  ;;  %10803 = vst [vmem:[#allocation132_spill] sm:$0xff] %v6430_v49  ;;  %v1697_v61 = vrot.slane %v5949_v36, 3  ;;  %v570_v8 = vrot.slane %v10804_v59, 3  ;;  %v4568_v50 = vpack.i.bf16 %v6404_v51, %v551_v52 }
  0x5a   :  { %v6439_v26 = vsel %vm512_vm2, %v559_v55, %v561_v45  ;;  %v4583_v63 = vpack.i.bf16 %v6418_v21, %v6430_v49  ;;  %v583_v49 = vrot.slane %v6002_v16, 3  ;;  %v1699_v21 = vrot.slane %v6004_v17, 3 }
  0x5b   :  { %4564 = vrot.lane.b32.xlu1 %v4563_v62, %s5594_s29  ;;  %v6427_v62 = vsel %vm512_vm2, %v565_v24, %v1695_v35  ;;  %10805 = vst [vmem:[#allocation133_spill] sm:$0xff] %v6439_v26  ;;  %v560_v24 = vsel %vm512_vm2, %v558_v54, %v559_v55  ;;  %v6451_v52 = vsel %vm512_vm2, %v574_v48, %v1697_v61  ;;  %v568_v54 = vrot.slane %v5972_v60, 3 }
  0x5c   :  { %10802 = vst [vmem:[#allocation131_spill] sm:$0xff] %v6427_v62  ;;  %10807 = vst [vmem:[#allocation135_spill] sm:$0xff] %v6451_v52  ;;  %v6456_v1 = vsel %vm512_vm2, %v570_v8, %v572_v29  ;;  %v4578_v55 = vpack.i.bf16 %v6439_v26, %v560_v24  ;;  %v581_v35 = vrot.slane %v6000_v53, 3  ;;  %v579_v61 = vrot.slane %v6006_v20, 3 }
  0x5d   :  { %4559 = vrot.lane.b32.xlu0 %v4558_v22, %s5594_s29  ;;  %v6448_v22 = vsel %vm512_vm2, %v572_v29, %v574_v48  ;;  %10808 = vst [vmem:[#allocation136_spill] sm:$0xff] %v6456_v1  ;;  %v6466_v48 = vsel %vm512_vm2, %v568_v54, %v570_v8  ;;  %v577_v45 = vrot.slane %v6015_v28, 3  ;;  %v683_v8 = vrot.slane %v10780_v38, 4 }
  0x5e   :  { %10806 = vst [vmem:[#allocation134_spill] sm:$0xff] %v6448_v22  ;;  %10809 = vst [vmem:[#allocation137_spill] sm:$0xff] %v6466_v48  ;;  %v4593_v24 = vpack.i.bf16 %v6448_v22, %v6456_v1  ;;  %v6477_v26 = vsel %vm512_vm2, %v581_v35, %v583_v49  ;;  %v687_v1 = vrot.slane %v5687_v10, 4 }
  0x5f   :  { %4574 = vrot.lane.b32.xlu1 %v4573_v30, %s5594_s29  ;;  %v567_v30 = vrot.slane %v5997_v0, 3  ;;  %10810 = vst [vmem:[#allocation138_spill] sm:$0xff] %v6477_v26 }
  0x61   :  { %4569 = vrot.lane.b32.xlu0 %v4568_v50, %s5594_s29  ;;  %v569_v29 = vsel %vm512_vm2, %v567_v30, %v568_v54  ;;  %v6480_v50 = vsel %vm512_vm2, %v583_v49, %v1699_v21  ;;  %v6485_v54 = vsel %vm512_vm2, %v579_v61, %v581_v35  ;;  %v576_v30 = vrot.slane %v6032_v40, 3 }
  0x62   :  { %10811 = vst [vmem:[#allocation139_spill] sm:$0xff] %v6480_v50  ;;  %10812 = vst [vmem:[#allocation140_spill] sm:$0xff] %v6485_v54  ;;  %v4588_v22 = vpack.i.bf16 %v6466_v48, %v569_v29  ;;  %v689_v21 = vrot.slane %v5737_v37, 4  ;;  %v1797_v35 = vrot.slane %v10779_v58, 4  ;;  %v4603_v29 = vpack.i.bf16 %v6477_v26, %v6485_v54 }
  0x63   :  { %4584 = vrot.lane.b32.xlu1 %v4583_v63, %s5594_s29  ;;  %v6488_v63 = vsel %vm512_vm2, %v577_v45, %v579_v61  ;;  %v578_v49 = vsel %vm512_vm2, %v576_v30, %v577_v45  ;;  %v685_v61 = vrot.slane %v5685_v9, 4  ;;  %v682_v50 = vrot.slane %v5689_v11, 4 }
  0x64   :  { %10813 = vst [vmem:[#allocation141_spill] sm:$0xff] %v6488_v63  ;;  %v6505_v52 = vsel %vm681_vm3, %v687_v1, %v689_v21  ;;  %v6510_v45 = vsel %vm681_vm3, %v689_v21, %v1797_v35  ;;  %v4598_v54 = vpack.i.bf16 %v6488_v63, %v578_v49  ;;  %v694_v49 = vrot.slane %v5674_v4, 4 }
  0x65   :  { %4579 = vrot.lane.b32.xlu0 %v4578_v55, %s5594_s29  ;;  %10814 = vst [vmem:[#allocation142_spill] sm:$0xff] %v6505_v52  ;;  %v696_v55 = vrot.slane %v5676_v5, 4  ;;  %10815 = vst [vmem:[#allocation143_spill] sm:$0xff] %v6510_v45  ;;  %v6513_v30 = vsel %vm681_vm3, %v685_v61, %v687_v1  ;;  %v6516_v48 = vsel %vm681_vm3, %v683_v8, %v685_v61  ;;  %v1799_v61 = vrot.slane %v5732_v34, 4 }
  0x66   :  { %10816 = vst [vmem:[#allocation144_spill] sm:$0xff] %v6513_v30  ;;  %10817 = vst [vmem:[#allocation145_spill] sm:$0xff] %v6516_v48  ;;  %v4613_v51 = vpack.i.bf16 %v6505_v52, %v6513_v30  ;;  %v684_v1 = vsel %vm681_vm3, %v682_v50, %v683_v8  ;;  %v692_v26 = vrot.slane %v5672_v3, 4  ;;  %v691_v63 = vrot.slane %v5678_v6, 4  ;;  %v10822_v30 = vld [vmem:[#allocation21_spill] sm:$0xff] }
  0x67   :  { %4594 = vrot.lane.b32.xlu1 %v4593_v24, %s5594_s29  ;;  %v10818_v24 = vld [vmem:[#allocation11_spill] sm:$0xff]  ;;  %v705_v52 = vrot.slane %v5741_v39, 4  ;;  %v707_v21 = vrot.slane %v5747_v42, 4  ;;  %v6542_v50 = vsel %vm681_vm3, %v694_v49, %v696_v55  ;;  %v1801_v8 = vrot.slane %v5749_v43, 4 }
  0x68   :  { %v698_v62 = vrot.slane %v10818_v24, 4  ;;  %10821 = vst [vmem:[#allocation147_spill] sm:$0xff] %v6542_v50  ;;  %v703_v45 = vrot.slane %v10822_v30, 4  ;;  %v6550_v6 = vsel %vm681_vm3, %v692_v26, %v694_v49  ;;  %v693_v42 = vsel %vm681_vm3, %v691_v63, %v692_v26 }
  0x69   :  { %4589 = vrot.lane.b32.xlu0 %v4588_v22, %s5594_s29  ;;  %10823 = vst [vmem:[#allocation148_spill] sm:$0xff] %v6550_v6  ;;  %v701_v63 = vrot.slane %v5776_v56, 4  ;;  %v700_v49 = vrot.slane %v5801_v7, 4  ;;  %v714_v3 = vrot.slane %v5804_v12, 4  ;;  %vm2608_vm2 = vcmask 392192  }
  0x6a   :  { %v6529_v35 = vsel %vm681_vm3, %v696_v55, %v698_v62  ;;  %v6539_v22 = vsel %vm681_vm3, %v698_v62, %v1799_v61  ;;  %v6559_v61 = vsel %vm681_vm3, %v705_v52, %v707_v21  ;;  %v4618_v55 = vpack.i.bf16 %v6550_v6, %v693_v42 }
  0x6b   :  { %10819 = vst [vmem:[#allocation11_spill] sm:$0xff] %v6529_v35  ;;  %4604 = vrot.lane.b32.xlu1 %v4603_v29, %s5594_s29  ;;  %10820 = vst [vmem:[#allocation146_spill] sm:$0xff] %v6539_v22  ;;  %v4608_v29 = vpack.i.bf16 %v6516_v48, %v684_v1  ;;  %v4623_v62 = vpack.i.bf16 %v6529_v35, %v6542_v50  ;;  %v6562_v1 = vsel %vm681_vm3, %v707_v21, %v1801_v8 }
  0x6c   :  { %10824 = vst [vmem:[#allocation149_spill] sm:$0xff] %v6559_v61  ;;  %10825 = vst [vmem:[#allocation150_spill] sm:$0xff] %v6562_v1  ;;  %v716_v21 = vrot.slane %v5806_v13, 4  ;;  %v1803_v8 = vrot.slane %v5808_v14, 4  ;;  %v6579_v26 = vsel %vm681_vm3, %v701_v63, %v703_v45  ;;  %v710_v1 = vrot.slane %v5819_v19, 4 }
  0x6d   :  { %4599 = vrot.lane.b32.xlu0 %v4598_v54, %s5594_s29  ;;  %v6568_v54 = vsel %vm681_vm3, %v703_v45, %v705_v52  ;;  %10827 = vst [vmem:[#allocation152_spill] sm:$0xff] %v6579_v26  ;;  %v712_v52 = vrot.slane %v5810_v15, 4  ;;  %v702_v6 = vsel %vm681_vm3, %v700_v49, %v701_v63  ;;  %v709_v42 = vrot.slane %v5842_v46, 4 }
  0x6e   :  { %10826 = vst [vmem:[#allocation151_spill] sm:$0xff] %v6568_v54  ;;  %v6588_v50 = vsel %vm681_vm3, %v714_v3, %v716_v21  ;;  %v6591_v35 = vsel %vm681_vm3, %v716_v21, %v1803_v8  ;;  %v723_v49 = vrot.slane %v5844_v47, 4  ;;  %v725_v21 = vrot.slane %v5855_v57, 4 }
  0x6f   :  { %4614 = vrot.lane.b32.xlu1 %v4613_v51, %s5595_s23  ;;  %v4633_v51 = vpack.i.bf16 %v6559_v61, %v6568_v54  ;;  %10828 = vst [vmem:[#allocation153_spill] sm:$0xff] %v6588_v50  ;;  %10829 = vst [vmem:[#allocation154_spill] sm:$0xff] %v6591_v35  ;;  %v6597_v61 = vsel %vm681_vm3, %v712_v52, %v714_v3  ;;  %v721_v8 = vrot.slane %v5875_v33, 4  ;;  %v719_v45 = vrot.slane %v5882_v44, 4 }
  0x70   :  { %10830 = vst [vmem:[#allocation155_spill] sm:$0xff] %v6597_v61  ;;  %v4628_v3 = vpack.i.bf16 %v6579_v26, %v702_v6  ;;  %v711_v35 = vsel %vm681_vm3, %v709_v42, %v710_v1  ;;  %v6616_v63 = vsel %vm681_vm3, %v723_v49, %v725_v21  ;;  %v718_v6 = vrot.slane %v5884_v2, 4 }
  0x71   :  { %4609 = vrot.lane.b32.xlu0 %v4608_v29, %s5595_s23  ;;  %v6600_v29 = vsel %vm681_vm3, %v710_v1, %v712_v52  ;;  %v4643_v52 = vpack.i.bf16 %v6588_v50, %v6597_v61  ;;  %10832 = vst [vmem:[#allocation157_spill] sm:$0xff] %v6616_v63  ;;  %v6623_v22 = vsel %vm681_vm3, %v721_v8, %v723_v49  ;;  %v732_v42 = vrot.slane %v5886_v31, 4 }
  0x72   :  { %10831 = vst [vmem:[#allocation156_spill] sm:$0xff] %v6600_v29  ;;  %10834 = vst [vmem:[#allocation159_spill] sm:$0xff] %v6623_v22  ;;  %v1807_v49 = vrot.slane %v5898_v18, 4  ;;  %v728_v50 = vrot.slane %v5934_v25, 4  ;;  %v727_v61 = vrot.slane %v5936_v27, 4  ;;  %v4653_v1 = vpack.i.bf16 %v6616_v63, %v6623_v22  ;;  %v10843_v22 = vld [vmem:[#allocation56_spill] sm:$0xff] }
  0x73   :  { %4624 = vrot.lane.b32.xlu1 %v4623_v62, %s5595_s23  ;;  %v1805_v62 = vrot.slane %v5871_v23, 4 }
  0x75   :  { %4619 = vrot.lane.b32.xlu0 %v4618_v55, %s5595_s23  ;;  %v6620_v54 = vsel %vm681_vm3, %v725_v21, %v1805_v62  ;;  %v6626_v55 = vsel %vm681_vm3, %v719_v45, %v721_v8  ;;  %v734_v21 = vrot.slane %v5896_v41, 4  ;;  %v730_v62 = vrot.slane %v5908_v32, 4 }
  0x76   :  { %10833 = vst [vmem:[#allocation158_spill] sm:$0xff] %v6620_v54  ;;  %10835 = vst [vmem:[#allocation160_spill] sm:$0xff] %v6626_v55  ;;  %v4638_v8 = vpack.i.bf16 %v6600_v29, %v711_v35  ;;  %v720_v54 = vsel %vm681_vm3, %v718_v6, %v719_v45  ;;  %v737_v6 = vrot.slane %v5972_v60, 4 }
  0x77   :  { %4634 = vrot.lane.b32.xlu1 %v4633_v51, %s5595_s23  ;;  %v6650_v26 = vsel %vm681_vm3, %v734_v21, %v1807_v49  ;;  %v6656_v35 = vsel %vm681_vm3, %v730_v62, %v732_v42  ;;  %v4648_v45 = vpack.i.bf16 %v6626_v55, %v720_v54  ;;  %v729_v49 = vsel %vm681_vm3, %v727_v61, %v728_v50 }
  0x78   :  { %10838 = vst [vmem:[#allocation163_spill] sm:$0xff] %v6650_v26  ;;  %10840 = vst [vmem:[#allocation165_spill] sm:$0xff] %v6656_v35  ;;  %v739_v54 = vrot.slane %v10804_v59, 4  ;;  %v750_v55 = vrot.slane %v6000_v53, 4 }
  0x79   :  { %4629 = vrot.lane.b32.xlu0 %v4628_v3, %s5595_s23  ;;  %v6653_v3 = vsel %vm681_vm3, %v732_v42, %v734_v21  ;;  %v741_v42 = vrot.slane %v10843_v22, 4 }
  0x7a   :  { %10839 = vst [vmem:[#allocation164_spill] sm:$0xff] %v6653_v3  ;;  %v4663_v29 = vpack.i.bf16 %v6653_v3, %v6656_v35 }
  0x7b   :  { %v6634_v51 = vpop.permute.xlu1 %4379  ;;  %4644 = vrot.lane.b32.xlu1 %v4643_v52, %s5595_s23  ;;  %v6661_v52 = vsel %vm681_vm3, %v728_v50, %v730_v62  ;;  %v10844_v62 = vld [vmem:[#allocation59_spill] sm:$0xff]  ;;  %v736_v50 = vrot.slane %v5997_v0, 4  ;;  %v6691_v3 = vsel %vm681_vm3, %v739_v54, %v741_v42 }
  0x7c   :  { %10836 = vst [vmem:[#allocation161_spill] sm:$0xff] %v6634_v51  ;;  %10841 = vst [vmem:[#allocation166_spill] sm:$0xff] %v6661_v52  ;;  %v743_v26 = vrot.slane %v10844_v62, 4  ;;  %v4658_v61 = vpack.i.bf16 %v6661_v52, %v729_v49 }
  0x7d   :  { %v6647_v51 = vpop.permute.xlu0 %4369  ;;  %4639 = vrot.lane.b32.xlu0 %v4638_v8, %s5595_s23  ;;  %v1809_v8 = vrot.slane %v5949_v36, 4  ;;  %10848 = vst [vmem:[#allocation171_spill] sm:$0xff] %v6691_v3 }
  0x7e   :  { %10837 = vst [vmem:[#allocation162_spill] sm:$0xff] %v6647_v51 }
  0x7f   :  { %v6668_v21 = vpop.permute.xlu1 %4384  ;;  %4654 = vrot.lane.b32.xlu1 %v4653_v1, %s5595_s23  ;;  %v6685_v1 = vsel %vm681_vm3, %v741_v42, %v743_v26  ;;  %v6688_v35 = vsel %vm681_vm3, %v743_v26, %v1809_v8  ;;  %v738_v26 = vsel %vm681_vm3, %v736_v50, %v737_v6  ;;  %v752_v42 = vrot.slane %v6002_v16, 4 }
  0x80   :  { %10842 = vst [vmem:[#allocation167_spill] sm:$0xff] %v6668_v21  ;;  %10846 = vst [vmem:[#allocation169_spill] sm:$0xff] %v6685_v1  ;;  %v6694_v21 = vsel %vm681_vm3, %v737_v6, %v739_v54  ;;  %v1811_v54 = vrot.slane %v6004_v17, 4  ;;  %v746_v6 = vrot.slane %v6015_v28, 4  ;;  %v745_v50 = vrot.slane %v6032_v40, 4 }
  0x81   :  { %v6676_v63 = vpop.permute.xlu0 %4374  ;;  %4649 = vrot.lane.b32.xlu0 %v4648_v45, %s5595_s23  ;;  %10847 = vst [vmem:[#allocation170_spill] sm:$0xff] %v6688_v35  ;;  %10849 = vst [vmem:[#allocation172_spill] sm:$0xff] %v6694_v21  ;;  %v4673_v45 = vpack.i.bf16 %v6685_v1, %v6691_v3  ;;  %v6714_v1 = vsel %vm681_vm3, %v750_v55, %v752_v42 }
  0x82   :  { %10845 = vst [vmem:[#allocation168_spill] sm:$0xff] %v6676_v63  ;;  %v4668_v63 = vpack.i.bf16 %v6694_v21, %v738_v26  ;;  %10851 = vst [vmem:[#allocation174_spill] sm:$0xff] %v6714_v1  ;;  %v6717_v52 = vsel %vm681_vm3, %v752_v42, %v1811_v54  ;;  %v747_v3 = vsel %vm681_vm3, %v745_v50, %v746_v6  ;;  %v1909_v50 = vrot.slane %v10779_v58, 5 }
  0x83   :  { %4664 = vrot.lane.b32.xlu1 %v4663_v29, %s5595_s23  ;;  %v748_v29 = vrot.slane %v6006_v20, 4  ;;  %10852 = vst [vmem:[#allocation175_spill] sm:$0xff] %v6717_v52  ;;  %v854_v26 = vrot.slane %v5685_v9, 5 }
  0x85   :  { %v6704_v8 = vpop.permute.xlu1 %4394  ;;  %4659 = vrot.lane.b32.xlu0 %v4658_v61, %s5595_s23  ;;  %v6725_v21 = vsel %vm681_vm3, %v748_v29, %v750_v55  ;;  %v6728_v61 = vsel %vm681_vm3, %v746_v6, %v748_v29  ;;  %v856_v29 = vrot.slane %v5687_v10, 5  ;;  %v858_v6 = vrot.slane %v5737_v37, 5 }
  0x86   :  { %v6711_v49 = vpop.permute.xlu0 %4389  ;;  %10853 = vst [vmem:[#allocation176_spill] sm:$0xff] %v6725_v21  ;;  %10854 = vst [vmem:[#allocation177_spill] sm:$0xff] %v6728_v61  ;;  %v4683_v42 = vpack.i.bf16 %v6714_v1, %v6725_v21  ;;  %v4397_v51 = vunpack.i.h.bf16 %v6704_v8  ;;  %vm2641_vm3 = vcmask 424960  }
  0x87   :  { %10850 = vst [vmem:[#allocation173_spill] sm:$0xff] %v6711_v49  ;;  %4674 = vrot.lane.b32.xlu1 %v4673_v45, %s5595_s23  ;;  %v4678_v45 = vpack.i.bf16 %v6728_v61, %v747_v3  ;;  %v6747_v1 = vsel %vm850_vm4, %v856_v29, %v858_v6  ;;  %v6753_v3 = vsel %vm850_vm4, %v854_v26, %v856_v29  ;;  %v865_v29 = vrot.slane %v5676_v5, 5  ;;  %v10861_v5 = vld [vmem:[#allocation6_spill] sm:$0xff] }
  0x88   :  { %10855 = vst [vmem:[#allocation178_spill] sm:$0xff] %v6747_v1  ;;  %10857 = vst [vmem:[#allocation180_spill] sm:$0xff] %v6753_v3  ;;  %v4693_v61 = vpack.i.bf16 %v6747_v1, %v6753_v3  ;;  %v867_v49 = vrot.slane %v10818_v24, 5 }
  0x89   :  { %v6731_v35 = vpop.permute.xlu1 %4404  ;;  %4669 = vrot.lane.b32.xlu0 %v4668_v63, %s5595_s23  ;;  %v6750_v63 = vsel %vm850_vm4, %v858_v6, %v1909_v50  ;;  %v851_v6 = vrot.slane %v5689_v11, 5  ;;  %v860_v11 = vrot.slane %v10861_v5, 5 }
  0x8a   :  { %10856 = vst [vmem:[#allocation179_spill] sm:$0xff] %v6750_v63  ;;  %v1911_v63 = vrot.slane %v5732_v34, 5  ;;  %v6780_v48 = vsel %vm850_vm4, %v865_v29, %v867_v49 }
  0x8b   :  { %4684 = vrot.lane.b32.xlu1 %v4683_v42, %s5595_s23  ;;  %v852_v42 = vrot.slane %v10780_v38, 5  ;;  %10859 = vst [vmem:[#allocation182_spill] sm:$0xff] %v6780_v48 }
  0x8c   :  { %v6740_v55 = vpop.permute.xlu0 %4399 }
  0x8d   :  { %4679 = vrot.lane.b32.xlu0 %v4678_v45, %s5595_s23  ;;  %v6764_v52 = vsel %vm850_vm4, %v852_v42, %v854_v26  ;;  %v853_v54 = vsel %vm850_vm4, %v851_v6, %v852_v42  ;;  %v4396_v26 = vunpack.i.l.bf16 %v6704_v8  ;;  %v10860_v45 = vld [vmem:[#allocation3_spill] sm:$0xff]  ;;  %v6789_v8 = vsel %vm850_vm4, %v867_v49, %v1911_v63  ;;  %v10865_v6 = vld [vmem:[#allocation18_spill] sm:$0xff] }
  0x8e   :  { %v6761_v21 = vpop.permute.xlu1 %4414  ;;  %10858 = vst [vmem:[#allocation181_spill] sm:$0xff] %v6764_v52  ;;  %v4688_v1 = vpack.i.bf16 %v6764_v52, %v853_v54  ;;  %v861_v3 = vrot.slane %v10860_v45, 5  ;;  %10862 = vst [vmem:[#allocation183_spill] sm:$0xff] %v6789_v8  ;;  %v874_v54 = vrot.slane %v5741_v39, 5  ;;  %v876_v8 = vrot.slane %v10865_v6, 5 }
  0x8f   :  { %4694 = vrot.lane.b32.xlu1 %v4693_v61, %s5596_s24  ;;  %v863_v61 = vrot.slane %v5674_v4, 5  ;;  %v872_v63 = vrot.slane %v10822_v30, 5  ;;  %v885_v6 = vrot.slane %v5806_v13, 5 }
  0x90   :  { %v6767_v50 = vpop.permute.xlu0 %4409  ;;  %v862_v5 = vsel %vm850_vm4, %v860_v11, %v861_v3  ;;  %v4407_v11 = vunpack.i.h.bf16 %v6731_v35 }
  0x91   :  { %4689 = vrot.lane.b32.xlu0 %v4688_v1, %s5596_s24  ;;  %v6795_v52 = vsel %vm850_vm4, %v863_v61, %v865_v29  ;;  %v6798_v45 = vsel %vm850_vm4, %v861_v3, %v863_v61  ;;  %v6805_v1 = vsel %vm2245_vm5, %v5741_v39, %v4397_v51  ;;  %v6814_v61 = vsel %vm2245_vm5, %v10822_v30, %v4396_v26 }
  0x92   :  { %v6785_v42 = vpop.permute.xlu1 %4424  ;;  %10863 = vst [vmem:[#allocation184_spill] sm:$0xff] %v6795_v52  ;;  %10864 = vst [vmem:[#allocation185_spill] sm:$0xff] %v6798_v45  ;;  %v4703_v49 = vpack.i.bf16 %v6780_v48, %v6795_v52  ;;  %v4698_v29 = vpack.i.bf16 %v6798_v45, %v862_v5  ;;  %v4406_v3 = vunpack.i.l.bf16 %v6731_v35  ;;  %v1913_v51 = vrot.slane %v5749_v43, 5 }
  0x93   :  { %v870_v5 = vrot.slane %v5776_v56, 5  ;;  %v869_v45 = vrot.slane %v5801_v7, 5  ;;  %v4402_v26 = vunpack.i.h.bf16 %v6740_v55  ;;  %v4401_v52 = vunpack.i.l.bf16 %v6740_v55 }
  0x94   :  { %4704 = vrot.lane.b32.xlu1 %v4703_v49, %s5596_s24  ;;  %v6828_v35 = vsel %vm850_vm4, %v874_v54, %v876_v8  ;;  %v883_v49 = vrot.slane %v5804_v12, 5  ;;  %v6837_v30 = vsel %vm850_vm4, %v872_v63, %v874_v54  ;;  %v6854_v54 = vsel %vm2245_vm5, %v5804_v12, %v4407_v11 }
  0x95   :  { %v6801_v4 = vpop.permute.xlu0 %4419  ;;  %4699 = vrot.lane.b32.xlu0 %v4698_v29, %s5596_s24  ;;  %10866 = vst [vmem:[#allocation186_spill] sm:$0xff] %v6828_v35  ;;  %v6834_v29 = vsel %vm850_vm4, %v876_v8, %v1913_v51  ;;  %10868 = vst [vmem:[#allocation188_spill] sm:$0xff] %v6837_v30  ;;  %v6840_v56 = vsel %vm850_vm4, %v870_v5, %v872_v63  ;;  %v871_v7 = vsel %vm850_vm4, %v869_v45, %v870_v5 }
  0x96   :  { %10867 = vst [vmem:[#allocation187_spill] sm:$0xff] %v6834_v29  ;;  %10869 = vst [vmem:[#allocation189_spill] sm:$0xff] %v6840_v56  ;;  %v4713_v43 = vpack.i.bf16 %v6828_v35, %v6837_v30  ;;  %v4708_v8 = vpack.i.bf16 %v6840_v56, %v871_v7  ;;  %v4417_v63 = vunpack.i.h.bf16 %v6761_v21  ;;  %v4416_v45 = vunpack.i.l.bf16 %v6761_v21 }
  0x97   :  { %v4412_v5 = vunpack.i.h.bf16 %v6767_v50  ;;  %v1915_v7 = vrot.slane %v5808_v14, 5  ;;  %v881_v55 = vrot.slane %v5810_v15, 5  ;;  %v879_v56 = vrot.slane %v5819_v19, 5 }
  0x98   :  { %v6830_v48 = vpop.permute.xlu1 %4434  ;;  %4714 = vrot.lane.b32.xlu1 %v4713_v43, %s5596_s24  ;;  %v6869_v30 = vsel %vm2245_vm5, %v5810_v15, %v4406_v3  ;;  %v6873_v21 = vsel %vm2245_vm5, %v5819_v19, %v4402_v26  ;;  %v6877_v43 = vsel %vm2245_vm5, %v5842_v46, %v4401_v52  ;;  %v6881_v35 = vsel %vm850_vm4, %v883_v49, %v885_v6 }
  0x99   :  { %4709 = vrot.lane.b32.xlu0 %v4708_v8, %s5596_s24  ;;  %v4411_v8 = vunpack.i.l.bf16 %v6767_v50  ;;  %10870 = vst [vmem:[#allocation190_spill] sm:$0xff] %v6881_v35  ;;  %v6884_v29 = vsel %vm850_vm4, %v885_v6, %v1915_v7  ;;  %v6887_v14 = vsel %vm850_vm4, %v881_v55, %v883_v49  ;;  %v6890_v3 = vsel %vm850_vm4, %v879_v56, %v881_v55 }
  0x9a   :  { %10871 = vst [vmem:[#allocation191_spill] sm:$0xff] %v6884_v29  ;;  %10872 = vst [vmem:[#allocation192_spill] sm:$0xff] %v6887_v14  ;;  %v4723_v52 = vpack.i.bf16 %v6881_v35, %v6887_v14  ;;  %v878_v19 = vrot.slane %v5842_v46, 5  ;;  %v6903_v6 = vsel %vm2245_vm5, %v5844_v47, %v4417_v63  ;;  %v6907_v49 = vsel %vm2245_vm5, %v5875_v33, %v4416_v45 }
  0x9b   :  { %v6850_v51 = vpop.permute.xlu0 %4429  ;;  %10873 = vst [vmem:[#allocation193_spill] sm:$0xff] %v6890_v3  ;;  %v6911_v55 = vsel %vm2245_vm5, %v5882_v44, %v4412_v5  ;;  %v4427_v7 = vunpack.i.h.bf16 %v6785_v42  ;;  %v892_v14 = vrot.slane %v5844_v47, 5  ;;  %v894_v63 = vrot.slane %v5855_v57, 5 }
  0x9c   :  { %4724 = vrot.lane.b32.xlu1 %v4723_v52, %s5596_s24  ;;  %v880_v50 = vsel %vm850_vm4, %v878_v19, %v879_v56  ;;  %v1917_v35 = vrot.slane %v5871_v23, 5  ;;  %v6923_v45 = vsel %vm2245_vm5, %v5884_v2, %v4411_v8  ;;  %v4426_v5 = vunpack.i.l.bf16 %v6785_v42 }
  0x9d   :  { %v6865_v11 = vpop.permute.xlu1 %4444  ;;  %v4422_v29 = vunpack.i.h.bf16 %v6801_v4  ;;  %v4421_v52 = vunpack.i.l.bf16 %v6801_v4  ;;  %v6930_v56 = vsel %vm850_vm4, %v892_v14, %v894_v63  ;;  %v890_v23 = vrot.slane %v5875_v33, 5 }
  0x9e   :  { %10875 = vst [vmem:[#allocation195_spill] sm:$0xff] %v6930_v56  ;;  %v6933_v19 = vsel %vm850_vm4, %v894_v63, %v1917_v35  ;;  %v4437_v8 = vunpack.i.h.bf16 %v6830_v48  ;;  %v887_v4 = vrot.slane %v5884_v2, 5  ;;  %v6948_v35 = vsel %vm2245_vm5, %v5886_v31, %v4427_v7 }
  0x9f   :  { %v6899_v15 = vpop.permute.xlu0 %4439  ;;  %10876 = vst [vmem:[#allocation196_spill] sm:$0xff] %v6933_v19  ;;  %v4436_v63 = vunpack.i.l.bf16 %v6830_v48  ;;  %v6953_v33 = vsel %vm850_vm4, %v890_v23, %v892_v14  ;;  %v6964_v7 = vsel %vm2245_vm5, %v5908_v32, %v4426_v5  ;;  %v6968_v48 = vsel %vm2245_vm5, %v5934_v25, %v4422_v29 }
  0xa0   :  { %10879 = vst [vmem:[#allocation199_spill] sm:$0xff] %v6953_v33  ;;  %v4733_v42 = vpack.i.bf16 %v6930_v56, %v6953_v33  ;;  %v901_v29 = vrot.slane %v5886_v31, 5  ;;  %v903_v5 = vrot.slane %v5896_v41, 5  ;;  %v899_v14 = vrot.slane %v5908_v32, 5 }
  0xa1   :  { %v6914_v26 = vpop.permute.xlu1 %4454  ;;  %v4446_v32 = vunpack.i.l.bf16 %v6865_v11 }
  0xa2   :  { %10874 = vst [vmem:[#allocation194_spill] sm:$0xff] %v6914_v26  ;;  %v4718_v26 = vpack.i.bf16 %v6890_v3, %v880_v50  ;;  %v888_v50 = vrot.slane %v5882_v44, 5  ;;  %4734 = vrot.lane.b32.xlu1 %v4733_v42, %s5596_s24  ;;  %v7010_v56 = vsel %vm850_vm4, %v899_v14, %v901_v29 }
  0xa3   :  { %v6936_v57 = vpop.permute.xlu0 %4449  ;;  %10884 = vst [vmem:[#allocation204_spill] sm:$0xff] %v7010_v56 }
  0xa4   :  { %10877 = vst [vmem:[#allocation197_spill] sm:$0xff] %v6936_v57  ;;  %4719 = vrot.lane.b32.xlu0 %v4718_v26, %s5596_s24  ;;  %v4432_v57 = vunpack.i.h.bf16 %v6850_v51  ;;  %v4431_v26 = vunpack.i.l.bf16 %v6850_v51  ;;  %v6959_v19 = vsel %vm850_vm4, %v888_v50, %v890_v23  ;;  %v6977_v23 = vsel %vm2245_vm5, %v5936_v27, %v4421_v52 }
  0xa5   :  { %v6944_v3 = vpop.permute.xlu1 %4464  ;;  %10880 = vst [vmem:[#allocation200_spill] sm:$0xff] %v6959_v19  ;;  %v897_v52 = vrot.slane %v5934_v25, 5 }
  0xa6   :  { %10878 = vst [vmem:[#allocation198_spill] sm:$0xff] %v6944_v3  ;;  %v889_v3 = vsel %vm850_vm4, %v887_v4, %v888_v50  ;;  %v6981_v50 = vsel %vm2245_vm5, %v10843_v22, %v4437_v8  ;;  %v6993_v8 = vsel %vm2245_vm5, %v10804_v59, %v4436_v63  ;;  %v6997_v42 = vsel %vm2245_vm5, %v5972_v60, %v4432_v57 }
  0xa7   :  { %v4728_v51 = vpack.i.bf16 %v6959_v19, %v889_v3  ;;  %v6973_v2 = vpop.permute.xlu0 %4459  ;;  %v1919_v3 = vrot.slane %v5898_v18, 5  ;;  %v7001_v19 = vsel %vm2245_vm5, %v5997_v0, %v4431_v26  ;;  %v7013_v63 = vsel %vm850_vm4, %v897_v52, %v899_v14 }
  0xa8   :  { %10881 = vst [vmem:[#allocation201_spill] sm:$0xff] %v6973_v2  ;;  %v896_v2 = vrot.slane %v5936_v27, 5  ;;  %10885 = vst [vmem:[#allocation205_spill] sm:$0xff] %v7013_v63  ;;  %v4447_v14 = vunpack.i.h.bf16 %v6865_v11  ;;  %v910_v26 = vrot.slane %v10843_v22, 5  ;;  %v905_v11 = vrot.slane %v5997_v0, 5 }
  0xa9   :  { %v4475_v4 = vpop.permute.xlu1 %4474  ;;  %4729 = vrot.lane.b32.xlu0 %v4728_v51, %s5596_s24  ;;  %v7004_v51 = vsel %vm850_vm4, %v901_v29, %v903_v5  ;;  %v7007_v33 = vsel %vm850_vm4, %v903_v5, %v1919_v3  ;;  %v912_v5 = vrot.slane %v10844_v62, 5 }
  0xaa   :  { %10882 = vst [vmem:[#allocation202_spill] sm:$0xff] %v7004_v51  ;;  %10883 = vst [vmem:[#allocation203_spill] sm:$0xff] %v7007_v33  ;;  %v898_v27 = vsel %vm850_vm4, %v896_v2, %v897_v52  ;;  %v4743_v25 = vpack.i.bf16 %v7004_v51, %v7010_v56  ;;  %v4442_v2 = vunpack.i.h.bf16 %v6899_v15  ;;  %v4441_v52 = vunpack.i.l.bf16 %v6899_v15 }
  0xab   :  { %v7016_v57 = vpop.permute.xlu0 %4469  ;;  %v4738_v3 = vpack.i.bf16 %v7013_v63, %v898_v27  ;;  %v1921_v27 = vrot.slane %v5949_v36, 5  ;;  %v906_v63 = vrot.slane %v5972_v60, 5  ;;  %v4477_v56 = vunpack.i.h.bf16 %v4475_v4 }
  0xac   :  { %10886 = vst [vmem:[#allocation206_spill] sm:$0xff] %v7016_v57  ;;  %4744 = vrot.lane.b32.xlu1 %v4743_v25, %s5596_s24  ;;  %v908_v57 = vrot.slane %v10804_v59, 5  ;;  %v7040_v15 = vsel %vm850_vm4, %v910_v26, %v912_v5  ;;  %v4476_v33 = vunpack.i.l.bf16 %v4475_v4  ;;  %v7071_v59 = vsel %vm2245_vm5, %v6000_v53, %v4447_v14 }
  0xad   :  { %v7025_v29 = vpop.permute.xlu1 %4484  ;;  %4739 = vrot.lane.b32.xlu0 %v4738_v3, %s5596_s24  ;;  %10887 = vst [vmem:[#allocation207_spill] sm:$0xff] %v7040_v15  ;;  %v7043_v25 = vsel %vm850_vm4, %v912_v5, %v1921_v27  ;;  %v907_v62 = vsel %vm850_vm4, %v905_v11, %v906_v63  ;;  %v7063_v4 = vsel %vm2278_vm6, %v6805_v1, %v4477_v56  ;;  %v915_v56 = vrot.slane %v6015_v28, 5 }
  0xae   :  { %10888 = vst [vmem:[#allocation208_spill] sm:$0xff] %v7043_v25  ;;  %v7046_v3 = vsel %vm850_vm4, %v908_v57, %v910_v26  ;;  %v7055_v60 = vsel %vm850_vm4, %v906_v63, %v908_v57  ;;  %v7067_v27 = vsel %vm2278_vm6, %v6814_v61, %v4476_v33  ;;  %v7075_v63 = vsel %vm2245_vm5, %v6006_v20, %v4446_v32 }
  0xaf   :  { %v4480_v51 = vpop.permute.xlu0 %4479  ;;  %10889 = vst [vmem:[#allocation209_spill] sm:$0xff] %v7046_v3  ;;  %v4753_v0 = vpack.i.bf16 %v7040_v15, %v7046_v3  ;;  %10890 = vst [vmem:[#allocation210_spill] sm:$0xff] %v7055_v60  ;;  %v4748_v26 = vpack.i.bf16 %v7055_v60, %v907_v62  ;;  %v919_v62 = vrot.slane %v6000_v53, 5  ;;  %v921_v57 = vrot.slane %v6002_v16, 5 }
  0xb0   :  { %v1923_v33 = vrot.slane %v6004_v17, 5  ;;  %v917_v61 = vrot.slane %v6006_v20, 5  ;;  %v914_v14 = vrot.slane %v6032_v40, 5  ;;  %v7095_v11 = vsel %vm2245_vm5, %v6032_v40, %v4441_v52 }
  0xb1   :  { %v7048_v36 = vpop.permute.xlu1 %4494  ;;  %4754 = vrot.lane.b32.xlu1 %v4753_v0, %s5596_s24  ;;  %4749 = vrot.lane.b32.xlu0 %v4748_v26, %s5596_s24  ;;  %v7091_v0 = vsel %vm2245_vm5, %v6015_v28, %v4442_v2  ;;  %v7098_v26 = vsel %vm850_vm4, %v919_v62, %v921_v57  ;;  %v4487_v5 = vunpack.i.h.bf16 %v7025_v29  ;;  %v1025_v40 = vrot.slane %v5687_v10, 6 }
  0xb2   :  { %10891 = vst [vmem:[#allocation211_spill] sm:$0xff] %v7098_v26  ;;  %v7102_v60 = vsel %vm850_vm4, %v921_v57, %v1923_v33  ;;  %v7105_v3 = vsel %vm850_vm4, %v917_v61, %v919_v62  ;;  %v7108_v15 = vsel %vm850_vm4, %v915_v56, %v917_v61  ;;  %v916_v2 = vsel %vm850_vm4, %v914_v14, %v915_v56 }
  0xb3   :  { %v7080_v1 = vpop.permute.xlu0 %4489  ;;  %10892 = vst [vmem:[#allocation212_spill] sm:$0xff] %v7102_v60  ;;  %10893 = vst [vmem:[#allocation213_spill] sm:$0xff] %v7105_v3  ;;  %v4763_v25 = vpack.i.bf16 %v7098_v26, %v7105_v3  ;;  %v4758_v57 = vpack.i.bf16 %v7108_v15, %v916_v2  ;;  %v7122_v62 = vsel %vm2278_vm6, %v6854_v54, %v4487_v5  ;;  %v4486_v61 = vunpack.i.l.bf16 %v7025_v29 }
  0xb4   :  { %10894 = vst [vmem:[#allocation214_spill] sm:$0xff] %v7108_v15  ;;  %v4482_v56 = vunpack.i.h.bf16 %v4480_v51  ;;  %v4481_v14 = vunpack.i.l.bf16 %v4480_v51  ;;  %v1027_v2 = vrot.slane %v5737_v37, 6  ;;  %v2021_v52 = vrot.slane %v10779_v58, 6 }
  0xb5   :  { %v7087_v32 = vpop.permute.xlu1 %4504  ;;  %4764 = vrot.lane.b32.xlu1 %v4763_v25, %s5596_s24  ;;  %4759 = vrot.lane.b32.xlu0 %v4758_v57, %s5596_s24  ;;  %v7134_v54 = vsel %vm2278_vm6, %v6869_v30, %v4486_v61  ;;  %v1023_v25 = vrot.slane %v5685_v9, 6  ;;  %v1021_v15 = vrot.slane %v10780_v38, 6  ;;  %v10897_v30 = vld [vmem:[#allocation8_spill] sm:$0xff]  ;;  %vm2674_vm4 = vcmask 457728  }
  0xb6   :  { %v7138_v51 = vsel %vm2278_vm6, %v6877_v43, %v4481_v14  ;;  %v7142_v29 = vsel %vm2278_vm6, %v6873_v21, %v4482_v56  ;;  %v7146_v5 = vsel %vm1019_vm7, %v1025_v40, %v1027_v2  ;;  %v7149_v57 = vsel %vm1019_vm7, %v1027_v2, %v2021_v52 }
  0xb7   :  { %v7118_v33 = vpop.permute.xlu0 %4499  ;;  %10895 = vst [vmem:[#allocation215_spill] sm:$0xff] %v7146_v5  ;;  %10896 = vst [vmem:[#allocation216_spill] sm:$0xff] %v7149_v57  ;;  %v1020_v61 = vrot.slane %v10897_v30, 6  ;;  %v7158_v21 = vsel %vm1019_vm7, %v1023_v25, %v1025_v40  ;;  %v4497_v56 = vunpack.i.h.bf16 %v7048_v36  ;;  %v4496_v14 = vunpack.i.l.bf16 %v7048_v36 }
  0xb8   :  { %10898 = vst [vmem:[#allocation217_spill] sm:$0xff] %v7158_v21  ;;  %v4773_v52 = vpack.i.bf16 %v7146_v5, %v7158_v21  ;;  %v7167_v2 = vsel %vm1019_vm7, %v1021_v15, %v1023_v25  ;;  %v4492_v30 = vunpack.i.h.bf16 %v7080_v1  ;;  %v10904_v21 = vld [vmem:[#allocation6_spill] sm:$0xff] }
  0xb9   :  { %v7125_v28 = vpop.permute.xlu1 %4514  ;;  %10899 = vst [vmem:[#allocation218_spill] sm:$0xff] %v7167_v2  ;;  %v1022_v60 = vsel %vm1019_vm7, %v1020_v61, %v1021_v15  ;;  %v7176_v36 = vsel %vm2278_vm6, %v6903_v6, %v4497_v56  ;;  %v7180_v57 = vsel %vm2278_vm6, %v6907_v49, %v4496_v14  ;;  %v4491_v15 = vunpack.i.l.bf16 %v7080_v1  ;;  %v10901_v61 = vld [vmem:[#allocation5_spill] sm:$0xff]  ;;  %v10902_v49 = vld [vmem:[#allocation4_spill] sm:$0xff]  ;;  %v10903_v14 = vld [vmem:[#allocation3_spill] sm:$0xff] }
  0xba   :  { %v4768_v43 = vpack.i.bf16 %v7167_v2, %v1022_v60  ;;  %4774 = vrot.lane.b32.xlu1 %v4773_v52, %s5597_s25  ;;  %v7186_v25 = vsel %vm2278_vm6, %v6911_v55, %v4492_v30  ;;  %v1034_v40 = vrot.slane %v10901_v61, 6  ;;  %v1036_v60 = vrot.slane %v10818_v24, 6 }
  0xbb   :  { %v7153_v3 = vpop.permute.xlu0 %4509  ;;  %10900 = vst [vmem:[#allocation219_spill] sm:$0xff] %v7186_v25  ;;  %v2023_v6 = vrot.slane %v5732_v34, 6  ;;  %v1032_v56 = vrot.slane %v10902_v49, 6  ;;  %v1030_v52 = vrot.slane %v10903_v14, 6  ;;  %v1029_v1 = vrot.slane %v10904_v21, 6 }
  0xbc   :  { %4769 = vrot.lane.b32.xlu0 %v4768_v43, %s5597_s25  ;;  %v7201_v55 = vsel %vm2278_vm6, %v6923_v45, %v4491_v15  ;;  %v7204_v30 = vsel %vm1019_vm7, %v1034_v40, %v1036_v60  ;;  %v4507_v25 = vunpack.i.h.bf16 %v7087_v32  ;;  %v4506_v43 = vunpack.i.l.bf16 %v7087_v32  ;;  %v10912_v32 = vld [vmem:[#allocation18_spill] sm:$0xff] }
  0xbd   :  { %v7162_v26 = vpop.permute.xlu1 %4524  ;;  %10906 = vst [vmem:[#allocation4_spill] sm:$0xff] %v7204_v30  ;;  %v7209_v34 = vsel %vm1019_vm7, %v1036_v60, %v2023_v6  ;;  %v7212_v14 = vsel %vm1019_vm7, %v1032_v56, %v1034_v40  ;;  %v7215_v21 = vsel %vm1019_vm7, %v1030_v52, %v1032_v56 }
  0xbe   :  { %10907 = vst [vmem:[#allocation220_spill] sm:$0xff] %v7209_v34  ;;  %10908 = vst [vmem:[#allocation221_spill] sm:$0xff] %v7212_v14  ;;  %v4783_v15 = vpack.i.bf16 %v7204_v30, %v7212_v14  ;;  %v7229_v40 = vsel %vm2278_vm6, %v6948_v35, %v4507_v25  ;;  %v7233_v56 = vsel %vm2278_vm6, %v6964_v7, %v4506_v43  ;;  %v10913_v35 = vld [vmem:[#allocation19_spill] sm:$0xff]  ;;  %v10916_v43 = vld [vmem:[#allocation24_spill] sm:$0xff] }
  0xbf   :  { %v7190_v2 = vpop.permute.xlu0 %4519  ;;  %10909 = vst [vmem:[#allocation222_spill] sm:$0xff] %v7215_v21  ;;  %v2025_v25 = vrot.slane %v10913_v35, 6 }
  0xc0   :  { %4784 = vrot.lane.b32.xlu1 %v4783_v15, %s5597_s25  ;;  %v1039_v15 = vrot.slane %v10916_v43, 6 }
  0xc1   :  { %v7197_v5 = vpop.permute.xlu1 %4534 }
  0xc2   :  { %10905 = vst [vmem:[#allocation5_spill] sm:$0xff] %v7197_v5  ;;  %v1031_v5 = vsel %vm1019_vm7, %v1029_v1, %v1030_v52  ;;  %v4502_v52 = vunpack.i.h.bf16 %v7118_v33  ;;  %v4501_v1 = vunpack.i.l.bf16 %v7118_v33 }
  0xc3   :  { %v4778_v60 = vpack.i.bf16 %v7215_v21, %v1031_v5  ;;  %v7225_v6 = vpop.permute.xlu0 %4529  ;;  %v1043_v5 = vrot.slane %v5741_v39, 6  ;;  %v10914_v21 = vld [vmem:[#allocation21_spill] sm:$0xff] }
  0xc4   :  { %10910 = vst [vmem:[#allocation223_spill] sm:$0xff] %v7225_v6  ;;  %v1045_v6 = vrot.slane %v10912_v32, 6  ;;  %v1041_v14 = vrot.slane %v10914_v21, 6  ;;  %v7247_v7 = vsel %vm2278_vm6, %v6977_v23, %v4501_v1  ;;  %v7251_v33 = vsel %vm2278_vm6, %v6968_v48, %v4502_v52 }
  0xc5   :  { %v7237_v45 = vpop.permute.xlu1 %4544  ;;  %4779 = vrot.lane.b32.xlu0 %v4778_v60, %s5597_s25  ;;  %10915 = vst [vmem:[#allocation225_spill] sm:$0xff] %v7247_v7  ;;  %v4517_v23 = vunpack.i.h.bf16 %v7125_v28  ;;  %v4516_v48 = vunpack.i.l.bf16 %v7125_v28 }
  0xc6   :  { %10911 = vst [vmem:[#allocation224_spill] sm:$0xff] %v7237_v45  ;;  %v10917_v45 = vld [vmem:[#allocation27_spill] sm:$0xff]  ;;  %v7256_v30 = vsel %vm1019_vm7, %v1043_v5, %v1045_v6  ;;  %v7259_v34 = vsel %vm1019_vm7, %v1045_v6, %v2025_v25  ;;  %v7262_v35 = vsel %vm1019_vm7, %v1041_v14, %v1043_v5  ;;  %v7272_v7 = vsel %vm1019_vm7, %v1039_v15, %v1041_v14 }
  0xc7   :  { %v1038_v60 = vrot.slane %v10917_v45, 6  ;;  %10918 = vst [vmem:[#allocation226_spill] sm:$0xff] %v7256_v30  ;;  %10919 = vst [vmem:[#allocation227_spill] sm:$0xff] %v7259_v34  ;;  %v7265_v1 = vpop.permute.xlu0 %4539  ;;  %v4793_v52 = vpack.i.bf16 %v7256_v30, %v7262_v35  ;;  %v4512_v14 = vunpack.i.h.bf16 %v7153_v3  ;;  %v4511_v30 = vunpack.i.l.bf16 %v7153_v3  ;;  %v10924_v5 = vld [vmem:[#allocation31_spill] sm:$0xff] }
  0xc8   :  { %10920 = vst [vmem:[#allocation228_spill] sm:$0xff] %v7262_v35  ;;  %10921 = vst [vmem:[#allocation229_spill] sm:$0xff] %v7265_v1  ;;  %v7282_v1 = vsel %vm2278_vm6, %v6981_v50, %v4517_v23  ;;  %v10923_v50 = vld [vmem:[#allocation30_spill] sm:$0xff]  ;;  %v1050_v28 = vrot.slane %v10924_v5, 6 }
  0xc9   :  { %10922 = vst [vmem:[#allocation230_spill] sm:$0xff] %v7272_v7  ;;  %v1040_v43 = vsel %vm1019_vm7, %v1038_v60, %v1039_v15  ;;  %v7275_v6 = vpop.permute.xlu1 %4554  ;;  %4794 = vrot.lane.b32.xlu1 %v4793_v52, %s5597_s25  ;;  %v1052_v15 = vrot.slane %v5804_v12, 6  ;;  %v1054_v60 = vrot.slane %v5806_v13, 6  ;;  %v2027_v23 = vrot.slane %v10923_v50, 6 }
  0xca   :  { %v4788_v25 = vpack.i.bf16 %v7272_v7, %v1040_v43  ;;  %v7293_v43 = vsel %vm2278_vm6, %v6993_v8, %v4516_v48  ;;  %v10925_v7 = vld [vmem:[#allocation34_spill] sm:$0xff]  ;;  %v7302_v3 = vsel %vm2278_vm6, %v7001_v19, %v4511_v30  ;;  %v7306_v34 = vsel %vm2278_vm6, %v6997_v42, %v4512_v14 }
  0xcb   :  { %v1048_v52 = vrot.slane %v10925_v7, 6  ;;  %v7298_v35 = vpop.permute.xlu0 %4549  ;;  %10927 = vst [vmem:[#allocation232_spill] sm:$0xff] %v7302_v3  ;;  %v1047_v8 = vrot.slane %v5842_v46, 6  ;;  %v7315_v50 = vsel %vm1019_vm7, %v1054_v60, %v2027_v23  ;;  %v4527_v30 = vunpack.i.h.bf16 %v7162_v26 }
  0xcc   :  { %4789 = vrot.lane.b32.xlu0 %v4788_v25, %s5597_s25  ;;  %10926 = vst [vmem:[#allocation231_spill] sm:$0xff] %v7298_v35  ;;  %v7309_v25 = vsel %vm1019_vm7, %v1052_v15, %v1054_v60  ;;  %10929 = vst [vmem:[#allocation234_spill] sm:$0xff] %v7315_v50  ;;  %v7318_v35 = vsel %vm1019_vm7, %v1050_v28, %v1052_v15  ;;  %v4522_v7 = vunpack.i.h.bf16 %v7190_v2  ;;  %v4521_v42 = vunpack.i.l.bf16 %v7190_v2 }
  0xcd   :  { %10928 = vst [vmem:[#allocation233_spill] sm:$0xff] %v7309_v25  ;;  %v7312_v48 = vpop.permute.xlu1 %4564  ;;  %10930 = vst [vmem:[#allocation235_spill] sm:$0xff] %v7318_v35  ;;  %v7321_v19 = vsel %vm1019_vm7, %v1048_v52, %v1050_v28  ;;  %v4803_v14 = vpack.i.bf16 %v7309_v25, %v7318_v35  ;;  %v1049_v60 = vsel %vm1019_vm7, %v1047_v8, %v1048_v52  ;;  %v4526_v28 = vunpack.i.l.bf16 %v7162_v26  ;;  %v10932_v35 = vld [vmem:[#allocation41_spill] sm:$0xff]  ;;  %v10933_v8 = vld [vmem:[#allocation42_spill] sm:$0xff] }
  0xce   :  { %10931 = vst [vmem:[#allocation236_spill] sm:$0xff] %v7321_v19  ;;  %v4798_v23 = vpack.i.bf16 %v7321_v19, %v1049_v60  ;;  %v7334_v15 = vsel %vm2278_vm6, %v7071_v59, %v4527_v30  ;;  %v1061_v3 = vrot.slane %v5844_v47, 6  ;;  %v1063_v52 = vrot.slane %v10932_v35, 6  ;;  %v10934_v30 = vld [vmem:[#allocation43_spill] sm:$0xff]  ;;  %v10951_v35 = vld [vmem:[#allocation64_spill] sm:$0xff] }
  0xcf   :  { %v7338_v46 = vpop.permute.xlu0 %4559  ;;  %4804 = vrot.lane.b32.xlu1 %v4803_v14, %s5597_s25  ;;  %v2029_v60 = vrot.slane %v10933_v8, 6  ;;  %v7350_v59 = vsel %vm2278_vm6, %v7075_v63, %v4526_v28  ;;  %v7354_v26 = vsel %vm2278_vm6, %v7091_v0, %v4522_v7  ;;  %v1059_v2 = vrot.slane %v10934_v30, 6  ;;  %v10938_v63 = vld [vmem:[#allocation45_spill] sm:$0xff] }
  0xd0   :  { %4799 = vrot.lane.b32.xlu0 %v4798_v23, %s5597_s25  ;;  %v1057_v14 = vrot.slane %v5882_v44, 6  ;;  %v7360_v25 = vsel %vm2278_vm6, %v7095_v11, %v4521_v42  ;;  %v7363_v50 = vsel %vm1019_vm7, %v1061_v3, %v1063_v52  ;;  %v1056_v28 = vrot.slane %v10938_v63, 6  ;;  %v10945_v42 = vld [vmem:[#allocation55_spill] sm:$0xff] }
  0xd1   :  { %v7345_v19 = vpop.permute.xlu1 %4574  ;;  %10935 = vst [vmem:[#allocation237_spill] sm:$0xff] %v7360_v25  ;;  %10936 = vst [vmem:[#allocation238_spill] sm:$0xff] %v7363_v50  ;;  %v7366_v23 = vsel %vm1019_vm7, %v1063_v52, %v2029_v60  ;;  %v7372_v7 = vsel %vm1019_vm7, %v1059_v2, %v1061_v3  ;;  %v1070_v3 = vrot.slane %v5886_v31, 6 }
  0xd2   :  { %10937 = vst [vmem:[#allocation239_spill] sm:$0xff] %v7366_v23  ;;  %10939 = vst [vmem:[#allocation240_spill] sm:$0xff] %v7372_v7  ;;  %v7375_v8 = vsel %vm1019_vm7, %v1057_v14, %v1059_v2  ;;  %v4813_v11 = vpack.i.bf16 %v7363_v50, %v7372_v7  ;;  %v1058_v52 = vsel %vm1019_vm7, %v1056_v28, %v1057_v14  ;;  %v1072_v2 = vrot.slane %v5896_v41, 6  ;;  %v10941_v50 = vld [vmem:[#allocation52_spill] sm:$0xff] }
  0xd3   :  { %10940 = vst [vmem:[#allocation241_spill] sm:$0xff] %v7375_v8  ;;  %v7377_v44 = vpop.permute.xlu0 %4569  ;;  %v4808_v0 = vpack.i.bf16 %v7375_v8, %v1058_v52  ;;  %v2031_v23 = vrot.slane %v5898_v18, 6  ;;  %v1068_v63 = vrot.slane %v10941_v50, 6  ;;  %v10944_v52 = vld [vmem:[#allocation54_spill] sm:$0xff]  ;;  %v1065_v8 = vrot.slane %v10945_v42, 6  ;;  %v10948_v18 = vld [vmem:[#allocation59_spill] sm:$0xff] }
  0xd4   :  { %4814 = vrot.lane.b32.xlu1 %v4813_v11, %s5597_s25  ;;  %v7396_v14 = vsel %vm1019_vm7, %v1070_v3, %v1072_v2  ;;  %v1066_v11 = vrot.slane %v10944_v52, 6 }
  0xd5   :  { %v7384_v60 = vpop.permute.xlu1 %4584  ;;  %4809 = vrot.lane.b32.xlu0 %v4808_v0, %s5597_s25  ;;  %10942 = vst [vmem:[#allocation242_spill] sm:$0xff] %v7396_v14  ;;  %v7399_v28 = vsel %vm1019_vm7, %v1072_v2, %v2031_v23  ;;  %v7408_v0 = vsel %vm1019_vm7, %v1068_v63, %v1070_v3  ;;  %v1079_v3 = vrot.slane %v10843_v22, 6  ;;  %v1075_v2 = vrot.slane %v10951_v35, 6 }
  0xd6   :  { %10943 = vst [vmem:[#allocation243_spill] sm:$0xff] %v7399_v28  ;;  %10946 = vst [vmem:[#allocation244_spill] sm:$0xff] %v7408_v0  ;;  %v4823_v41 = vpack.i.bf16 %v7396_v14, %v7408_v0  ;;  %v7413_v31 = vsel %vm1019_vm7, %v1066_v11, %v1068_v63  ;;  %v1067_v23 = vsel %vm1019_vm7, %v1065_v8, %v1066_v11  ;;  %v1081_v28 = vrot.slane %v10948_v18, 6  ;;  %v10949_v63 = vld [vmem:[#allocation60_spill] sm:$0xff]  ;;  %v10950_v8 = vld [vmem:[#allocation63_spill] sm:$0xff] }
  0xd7   :  { %v7393_v25 = vpop.permute.xlu0 %4579  ;;  %10947 = vst [vmem:[#allocation245_spill] sm:$0xff] %v7413_v31  ;;  %v4818_v52 = vpack.i.bf16 %v7413_v31, %v1067_v23  ;;  %v2033_v14 = vrot.slane %v10949_v63, 6  ;;  %v1077_v11 = vrot.slane %v10950_v8, 6  ;;  %v10952_v0 = vld [vmem:[#allocation67_spill] sm:$0xff]  ;;  %v4556_v18 = vunpack.i.l.bf16 %v7275_v6  ;;  %v10958_v8 = vld [vmem:[#allocation74_spill] sm:$0xff] }
  0xd8   :  { %4824 = vrot.lane.b32.xlu1 %v4823_v41, %s5597_s25  ;;  %v1074_v23 = vrot.slane %v10952_v0, 6  ;;  %v7432_v31 = vsel %vm1019_vm7, %v1079_v3, %v1081_v28  ;;  %v4557_v41 = vunpack.i.h.bf16 %v7275_v6  ;;  %v1086_v6 = vrot.slane %v6006_v20, 6 }
  0xd9   :  { %v7403_v7 = vpop.permute.xlu1 %4594  ;;  %4819 = vrot.lane.b32.xlu0 %v4818_v52, %s5597_s25  ;;  %10953 = vst [vmem:[#allocation246_spill] sm:$0xff] %v7432_v31  ;;  %v7437_v22 = vsel %vm1019_vm7, %v1081_v28, %v2033_v14  ;;  %v7440_v52 = vsel %vm1019_vm7, %v1077_v11, %v1079_v3  ;;  %v7443_v63 = vsel %vm1019_vm7, %v1075_v2, %v1077_v11  ;;  %v1088_v11 = vrot.slane %v6000_v53, 6 }
  0xda   :  { %10954 = vst [vmem:[#allocation247_spill] sm:$0xff] %v7437_v22  ;;  %10955 = vst [vmem:[#allocation248_spill] sm:$0xff] %v7440_v52  ;;  %v1076_v35 = vsel %vm1019_vm7, %v1074_v23, %v1075_v2  ;;  %v4833_v47 = vpack.i.bf16 %v7432_v31, %v7440_v52  ;;  %v7459_v3 = vsel %vm2311_vm8, %v7067_v27, %v4556_v18  ;;  %v1090_v23 = vrot.slane %v6002_v16, 6  ;;  %v10959_v18 = vld [vmem:[#allocation76_spill] sm:$0xff] }
  0xdb   :  { %v7419_v42 = vpop.permute.xlu0 %4589  ;;  %10956 = vst [vmem:[#allocation249_spill] sm:$0xff] %v7443_v63  ;;  %v4828_v14 = vpack.i.bf16 %v7443_v63, %v1076_v35  ;;  %v7463_v2 = vsel %vm2311_vm8, %v7063_v4, %v4557_v41  ;;  %v2035_v35 = vrot.slane %v6004_v17, 6  ;;  %v1084_v63 = vrot.slane %v10958_v8, 6 }
  0xdc   :  { %4834 = vrot.lane.b32.xlu1 %v4833_v47, %s5597_s25  ;;  %v1083_v27 = vrot.slane %v10959_v18, 6  ;;  %v7476_v4 = vsel %vm1019_vm7, %v1088_v11, %v1090_v23  ;;  %v7482_v41 = vsel %vm1019_vm7, %v1086_v6, %v1088_v11  ;;  %v4562_v31 = vunpack.i.h.bf16 %v7338_v46 }
  0xdd   :  { %v7424_v50 = vpop.permute.xlu1 %4604  ;;  %4829 = vrot.lane.b32.xlu0 %v4828_v14, %s5597_s25  ;;  %10961 = vst [vmem:[#allocation251_spill] sm:$0xff] %v7476_v4  ;;  %v7479_v47 = vsel %vm1019_vm7, %v1090_v23, %v2035_v35  ;;  %10963 = vst [vmem:[#allocation253_spill] sm:$0xff] %v7482_v41  ;;  %v4567_v14 = vunpack.i.h.bf16 %v7312_v48  ;;  %v4843_v22 = vpack.i.bf16 %v7476_v4, %v7482_v41  ;;  %v4566_v35 = vunpack.i.l.bf16 %v7312_v48 }
  0xde   :  { %10962 = vst [vmem:[#allocation252_spill] sm:$0xff] %v7479_v47  ;;  %v7525_v23 = vsel %vm2311_vm8, %v7142_v29, %v4562_v31 }
  0xdf   :  { %v7446_v0 = vpop.permute.xlu0 %4599  ;;  %v7512_v48 = vsel %vm2311_vm8, %v7134_v54, %v4566_v35  ;;  %v10967_v54 = vld [vmem:[#allocation8_spill] sm:$0xff] }
  0xe0   :  { %4844 = vrot.lane.b32.xlu1 %v4843_v22, %s5597_s25  ;;  %v1192_v22 = vrot.slane %v5685_v9, 7  ;;  %v1189_v35 = vrot.slane %v10967_v54, 7 }
  0xe1   :  { %v7455_v28 = vpop.permute.xlu1 %4614 }
  0xe2   :  { %10957 = vst [vmem:[#allocation250_spill] sm:$0xff] %v7455_v28  ;;  %v1085_v28 = vsel %vm1019_vm7, %v1083_v27, %v1084_v63 }
  0xe3   :  { %v7473_v52 = vpop.permute.xlu0 %4609 }
  0xe4   :  { %10960 = vst [vmem:[#allocation76_spill] sm:$0xff] %v7473_v52  ;;  %v7492_v52 = vsel %vm1019_vm7, %v1084_v63, %v1086_v6  ;;  %v4561_v6 = vunpack.i.l.bf16 %v7338_v46  ;;  %v1194_v63 = vrot.slane %v5687_v10, 7  ;;  %vm10669_vm7 = vcmask 490496  }
  0xe5   :  { %v7485_v17 = vpop.permute.xlu1 %4624  ;;  %10965 = vst [vmem:[#allocation255_spill] sm:$0xff] %v7492_v52  ;;  %v4838_v11 = vpack.i.bf16 %v7492_v52, %v1085_v28  ;;  %v2133_v28 = vrot.slane %v10779_v58, 7 }
  0xe6   :  { %10964 = vst [vmem:[#allocation254_spill] sm:$0xff] %v7485_v17  ;;  %v7501_v17 = vsel %vm2311_vm8, %v7122_v62, %v4567_v14  ;;  %v1196_v62 = vrot.slane %v5737_v37, 7  ;;  %v7521_v46 = vsel %vm2311_vm8, %v7138_v51, %v4561_v6  ;;  %v7536_v41 = vsel %vm10668_vm9, %v1192_v22, %v1194_v63 }
  0xe7   :  { %v7507_v27 = vpop.permute.xlu0 %4619  ;;  %4839 = vrot.lane.b32.xlu0 %v4838_v11, %s5597_s25  ;;  %v1190_v11 = vrot.slane %v10780_v38, 7  ;;  %10970 = vst [vmem:[#allocation259_spill] sm:$0xff] %v7536_v41  ;;  %v4577_v51 = vunpack.i.h.bf16 %v7345_v19 }
  0xe8   :  { %10966 = vst [vmem:[#allocation256_spill] sm:$0xff] %v7507_v27  ;;  %v7530_v52 = vsel %vm10668_vm9, %v1194_v63, %v1196_v62  ;;  %v7533_v58 = vsel %vm10668_vm9, %v1196_v62, %v2133_v28  ;;  %v4576_v28 = vunpack.i.l.bf16 %v7345_v19  ;;  %v1203_v62 = vrot.slane %v10901_v61, 7 }
  0xe9   :  { %v7517_v14 = vpop.permute.xlu1 %4634  ;;  %10968 = vst [vmem:[#allocation257_spill] sm:$0xff] %v7530_v52  ;;  %10969 = vst [vmem:[#allocation258_spill] sm:$0xff] %v7533_v58  ;;  %v4853_v31 = vpack.i.bf16 %v7530_v52, %v7536_v41  ;;  %v7544_v29 = vsel %vm10668_vm9, %v1190_v11, %v1192_v22  ;;  %v1191_v4 = vsel %vm10668_vm9, %v1189_v35, %v1190_v11  ;;  %v4572_v22 = vunpack.i.h.bf16 %v7377_v44 }
  0xea   :  { %10971 = vst [vmem:[#allocation260_spill] sm:$0xff] %v7544_v29  ;;  %v4848_v63 = vpack.i.bf16 %v7544_v29, %v1191_v4  ;;  %v7555_v6 = vsel %vm2311_vm8, %v7176_v36, %v4577_v51  ;;  %v4571_v11 = vunpack.i.l.bf16 %v7377_v44  ;;  %v1201_v35 = vrot.slane %v10902_v49, 7  ;;  %v10973_v4 = vld [vmem:[#allocation6_spill] sm:$0xff]  ;;  %v10975_v44 = vld [vmem:[#allocation219_spill] sm:$0xff] }
  0xeb   :  { %v7547_v47 = vpop.permute.xlu0 %4629  ;;  %4854 = vrot.lane.b32.xlu1 %v4853_v31, %s5598_s26  ;;  %v7567_v19 = vsel %vm2311_vm8, %v7180_v57, %v4576_v28  ;;  %v10612_v36 = vrot.slane %v10818_v24, 7  ;;  %v1198_v51 = vrot.slane %v10973_v4, 7  ;;  %v7578_v29 = vsel %vm2311_vm8, %v10975_v44, %v4572_v22 }
  0xec   :  { %10972 = vst [vmem:[#allocation261_spill] sm:$0xff] %v7547_v47  ;;  %4849 = vrot.lane.b32.xlu0 %v4848_v63, %s5598_s26  ;;  %v10974_v47 = vld [vmem:[#allocation3_spill] sm:$0xff]  ;;  %v7574_v54 = vsel %vm2311_vm8, %v7201_v55, %v4571_v11  ;;  %v7581_v63 = vsel %vm10668_vm9, %v1201_v35, %v1203_v62  ;;  %v4587_v57 = vunpack.i.h.bf16 %v7384_v60  ;;  %v4586_v22 = vunpack.i.l.bf16 %v7384_v60 }
  0xed   :  { %v7557_v27 = vpop.permute.xlu1 %4644  ;;  %v1199_v31 = vrot.slane %v10974_v47, 7  ;;  %v7589_v4 = vsel %vm10668_vm9, %v1203_v62, %v10612_v36  ;;  %v4582_v62 = vunpack.i.h.bf16 %v7393_v25  ;;  %v1210_v60 = vrot.slane %v10914_v21, 7 }
  0xee   :  { %10976 = vst [vmem:[#allocation3_spill] sm:$0xff] %v7589_v4  ;;  %v4863_v44 = vpack.i.bf16 %v7589_v4, %v7581_v63  ;;  %v7603_v58 = vsel %vm2311_vm8, %v7229_v40, %v4587_v57  ;;  %v1207_v57 = vrot.slane %v10917_v45, 7 }
  0xef   :  { %v7584_v28 = vpop.permute.xlu0 %4639  ;;  %v1200_v41 = vsel %vm10668_vm9, %v1198_v51, %v1199_v31  ;;  %v7593_v55 = vsel %vm10668_vm9, %v1199_v31, %v1201_v35  ;;  %v7608_v51 = vsel %vm2311_vm8, %v7233_v56, %v4586_v22  ;;  %v4581_v35 = vunpack.i.l.bf16 %v7393_v25  ;;  %v10977_v56 = vld [vmem:[#allocation24_spill] sm:$0xff]  ;;  %v10978_v25 = vld [vmem:[#allocation225_spill] sm:$0xff] }
  0xf0   :  { %v4858_v52 = vpack.i.bf16 %v7593_v55, %v1200_v41  ;;  %v1212_v31 = vrot.slane %v5741_v39, 7  ;;  %4864 = vrot.lane.b32.xlu1 %v4863_v44, %s5598_s26  ;;  %v7617_v40 = vsel %vm2311_vm8, %v7251_v33, %v4582_v62  ;;  %v10618_v41 = vrot.slane %v10912_v32, 7 }
  0xf1   :  { %v7596_v11 = vpop.permute.xlu1 %4654  ;;  %v1208_v22 = vrot.slane %v10977_v56, 7  ;;  %v7626_v21 = vsel %vm2311_vm8, %v10978_v25, %v4581_v35  ;;  %v4596_v33 = vunpack.i.l.bf16 %v7403_v7  ;;  %v4592_v35 = vunpack.i.h.bf16 %v7419_v42 }
  0xf2   :  { %4859 = vrot.lane.b32.xlu0 %v4858_v52, %s5598_s26  ;;  %v7629_v44 = vsel %vm10668_vm9, %v1210_v60, %v1212_v31  ;;  %v4597_v52 = vunpack.i.h.bf16 %v7403_v7  ;;  %v7638_v45 = vsel %vm10668_vm9, %v1212_v31, %v10618_v41  ;;  %v1221_v41 = vrot.slane %v5804_v12, 7 }
  0xf3   :  { %v7622_v36 = vpop.permute.xlu0 %4649  ;;  %10979 = vst [vmem:[#allocation219_spill] sm:$0xff] %v7638_v45  ;;  %v1209_v39 = vsel %vm10668_vm9, %v1207_v57, %v1208_v22  ;;  %v7642_v56 = vsel %vm10668_vm9, %v1208_v22, %v1210_v60  ;;  %v4873_v25 = vpack.i.bf16 %v7638_v45, %v7629_v44  ;;  %v7650_v7 = vsel %vm2311_vm8, %v7293_v43, %v4596_v33 }
  0xf4   :  { %v4868_v4 = vpack.i.bf16 %v7642_v56, %v1209_v39  ;;  %v7654_v31 = vsel %vm2311_vm8, %v7282_v1, %v4597_v52  ;;  %v4591_v57 = vunpack.i.l.bf16 %v7419_v42  ;;  %v7659_v60 = vsel %vm2311_vm8, %v7306_v34, %v4592_v35  ;;  %v10980_v1 = vld [vmem:[#allocation36_spill] sm:$0xff]  ;;  %v10981_v52 = vld [vmem:[#allocation34_spill] sm:$0xff] }
  0xf5   :  { %v7633_v62 = vpop.permute.xlu1 %4664  ;;  %v1219_v22 = vrot.slane %v10924_v5, 7  ;;  %4874 = vrot.lane.b32.xlu1 %v4873_v25, %s5598_s26  ;;  %v10626_v39 = vrot.slane %v5806_v13, 7  ;;  %v1216_v43 = vrot.slane %v10980_v1, 7  ;;  %v1217_v42 = vrot.slane %v10981_v52, 7  ;;  %v10982_v35 = vld [vmem:[#allocation232_spill] sm:$0xff] }
  0xf6   :  { %4869 = vrot.lane.b32.xlu0 %v4868_v4, %s5598_s26  ;;  %v4607_v33 = vunpack.i.h.bf16 %v7424_v50  ;;  %v7675_v5 = vsel %vm2311_vm8, %v10982_v35, %v4591_v57  ;;  %v4606_v25 = vunpack.i.l.bf16 %v7424_v50  ;;  %v4602_v4 = vunpack.i.h.bf16 %v7446_v0 }
  0xf7   :  { %v7663_v45 = vpop.permute.xlu0 %4659  ;;  %v7678_v12 = vsel %vm10668_vm9, %v1219_v22, %v1221_v41  ;;  %v7685_v1 = vsel %vm10668_vm9, %v1221_v41, %v10626_v39  ;;  %v1218_v52 = vsel %vm10668_vm9, %v1216_v43, %v1217_v42  ;;  %v7689_v32 = vsel %vm10668_vm9, %v1217_v42, %v1219_v22  ;;  %v10989_v43 = vld [vmem:[#allocation37_spill] sm:$0xff] }
  0xf8   :  { %10983 = vst [vmem:[#allocation225_spill] sm:$0xff] %v7678_v12  ;;  %10984 = vst [vmem:[#allocation36_spill] sm:$0xff] %v7685_v1  ;;  %v7693_v57 = vsel %vm2311_vm8, %v7334_v15, %v4607_v33  ;;  %v4883_v35 = vpack.i.bf16 %v7685_v1, %v7678_v12  ;;  %v4878_v50 = vpack.i.bf16 %v7689_v32, %v1218_v52  ;;  %v4601_v41 = vunpack.i.l.bf16 %v7446_v0  ;;  %v10990_v33 = vld [vmem:[#allocation41_spill] sm:$0xff]  ;;  %v11010_v12 = vld [vmem:[#allocation67_spill] sm:$0xff] }
  0xf9   :  { %v7671_v34 = vpop.permute.xlu1 %4674  ;;  %10985 = vst [vmem:[#allocation232_spill] sm:$0xff] %v7689_v32  ;;  %10986 = vst [vmem:[#allocation262_spill] sm:$0xff] %v7693_v57  ;;  %v7700_v13 = vsel %vm2311_vm8, %v7350_v59, %v4606_v25  ;;  %v7707_v22 = vsel %vm2311_vm8, %v7354_v26, %v4602_v4  ;;  %v1228_v15 = vrot.slane %v10934_v30, 7  ;;  %v1230_v42 = vrot.slane %v10989_v43, 7  ;;  %v10991_v59 = vld [vmem:[#allocation237_spill] sm:$0xff]  ;;  %v10994_v57 = vld [vmem:[#allocation44_spill] sm:$0xff] }
  0xfa   :  { %10987 = vst [vmem:[#allocation263_spill] sm:$0xff] %v7700_v13  ;;  %10988 = vst [vmem:[#allocation264_spill] sm:$0xff] %v7707_v22  ;;  %v10631_v1 = vrot.slane %v10990_v33, 7  ;;  %4884 = vrot.lane.b32.xlu1 %v4883_v35, %s5598_s26  ;;  %4879 = vrot.lane.b32.xlu0 %v4878_v50, %s5598_s26  ;;  %v7716_v52 = vsel %vm2311_vm8, %v10991_v59, %v4601_v41  ;;  %v10993_v0 = vld [vmem:[#allocation45_spill] sm:$0xff]  ;;  %v1226_v13 = vrot.slane %v10994_v57, 7  ;;  %v10998_v30 = vld [vmem:[#allocation52_spill] sm:$0xff] }
  0xfb   :  { %v7703_v39 = vpop.permute.xlu0 %4669  ;;  %10992 = vst [vmem:[#allocation237_spill] sm:$0xff] %v7716_v52  ;;  %v1225_v25 = vrot.slane %v10993_v0, 7  ;;  %v7723_v4 = vsel %vm10668_vm9, %v1228_v15, %v1230_v42  ;;  %v1237_v57 = vrot.slane %v10998_v30, 7  ;;  %v10999_v33 = vld [vmem:[#allocation46_spill] sm:$0xff]  ;;  %v1243_v32 = vrot.slane %v11010_v12, 7 }
  0xfc   :  { %10995 = vst [vmem:[#allocation45_spill] sm:$0xff] %v7723_v4  ;;  %v7728_v43 = vsel %vm10668_vm9, %v1230_v42, %v10631_v1  ;;  %v7734_v41 = vsel %vm10668_vm9, %v1226_v13, %v1228_v15  ;;  %v1239_v22 = vrot.slane %v10999_v33, 7  ;;  %v11000_v42 = vld [vmem:[#allocation48_spill] sm:$0xff] }
  0xfd   :  { %v7720_v26 = vpop.permute.xlu1 %4684  ;;  %10996 = vst [vmem:[#allocation265_spill] sm:$0xff] %v7728_v43  ;;  %v4893_v35 = vpack.i.bf16 %v7728_v43, %v7723_v4  ;;  %v1227_v50 = vsel %vm10668_vm9, %v1225_v25, %v1226_v13  ;;  %10997 = vst [vmem:[#allocation266_spill] sm:$0xff] %v7734_v41  ;;  %v10637_v1 = vrot.slane %v11000_v42, 7  ;;  %v11001_v43 = vld [vmem:[#allocation55_spill] sm:$0xff]  ;;  %v11002_v25 = vld [vmem:[#allocation54_spill] sm:$0xff] }
  0xfe   :  { %v4888_v0 = vpack.i.bf16 %v7734_v41, %v1227_v50  ;;  %v1234_v4 = vrot.slane %v11001_v43, 7  ;;  %v1235_v52 = vrot.slane %v11002_v25, 7  ;;  %v7747_v13 = vsel %vm10668_vm9, %v1237_v57, %v1239_v22  ;;  %v11007_v42 = vld [vmem:[#allocation63_spill] sm:$0xff] }
  0xff   :  { %v7736_v59 = vpop.permute.xlu0 %4679  ;;  %4894 = vrot.lane.b32.xlu1 %v4893_v35, %s5598_s26  ;;  %11003 = vst [vmem:[#allocation55_spill] sm:$0xff] %v7747_v13  ;;  %v7752_v15 = vsel %vm10668_vm9, %v1239_v22, %v10637_v1  ;;  %v1246_v25 = vrot.slane %v11007_v42, 7  ;;  %v11008_v22 = vld [vmem:[#allocation56_spill] sm:$0xff]  ;;  %v11009_v41 = vld [vmem:[#allocation59_spill] sm:$0xff] }
 0x100   :  { %4889 = vrot.lane.b32.xlu0 %v4888_v0, %s5598_s26  ;;  %11004 = vst [vmem:[#allocation267_spill] sm:$0xff] %v7752_v15  ;;  %v4903_v50 = vpack.i.bf16 %v7752_v15, %v7747_v13  ;;  %v1236_v33 = vsel %vm10668_vm9, %v1234_v4, %v1235_v52  ;;  %v7760_v0 = vsel %vm10668_vm9, %v1235_v52, %v1237_v57  ;;  %v1248_v1 = vrot.slane %v11008_v22, 7  ;;  %v11011_v4 = vld [vmem:[#allocation64_spill] sm:$0xff] }
 0x101   :  { %v7754_v35 = vpop.permute.xlu1 %4694  ;;  %11006 = vst [vmem:[#allocation269_spill] sm:$0xff] %v7760_v0  ;;  %v4898_v43 = vpack.i.bf16 %v7760_v0, %v1236_v33  ;;  %v1244_v15 = vrot.slane %v11011_v4, 7 }
 0x102   :  { %11005 = vst [vmem:[#allocation268_spill] sm:$0xff] %v7754_v35  ;;  %v10648_v35 = vrot.slane %v11009_v41, 7  ;;  %v7773_v57 = vsel %vm10668_vm9, %v1246_v25, %v1248_v1  ;;  %v1255_v41 = vrot.slane %v6006_v20, 7  ;;  %v4666_v20 = vunpack.i.l.bf16 %v7633_v62 }
 0x103   :  { %v7763_v30 = vpop.permute.xlu0 %4689  ;;  %4904 = vrot.lane.b32.xlu1 %v4903_v50, %s5598_s26  ;;  %11012 = vst [vmem:[#allocation67_spill] sm:$0xff] %v7773_v57  ;;  %v1245_v50 = vsel %vm10668_vm9, %v1243_v32, %v1244_v15  ;;  %v7784_v22 = vsel %vm10668_vm9, %v1244_v15, %v1246_v25  ;;  %v1253_v32 = vrot.slane %v10958_v8, 7 }
 0x104   :  { %4899 = vrot.lane.b32.xlu0 %v4898_v43, %s5598_s26  ;;  %v7778_v33 = vsel %vm10668_vm9, %v1248_v1, %v10648_v35  ;;  %11014 = vst [vmem:[#allocation271_spill] sm:$0xff] %v7784_v22  ;;  %v4908_v43 = vpack.i.bf16 %v7784_v22, %v1245_v50  ;;  %v1257_v1 = vrot.slane %v6000_v53, 7  ;;  %v10654_v35 = vrot.slane %v6002_v16, 7 }
 0x105   :  { %11013 = vst [vmem:[#allocation270_spill] sm:$0xff] %v7778_v33  ;;  %v4913_v52 = vpack.i.bf16 %v7778_v33, %v7773_v57  ;;  %v1252_v33 = vrot.slane %v10959_v18, 7  ;;  %v7810_v53 = vsel %vm10668_vm9, %v1253_v32, %v1255_v41  ;;  %v4933_v57 = vpack.i.bf16 %v5737_v37, %v5687_v10 }
 0x106   :  { %v7786_v12 = vpop.permute.xlu1 %4704  ;;  %v7799_v25 = vsel %vm10668_vm9, %v1255_v41, %v1257_v1  ;;  %v7804_v15 = vsel %vm10668_vm9, %v1257_v1, %v10654_v35  ;;  %11018 = vst [vmem:[#allocation275_spill] sm:$0xff] %v7810_v53  ;;  %v4928_v1 = vpack.i.bf16 %v5685_v9, %v10780_v38  ;;  %v4636_v41 = vunpack.i.l.bf16 %v7517_v14 }
 0x107   :  { %v7789_v13 = vpop.permute.xlu0 %4699  ;;  %4914 = vrot.lane.b32.xlu1 %v4913_v52, %s5598_s26  ;;  %11016 = vst [vmem:[#allocation273_spill] sm:$0xff] %v7799_v25  ;;  %11017 = vst [vmem:[#allocation274_spill] sm:$0xff] %v7804_v15  ;;  %v4923_v52 = vpack.i.bf16 %v7804_v15, %v7799_v25  ;;  %v1254_v50 = vsel %vm10668_vm9, %v1252_v33, %v1253_v32  ;;  %v4637_v33 = vunpack.i.h.bf16 %v7517_v14  ;;  %v4646_v32 = vunpack.i.l.bf16 %v7557_v27 }
 0x108   :  { %11015 = vst [vmem:[#allocation272_spill] sm:$0xff] %v7789_v13  ;;  %4909 = vrot.lane.b32.xlu0 %v4908_v43, %s5598_s26  ;;  %v4918_v43 = vpack.i.bf16 %v7810_v53, %v1254_v50  ;;  %v4647_v50 = vunpack.i.h.bf16 %v7557_v27  ;;  %v4938_v35 = vpack.i.bf16 %v10902_v49, %v10974_v47  ;;  %v4642_v14 = vunpack.i.h.bf16 %v7584_v28 }
 0x109   :  { %v4657_v25 = vunpack.i.h.bf16 %v7596_v11  ;;  %v4656_v53 = vunpack.i.l.bf16 %v7596_v11  ;;  %v4651_v22 = vunpack.i.l.bf16 %v7622_v36  ;;  %v4667_v27 = vunpack.i.h.bf16 %v7633_v62 }
 0x10a   :  { %v4715_v18 = vpop.permute.xlu1 %4714  ;;  %v2359_v8 = vsel %vm2344_vm10, %v7512_v48, %v4646_v32  ;;  %v2360_v11 = vsel %vm2344_vm10, %v7501_v17, %v4647_v50  ;;  %v4662_v62 = vunpack.i.h.bf16 %v7663_v45 }
 0x10b   :  { %4924 = vrot.lane.b32.xlu1 %v4923_v52, %s5598_s26  ;;  %v7816_v16 = vpop.permute.xlu0 %4709  ;;  %v4943_v52 = vpack.i.bf16 %v10818_v24, %v10901_v61  ;;  %v2363_v48 = vsel %vm2344_vm10, %v7567_v19, %v4656_v53  ;;  %v11020_v53 = vld [vmem:[#allocation23_spill] sm:$0xff] }
 0x10c   :  { %11019 = vst [vmem:[#allocation276_spill] sm:$0xff] %v7816_v16  ;;  %4919 = vrot.lane.b32.xlu0 %v4918_v43, %s5598_s26  ;;  %v4641_v43 = vunpack.i.l.bf16 %v7584_v28  ;;  %v2356_v28 = vsel %vm2344_vm10, %v7463_v2, %v4637_v33  ;;  %v2358_v2 = vsel %vm2344_vm10, %v7525_v23, %v4642_v14  ;;  %v2364_v33 = vsel %vm2344_vm10, %v7555_v6, %v4657_v25  ;;  %v11021_v6 = vld [vmem:[#allocation22_spill] sm:$0xff] }
 0x10d   :  { %v4676_v23 = vunpack.i.l.bf16 %v7671_v34  ;;  %v11022_v19 = vpack.i.bf16 %v11020_v53, %v11021_v6  ;;  %v4717_v25 = vunpack.i.h.bf16 %v4715_v18  ;;  %v11027_v53 = vld [vmem:[#allocation80_spill] sm:$0xff] }
 0x10e   :  { %v4725_v37 = vpop.permute.xlu1 %4724 }
 0x10f   :  { %4934 = vrot.lane.b32.xlu1 %v4933_v57, %s5599_s27  ;;  %v4652_v57 = vunpack.i.h.bf16 %v7622_v36  ;;  %v2357_v36 = vsel %vm2344_vm10, %v7521_v46, %v4641_v43  ;;  %v2361_v46 = vsel %vm2344_vm10, %v7574_v54, %v4651_v22  ;;  %v4716_v54 = vunpack.i.l.bf16 %v4715_v18  ;;  %v11023_v22 = vld [vmem:[#allocation13_spill] sm:$0xff] }
 0x110   :  { %4929 = vrot.lane.b32.xlu0 %v4928_v1, %s5599_s27  ;;  %v2355_v1 = vsel %vm2344_vm10, %v7459_v3, %v4636_v41  ;;  %v4661_v3 = vunpack.i.l.bf16 %v7663_v45  ;;  %v2368_v45 = vsel %vm2344_vm10, %v7603_v58, %v4667_v27  ;;  %v4671_v43 = vunpack.i.l.bf16 %v7703_v39 }
 0x111   :  { %v2362_v17 = vsel %vm2344_vm10, %v7578_v29, %v4652_v57  ;;  %v4677_v29 = vunpack.i.h.bf16 %v7671_v34  ;;  %v4672_v34 = vunpack.i.h.bf16 %v7703_v39  ;;  %v7887_v18 = vsel %vm2377_vm11, %v2355_v1, %v4716_v54  ;;  %v11026_v39 = vld [vmem:[#allocation81_spill] sm:$0xff]  ;;  %v11030_v54 = vld [vmem:[#allocation83_spill] sm:$0xff] }
 0x112   :  { %v2365_v58 = vsel %vm2344_vm10, %v7626_v21, %v4661_v3  ;;  %v7890_v14 = vsel %vm2377_vm11, %v2356_v28, %v4717_v25  ;;  %v4727_v57 = vunpack.i.h.bf16 %v4725_v37  ;;  %v4726_v21 = vunpack.i.l.bf16 %v4725_v37  ;;  %v11029_v25 = vld [vmem:[#allocation82_spill] sm:$0xff] }
 0x113   :  { %4944 = vrot.lane.b32.xlu1 %v4943_v52, %s5599_s27  ;;  %v11024_v52 = vld [vmem:[#allocation12_spill] sm:$0xff]  ;;  %v4687_v27 = vunpack.i.h.bf16 %v7720_v26  ;;  %v11028_v1 = vpack.i.bf16 %v11026_v39, %v11027_v53 }
 0x114   :  { %4939 = vrot.lane.b32.xlu0 %v4938_v35, %s5599_s27  ;;  %v4735_v41 = vpop.permute.xlu1 %4734  ;;  %v2367_v35 = vsel %vm2344_vm10, %v7608_v51, %v4666_v20  ;;  %v5568_v20 = vld [vmem:[%s10307_s1] sm:$0xff]   ;;  %v2366_v51 = vsel %vm2344_vm10, %v7617_v40, %v4662_v62  ;;  %v11025_v50 = vpack.i.bf16 %v11023_v22, %v11024_v52  ;;  %v2371_v40 = vsel %vm2344_vm10, %v7650_v7, %v4676_v23 }
 0x115   :  { %4312 = vmatprep.subr.bf16.mxu0 %v5568_v20  ;;  %v7900_v28 = vsel %vm2377_vm11, %v2359_v8, %v4726_v21  ;;  %v7903_v37 = vsel %vm2377_vm11, %v2360_v11, %v4727_v57  ;;  %v4737_v6 = vunpack.i.h.bf16 %v4735_v41 }
 0x116   :  { %v4720_v15 = vpop.permute.xlu0 %4719  ;;  %4313 = vmatpush3.bf16.msra.mxu0 %v5568_v20  ;;  %v11031_v20 = vpack.i.bf16 %v11029_v25, %v11030_v54  ;;  %v11038_v54 = vld [vmem:[#allocation14_spill] sm:$0xff] }
 0x117   :  { %4954 = vrot.lane.b32.xlu1 %v11022_v19, %s5600_s28  ;;  %v4722_v62 = vunpack.i.h.bf16 %v4720_v15  ;;  %v4721_v3 = vunpack.i.l.bf16 %v4720_v15  ;;  %v4736_v19 = vunpack.i.l.bf16 %v4735_v41  ;;  %v5569_v15 = vld [vmem:[%s10307_s1 + $0x8] sm:$0xff]  }
 0x118   :  { %4949 = vrot.lane.b32.xlu0 %v11025_v50, %s5600_s28  ;;  %v7922_v50 = vsel %vm2377_vm11, %v2364_v33, %v4737_v6  ;;  %4314 = vmatprep.subr.bf16.mxu0 %v5569_v15  ;;  %v11032_v33 = vld [vmem:[#allocation7_spill] sm:$0xff] }
 0x119   :  { %v7913_v22 = vsel %vm2377_vm11, %v2357_v36, %v4721_v3  ;;  %v7916_v8 = vsel %vm2377_vm11, %v2358_v2, %v4722_v62  ;;  %v7919_v41 = vsel %vm2377_vm11, %v2363_v48, %v4736_v19  ;;  %v2370_v48 = vsel %vm2344_vm10, %v7659_v60, %v4672_v34  ;;  %v11033_v62 = vld [vmem:[#allocation15_spill] sm:$0xff]  ;;  %v11035_v60 = vld [vmem:[#allocation112_spill] sm:$0xff] }
 0x11a   :  { %4315 = vmatpush3.bf16.msra.mxu0 %v5569_v15  ;;  %v11034_v53 = vpack.i.bf16 %v11032_v33, %v11033_v62  ;;  %v11042_v33 = vrot.slane %v10818_v24, 7  ;;  %v11063_v24 = vld [vmem:[#allocation219_spill] sm:$0xff] }
 0x11b   :  { %v4730_v32 = vpop.permute.xlu0 %4729  ;;  %4964 = vrot.lane.b32.xlu1 %v11028_v1, %s5601_s12  ;;  %v5570_v1 = vld [vmem:[%s10307_s1 + $0x10] sm:$0xff]  }
 0x11c   :  { %4959 = vrot.lane.b32.xlu0 %v11031_v20, %s5601_s12  ;;  %v4732_v11 = vunpack.i.h.bf16 %v4730_v32  ;;  %v4731_v52 = vunpack.i.l.bf16 %v4730_v32  ;;  %v2372_v32 = vsel %vm2344_vm10, %v7654_v31, %v4677_v29  ;;  %v4686_v31 = vunpack.i.l.bf16 %v7720_v26  ;;  %v11036_v29 = vld [vmem:[#allocation113_spill] sm:$0xff]  ;;  %4316 = vmatprep.subr.bf16.mxu0 %v5570_v1 }
 0x11d   :  { %v11037_v34 = vpack.i.bf16 %v11035_v60, %v11036_v29  ;;  %v2135_v20 = vrot.slane %v11038_v54, 7  ;;  %v11046_v29 = vld [vmem:[#allocation3_spill] sm:$0xff] }
 0x11e   :  { %v4745_v7 = vpop.permute.xlu1 %4744  ;;  %v7925_v39 = vsel %vm2377_vm11, %v2361_v46, %v4731_v52  ;;  %v7928_v36 = vsel %vm2377_vm11, %v2362_v17, %v4732_v11  ;;  %v4682_v11 = vunpack.i.h.bf16 %v7736_v59  ;;  %4317 = vmatpush3.bf16.msra.mxu0 %v5570_v1  ;;  %v11044_v1 = vld [vmem:[#allocation145_spill] sm:$0xff]  ;;  %v11050_v54 = vld [vmem:[#allocation263_spill] sm:$0xff] }
 0x11f   :  { %v4740_v23 = vpop.permute.xlu0 %4739  ;;  %v4747_v57 = vunpack.i.h.bf16 %v4745_v7  ;;  %v4746_v21 = vunpack.i.l.bf16 %v4745_v7  ;;  %4974 = vrot.lane.b32.xlu1 %v11034_v53, %s5602_s15  ;;  %v2369_v7 = vsel %vm2344_vm10, %v7675_v5, %v4671_v43  ;;  %v11040_v5 = vld [vmem:[#allocation142_spill] sm:$0xff]  ;;  %v7980_v62 = vsel %vm10668_vm9, %v11042_v33, %v2135_v20  ;;  %v11043_v53 = vld [vmem:[#allocation144_spill] sm:$0xff] }
 0x120   :  { %v4742_v3 = vunpack.i.h.bf16 %v4740_v23  ;;  %v4741_v2 = vunpack.i.l.bf16 %v4740_v23  ;;  %4969 = vrot.lane.b32.xlu0 %v11037_v34, %s5602_s15  ;;  %v11045_v60 = vpack.i.bf16 %v11043_v53, %v11044_v1  ;;  %v11047_v34 = vld [vmem:[#allocation19_spill] sm:$0xff]  ;;  %v2375_v20 = vsel %vm2344_vm10, %v11050_v54, %v4686_v31  ;;  %v11054_v33 = vld [vmem:[#allocation30_spill] sm:$0xff] }
 0x121   :  { %v7939_v46 = vsel %vm2377_vm11, %v2367_v35, %v4746_v21  ;;  %v7942_v17 = vsel %vm2377_vm11, %v2368_v45, %v4747_v57  ;;  %v4681_v57 = vunpack.i.l.bf16 %v7736_v59  ;;  %v11039_v21 = vld [vmem:[#allocation143_spill] sm:$0xff]  ;;  %v5571_v59 = vld [vmem:[%s10307_s1 + $0x18] sm:$0xff]   ;;  %v2139_v53 = vrot.slane %v11054_v33, 7  ;;  %s5604_s1 = smov 52  }
 0x122   :  { %v7953_v6 = vsel %vm2377_vm11, %v2365_v58, %v4741_v2  ;;  %v7956_v35 = vsel %vm2377_vm11, %v2366_v51, %v4742_v3  ;;  %v11041_v43 = vpack.i.bf16 %v11039_v21, %v11040_v5  ;;  %4318 = vmatprep.subr.bf16.mxu0 %v5571_v59  ;;  %v11051_v21 = vld [vmem:[#allocation262_spill] sm:$0xff]  ;;  %v11055_v1 = vld [vmem:[#allocation179_spill] sm:$0xff]  ;;  %v11059_v51 = vld [vmem:[#allocation264_spill] sm:$0xff] }
 0x123   :  { %v4755_v19 = vpop.permute.xlu1 %4754  ;;  %v4750_v25 = vpop.permute.xlu0 %4749  ;;  %4319 = vmatpush3.bf16.msra.mxu0 %v5571_v59  ;;  %v11061_v33 = vld [vmem:[#allocation181_spill] sm:$0xff] }
 0x124   :  { %v4757_v23 = vunpack.i.h.bf16 %v4755_v19  ;;  %v4756_v15 = vunpack.i.l.bf16 %v4755_v19  ;;  %v4752_v58 = vunpack.i.h.bf16 %v4750_v25  ;;  %v4751_v52 = vunpack.i.l.bf16 %v4750_v25  ;;  %4984 = vrot.lane.b32.xlu1 %v11041_v43, %s5603_s18  ;;  %4979 = vrot.lane.b32.xlu0 %v11045_v60, %s5603_s18  ;;  %v11056_v60 = vld [vmem:[#allocation178_spill] sm:$0xff] }
 0x125   :  { %v2137_v19 = vrot.slane %v11047_v34, 7  ;;  %v11057_v31 = vpack.i.bf16 %v11055_v1, %v11056_v60  ;;  %v11064_v1 = vld [vmem:[#allocation29_spill] sm:$0xff] }
 0x126   :  { %v7972_v3 = vsel %vm2377_vm11, %v2371_v40, %v4756_v15  ;;  %v7975_v2 = vsel %vm2377_vm11, %v2372_v32, %v4757_v23  ;;  %v7990_v40 = vsel %vm2377_vm11, %v2369_v7, %v4751_v52  ;;  %v7993_v32 = vsel %vm2377_vm11, %v2370_v48, %v4752_v58  ;;  %v11048_v23 = vld [vmem:[#allocation232_spill] sm:$0xff]  ;;  %v11049_v15 = vld [vmem:[#allocation225_spill] sm:$0xff]  ;;  %v11052_v58 = vld [vmem:[#allocation18_spill] sm:$0xff] }
 0x127   :  { %v2376_v7 = vsel %vm2344_vm10, %v11051_v21, %v4687_v27  ;;  %v4765_v52 = vpop.permute.xlu1 %4764  ;;  %v4760_v48 = vpop.permute.xlu0 %4759  ;;  %v11053_v5 = vrot.slane %v11052_v58, 7  ;;  %v11058_v21 = vld [vmem:[#allocation237_spill] sm:$0xff]  ;;  %v11065_v60 = vrot.slane %v11064_v1, 7 }
 0x128   :  { %4994 = vrot.lane.b32.xlu1 %v11057_v31, %s5604_s1  ;;  %v4767_v26 = vunpack.i.h.bf16 %v4765_v52  ;;  %v4766_v34 = vunpack.i.l.bf16 %v4765_v52  ;;  %v4762_v54 = vunpack.i.h.bf16 %v4760_v48  ;;  %v4761_v27 = vunpack.i.l.bf16 %v4760_v48  ;;  %v11066_v31 = vld [vmem:[#allocation36_spill] sm:$0xff] }
 0x129   :  { %v8009_v43 = vsel %vm10668_vm9, %v11053_v5, %v2137_v19  ;;  %v2373_v25 = vsel %vm2344_vm10, %v11058_v21, %v4681_v57  ;;  %v2374_v19 = vsel %vm2344_vm10, %v11059_v51, %v4682_v11  ;;  %v11060_v5 = vld [vmem:[#allocation180_spill] sm:$0xff]  ;;  %v8029_v52 = vsel %vm10668_vm9, %v11065_v60, %v2139_v53  ;;  %v11068_v53 = vld [vmem:[#allocation215_spill] sm:$0xff]  ;;  %v11076_v21 = vld [vmem:[#allocation41_spill] sm:$0xff] }
 0x12a   :  { %v11062_v59 = vpack.i.bf16 %v11060_v5, %v11061_v33  ;;  %v8032_v48 = vsel %vm2377_vm11, %v2375_v20, %v4766_v34  ;;  %v8035_v57 = vsel %vm2377_vm11, %v2376_v7, %v4767_v26  ;;  %v8038_v11 = vsel %vm2377_vm11, %v2373_v25, %v4761_v27  ;;  %v11067_v5 = vld [vmem:[#allocation216_spill] sm:$0xff]  ;;  %v11071_v34 = vld [vmem:[#allocation45_spill] sm:$0xff]  ;;  %v11072_v7 = vld [vmem:[#allocation42_spill] sm:$0xff] }
 0x12b   :  { %v8041_v51 = vsel %vm2377_vm11, %v2374_v19, %v4762_v54  ;;  %v11069_v33 = vpack.i.bf16 %v11067_v5, %v11068_v53  ;;  %v2141_v26 = vrot.slane %v11072_v7, 7  ;;  %v11073_v25 = vld [vmem:[#allocation217_spill] sm:$0xff]  ;;  %v11074_v27 = vld [vmem:[#allocation218_spill] sm:$0xff]  ;;  %v11077_v45 = vrot.slane %v11076_v21, 7  ;;  %v11110_v20 = vld [vmem:[#allocation147_spill] sm:$0xff] }
 0x12c   :  { %4989 = vrot.lane.b32.xlu0 %v11062_v59, %s5604_s1  ;;  %v11075_v60 = vpack.i.bf16 %v11073_v25, %v11074_v27  ;;  %v8056_v54 = vpop.permute.xlu1 %4774  ;;  %v11081_v7 = vld [vmem:[#allocation257_spill] sm:$0xff]  ;;  %v11083_v25 = vld [vmem:[#allocation259_spill] sm:$0xff]  ;;  %v11084_v27 = vld [vmem:[#allocation260_spill] sm:$0xff] }
 0x12d   :  { %5004 = vrot.lane.b32.xlu1 %v11069_v33, %s5605_s21  ;;  %v8063_v16 = vsel %vm10668_vm9, %v11077_v45, %v2141_v26  ;;  %v11080_v33 = vld [vmem:[#allocation258_spill] sm:$0xff]  ;;  %v11088_v45 = vld [vmem:[#allocation20_spill] sm:$0xff]  ;;  %v11089_v26 = vld [vmem:[#allocation17_spill] sm:$0xff]  ;;  %vm2788_vm9 = vcmask 523264  }
 0x12e   :  { %v8058_v19 = vpop.permute.xlu0 %4769  ;;  %11078 = vst [vmem:[#allocation23_spill] sm:$0xff] %v8063_v16  ;;  %v11082_v59 = vpack.i.bf16 %v11080_v33, %v11081_v7  ;;  %v11090_v4 = vpack.i.bf16 %v11088_v45, %v11089_v26  ;;  %v11091_v53 = vld [vmem:[#allocation10_spill] sm:$0xff]  ;;  %v11092_v5 = vld [vmem:[#allocation9_spill] sm:$0xff]  ;;  %v11095_v33 = vld [vmem:[#allocation84_spill] sm:$0xff] }
 0x12f   :  { %v11093_v16 = vpack.i.bf16 %v11091_v53, %v11092_v5  ;;  %v11101_v5 = vld [vmem:[#allocation115_spill] sm:$0xff]  ;;  %v11102_v53 = vld [vmem:[#allocation114_spill] sm:$0xff] }
 0x130   :  { %4999 = vrot.lane.b32.xlu0 %v11075_v60, %s5605_s21  ;;  %v11085_v60 = vpack.i.bf16 %v11083_v25, %v11084_v27  ;;  %v11097_v27 = vld [vmem:[#allocation86_spill] sm:$0xff]  ;;  %v11103_v26 = vpack.i.bf16 %v11101_v5, %v11102_v53  ;;  %v11111_v5 = vld [vmem:[#allocation148_spill] sm:$0xff] }
 0x131   :  { %5014 = vrot.lane.b32.xlu1 %v11082_v59, %s5606_s22  ;;  %v11094_v59 = vld [vmem:[#allocation85_spill] sm:$0xff]  ;;  %v11112_v53 = vpack.i.bf16 %v11110_v20, %v11111_v5  ;;  %v11114_v20 = vld [vmem:[#allocation182_spill] sm:$0xff]  ;;  %v11119_v5 = vld [vmem:[#allocation220_spill] sm:$0xff] }
 0x132   :  { %v8075_v0 = vpop.permute.xlu1 %4784  ;;  %v11096_v7 = vpack.i.bf16 %v11094_v59, %v11095_v33  ;;  %v11105_v59 = vld [vmem:[#allocation117_spill] sm:$0xff] }
 0x133   :  { %11086 = vst [vmem:[#allocation22_spill] sm:$0xff] %v8075_v0 }
 0x134   :  { %5009 = vrot.lane.b32.xlu0 %v11085_v60, %s5606_s22  ;;  %v11098_v60 = vld [vmem:[#allocation87_spill] sm:$0xff] }
 0x135   :  { %5024 = vrot.lane.b32.xlu1 %v11090_v4, %s5600_s28 }
 0x137   :  { %v8077_v42 = vpop.permute.xlu0 %4779 }
 0x138   :  { %11087 = vst [vmem:[#allocation13_spill] sm:$0xff] %v8077_v42  ;;  %5019 = vrot.lane.b32.xlu0 %v11093_v16, %s5600_s28  ;;  %v11099_v42 = vpack.i.bf16 %v11097_v27, %v11098_v60 }
 0x139   :  { %5034 = vrot.lane.b32.xlu1 %v11096_v7, %s5601_s12 }
 0x13b   :  { %v4795_v25 = vpop.permute.xlu1 %4794 }
 0x13c   :  { %5029 = vrot.lane.b32.xlu0 %v11099_v42, %s5601_s12  ;;  %v4797_v0 = vunpack.i.h.bf16 %v4795_v25  ;;  %v4796_v13 = vunpack.i.l.bf16 %v4795_v25  ;;  %v11104_v42 = vld [vmem:[#allocation116_spill] sm:$0xff] }
 0x13d   :  { %5044 = vrot.lane.b32.xlu1 %v11103_v26, %s5602_s15  ;;  %v11106_v33 = vpack.i.bf16 %v11104_v42, %v11105_v59 }
 0x13e   :  { %v8095_v45 = vpop.permute.xlu0 %4789  ;;  %v8099_v4 = vsel %vm2410_vm12, %v7887_v18, %v4796_v13  ;;  %v8103_v16 = vsel %vm2410_vm12, %v7890_v14, %v4797_v0  ;;  %v11107_v13 = vld [vmem:[#allocation146_spill] sm:$0xff]  ;;  %v11108_v18 = vld [vmem:[#allocation11_spill] sm:$0xff] }
 0x13f   :  { %11100 = vst [vmem:[#allocation12_spill] sm:$0xff] %v8095_v45  ;;  %v11109_v45 = vpack.i.bf16 %v11107_v13, %v11108_v18 }
 0x140   :  { %5039 = vrot.lane.b32.xlu0 %v11106_v33, %s5602_s15  ;;  %v11113_v33 = vld [vmem:[#allocation183_spill] sm:$0xff] }
 0x141   :  { %v4805_v7 = vpop.permute.xlu1 %4804  ;;  %5054 = vrot.lane.b32.xlu1 %v11109_v45, %s5603_s18 }
 0x142   :  { %v4807_v25 = vunpack.i.h.bf16 %v4805_v7  ;;  %v4806_v27 = vunpack.i.l.bf16 %v4805_v7  ;;  %v4800_v60 = vpop.permute.xlu0 %4799  ;;  %v11115_v7 = vpack.i.bf16 %v11113_v33, %v11114_v20  ;;  %v11122_v20 = vld [vmem:[#allocation24_spill] sm:$0xff] }
 0x143   :  { %v4802_v0 = vunpack.i.h.bf16 %v4800_v60  ;;  %v4801_v14 = vunpack.i.l.bf16 %v4800_v60 }
 0x144   :  { %5049 = vrot.lane.b32.xlu0 %v11112_v53, %s5603_s18  ;;  %v8123_v26 = vsel %vm2410_vm12, %v7900_v28, %v4806_v27  ;;  %v8127_v42 = vsel %vm2410_vm12, %v7903_v37, %v4807_v25  ;;  %v11116_v28 = vld [vmem:[#allocation184_spill] sm:$0xff]  ;;  %v11117_v27 = vld [vmem:[#allocation185_spill] sm:$0xff] }
 0x145   :  { %v8131_v59 = vsel %vm2410_vm12, %v7913_v22, %v4801_v14  ;;  %v8135_v45 = vsel %vm2410_vm12, %v7916_v8, %v4802_v0  ;;  %5064 = vrot.lane.b32.xlu1 %v11115_v7, %s5604_s1  ;;  %v11118_v13 = vpack.i.bf16 %v11116_v28, %v11117_v27  ;;  %v11120_v53 = vld [vmem:[#allocation4_spill] sm:$0xff]  ;;  %v11123_v7 = vld [vmem:[#allocation21_spill] sm:$0xff] }
 0x146   :  { %v4815_v60 = vpop.permute.xlu1 %4814  ;;  %v11121_v33 = vpack.i.bf16 %v11119_v5, %v11120_v53  ;;  %v5083_v28 = vpack.i.bf16 %v11123_v7, %v11122_v20  ;;  %v11124_v27 = vld [vmem:[#allocation221_spill] sm:$0xff]  ;;  %v11127_v53 = vld [vmem:[#allocation16_spill] sm:$0xff] }
 0x147   :  { %v4817_v37 = vunpack.i.h.bf16 %v4815_v60  ;;  %v4816_v25 = vunpack.i.l.bf16 %v4815_v60  ;;  %v4810_v18 = vpop.permute.xlu0 %4809 }
 0x148   :  { %5059 = vrot.lane.b32.xlu0 %v11118_v13, %s5604_s1  ;;  %v4812_v22 = vunpack.i.h.bf16 %v4810_v18  ;;  %v4811_v14 = vunpack.i.l.bf16 %v4810_v18 }
 0x149   :  { %v8147_v8 = vsel %vm2410_vm12, %v7919_v41, %v4816_v25  ;;  %v8151_v0 = vsel %vm2410_vm12, %v7922_v50, %v4817_v37  ;;  %5074 = vrot.lane.b32.xlu1 %v11121_v33, %s5605_s21  ;;  %v11125_v50 = vld [vmem:[#allocation222_spill] sm:$0xff]  ;;  %v5093_v33 = vpack.i.bf16 %v11052_v58, %v11127_v53 }
 0x14a   :  { %v8161_v60 = vsel %vm2410_vm12, %v7925_v39, %v4811_v14  ;;  %v8165_v41 = vsel %vm2410_vm12, %v7928_v36, %v4812_v22  ;;  %v11126_v13 = vpack.i.bf16 %v11124_v27, %v11125_v50  ;;  %v4825_v37 = vpop.permute.xlu1 %4824  ;;  %v11128_v36 = vpack.i.bf16 %v7581_v63, %v7593_v55 }
 0x14b   :  { %v4827_v25 = vunpack.i.h.bf16 %v4825_v37  ;;  %v4826_v18 = vunpack.i.l.bf16 %v4825_v37  ;;  %v4820_v5 = vpop.permute.xlu0 %4819 }
 0x14c   :  { %5069 = vrot.lane.b32.xlu0 %v11126_v13, %s5605_s21  ;;  %v4822_v39 = vunpack.i.h.bf16 %v4820_v5  ;;  %v4821_v14 = vunpack.i.l.bf16 %v4820_v5  ;;  %v11134_v5 = vld [vmem:[#allocation33_spill] sm:$0xff] }
 0x14d   :  { %5084 = vrot.lane.b32.xlu1 %v5083_v28, %s5599_s27  ;;  %v8180_v22 = vsel %vm2410_vm12, %v7939_v46, %v4826_v18  ;;  %v8184_v7 = vsel %vm2410_vm12, %v7942_v17, %v4827_v25  ;;  %v11129_v46 = vpack.i.bf16 %v7980_v62, %v11046_v29  ;;  %v11130_v29 = vld [vmem:[#allocation26_spill] sm:$0xff]  ;;  %v11131_v25 = vld [vmem:[#allocation25_spill] sm:$0xff] }
 0x14e   :  { %v8188_v28 = vsel %vm2410_vm12, %v7953_v6, %v4821_v14  ;;  %v8192_v58 = vsel %vm2410_vm12, %v7956_v35, %v4822_v39  ;;  %v4835_v63 = vpop.permute.xlu1 %4834  ;;  %v11132_v18 = vpack.i.bf16 %v11130_v29, %v11131_v25 }
 0x14f   :  { %v4830_v55 = vpop.permute.xlu0 %4829  ;;  %v4837_v27 = vunpack.i.h.bf16 %v4835_v63  ;;  %v4836_v17 = vunpack.i.l.bf16 %v4835_v63  ;;  %v11136_v63 = vld [vmem:[#allocation89_spill] sm:$0xff] }
 0x150   :  { %5079 = vrot.lane.b32.xlu0 %v11128_v36, %s5606_s22  ;;  %v4832_v50 = vunpack.i.h.bf16 %v4830_v55  ;;  %v4831_v13 = vunpack.i.l.bf16 %v4830_v55 }
 0x151   :  { %5094 = vrot.lane.b32.xlu1 %v5093_v33, %s5599_s27  ;;  %v8201_v6 = vsel %vm2410_vm12, %v7972_v3, %v4836_v17  ;;  %v8205_v35 = vsel %vm2410_vm12, %v7975_v2, %v4837_v27  ;;  %v11133_v3 = vld [vmem:[#allocation32_spill] sm:$0xff]  ;;  %v11139_v17 = vld [vmem:[#allocation90_spill] sm:$0xff] }
 0x152   :  { %v8209_v37 = vsel %vm2410_vm12, %v7990_v40, %v4831_v13  ;;  %v8213_v62 = vsel %vm2410_vm12, %v7993_v32, %v4832_v50  ;;  %v11135_v53 = vpack.i.bf16 %v11133_v3, %v11134_v5  ;;  %v4845_v2 = vpop.permute.xlu1 %4844  ;;  %v11137_v32 = vld [vmem:[#allocation88_spill] sm:$0xff]  ;;  %v11140_v50 = vld [vmem:[#allocation91_spill] sm:$0xff]  ;;  %v11143_v3 = vld [vmem:[#allocation118_spill] sm:$0xff] }
 0x153   :  { %v4847_v33 = vunpack.i.h.bf16 %v4845_v2  ;;  %v4846_v39 = vunpack.i.l.bf16 %v4845_v2  ;;  %v11138_v55 = vpack.i.bf16 %v11136_v63, %v11137_v32  ;;  %v11141_v13 = vpack.i.bf16 %v11139_v17, %v11140_v50  ;;  %v11146_v2 = vld [vmem:[#allocation121_spill] sm:$0xff]  ;;  %v11155_v17 = vld [vmem:[#allocation186_spill] sm:$0xff] }
 0x154   :  { %5089 = vrot.lane.b32.xlu0 %v11129_v46, %s5606_s22 }
 0x155   :  { %5104 = vrot.lane.b32.xlu1 %v11132_v18, %s5600_s28  ;;  %v8229_v46 = vsel %vm2410_vm12, %v8032_v48, %v4846_v39  ;;  %v8233_v27 = vsel %vm2410_vm12, %v8035_v57, %v4847_v33  ;;  %v11142_v48 = vld [vmem:[#allocation119_spill] sm:$0xff]  ;;  %v11149_v39 = vld [vmem:[#allocation149_spill] sm:$0xff] }
 0x156   :  { %v11144_v57 = vpack.i.bf16 %v11142_v48, %v11143_v3  ;;  %v11158_v48 = vld [vmem:[#allocation189_spill] sm:$0xff] }
 0x158   :  { %5099 = vrot.lane.b32.xlu0 %v11135_v53, %s5600_s28  ;;  %v11145_v53 = vld [vmem:[#allocation120_spill] sm:$0xff] }
 0x159   :  { %v4840_v14 = vpop.permute.xlu0 %4839  ;;  %5114 = vrot.lane.b32.xlu1 %v11138_v55, %s5601_s12  ;;  %v11147_v33 = vpack.i.bf16 %v11145_v53, %v11146_v2  ;;  %v11154_v55 = vld [vmem:[#allocation187_spill] sm:$0xff] }
 0x15a   :  { %v4842_v40 = vunpack.i.h.bf16 %v4840_v14  ;;  %v4841_v36 = vunpack.i.l.bf16 %v4840_v14  ;;  %v11156_v50 = vpack.i.bf16 %v11154_v55, %v11155_v17  ;;  %v11165_v55 = vld [vmem:[#allocation228_spill] sm:$0xff]  ;;  %v11166_v17 = vld [vmem:[#allocation230_spill] sm:$0xff] }
 0x15c   :  { %5109 = vrot.lane.b32.xlu0 %v11141_v13, %s5601_s12  ;;  %v8241_v29 = vsel %vm2410_vm12, %v8038_v11, %v4841_v36  ;;  %v8245_v25 = vsel %vm2410_vm12, %v8041_v51, %v4842_v40  ;;  %v11148_v11 = vld [vmem:[#allocation150_spill] sm:$0xff]  ;;  %v11151_v51 = vld [vmem:[#allocation151_spill] sm:$0xff]  ;;  %v11152_v40 = vld [vmem:[#allocation152_spill] sm:$0xff] }
 0x15d   :  { %v8247_v18 = vpop.permute.xlu1 %4854  ;;  %5124 = vrot.lane.b32.xlu1 %v11144_v57, %s5602_s15  ;;  %v11150_v14 = vpack.i.bf16 %v11148_v11, %v11149_v39  ;;  %v11153_v36 = vpack.i.bf16 %v11151_v51, %v11152_v40  ;;  %v11157_v13 = vld [vmem:[#allocation188_spill] sm:$0xff]  ;;  %v11160_v11 = vld [vmem:[#allocation227_spill] sm:$0xff]  ;;  %v11161_v39 = vld [vmem:[#allocation226_spill] sm:$0xff] }
 0x15e   :  { %v8253_v5 = vpop.permute.xlu0 %4849  ;;  %v11159_v3 = vpack.i.bf16 %v11157_v13, %v11158_v48  ;;  %v11163_v51 = vld [vmem:[#allocation34_spill] sm:$0xff]  ;;  %v11164_v40 = vld [vmem:[#allocation31_spill] sm:$0xff] }
 0x160   :  { %5119 = vrot.lane.b32.xlu0 %v11147_v33, %s5602_s15 }
 0x161   :  { %5134 = vrot.lane.b32.xlu1 %v11150_v14, %s5603_s18  ;;  %v11162_v14 = vpack.i.bf16 %v11160_v11, %v11161_v39  ;;  %v11168_v11 = vld [vmem:[#allocation28_spill] sm:$0xff] }
 0x162   :  { %v8267_v63 = vpop.permute.xlu1 %4864  ;;  %v5173_v39 = vpack.i.bf16 %v11064_v1, %v11168_v11 }
 0x164   :  { %5129 = vrot.lane.b32.xlu0 %v11153_v36, %s5603_s18  ;;  %v8269_v32 = vpop.permute.xlu0 %4859  ;;  %v5163_v36 = vpack.i.bf16 %v11164_v40, %v11163_v51 }
 0x165   :  { %5144 = vrot.lane.b32.xlu1 %v11156_v50, %s5604_s1  ;;  %v11167_v50 = vpack.i.bf16 %v11165_v55, %v11166_v17 }
 0x167   :  { %v4875_v57 = vpop.permute.xlu1 %4874 }
 0x168   :  { %5139 = vrot.lane.b32.xlu0 %v11159_v3, %s5604_s1  ;;  %v8279_v53 = vpop.permute.xlu0 %4869  ;;  %v4877_v2 = vunpack.i.h.bf16 %v4875_v57  ;;  %v4876_v33 = vunpack.i.l.bf16 %v4875_v57 }
 0x169   :  { %5154 = vrot.lane.b32.xlu1 %v11162_v14, %s5605_s21 }
 0x16a   :  { %v8293_v13 = vsel %vm2443_vm13, %v8099_v4, %v4876_v33  ;;  %v8297_v48 = vsel %vm2443_vm13, %v8103_v16, %v4877_v2  ;;  %v11169_v4 = vpack.i.bf16 %v7629_v44, %v7642_v56 }
 0x16c   :  { %5149 = vrot.lane.b32.xlu0 %v11167_v50, %s5605_s21  ;;  %v4885_v3 = vpop.permute.xlu1 %4884  ;;  %v4880_v57 = vpop.permute.xlu0 %4879 }
 0x16d   :  { %5164 = vrot.lane.b32.xlu1 %v5163_v36, %s5599_s27  ;;  %v4887_v14 = vunpack.i.h.bf16 %v4885_v3  ;;  %v4886_v51 = vunpack.i.l.bf16 %v4885_v3  ;;  %v4882_v40 = vunpack.i.h.bf16 %v4880_v57  ;;  %v4881_v55 = vunpack.i.l.bf16 %v4880_v57 }
 0x16f   :  { %v8308_v16 = vsel %vm2443_vm13, %v8123_v26, %v4886_v51  ;;  %v8312_v2 = vsel %vm2443_vm13, %v8127_v42, %v4887_v14  ;;  %v8316_v1 = vsel %vm2443_vm13, %v8131_v59, %v4881_v55  ;;  %v8320_v33 = vsel %vm2443_vm13, %v8135_v45, %v4882_v40  ;;  %v11175_v14 = vld [vmem:[#allocation40_spill] sm:$0xff] }
 0x170   :  { %5159 = vrot.lane.b32.xlu0 %v11169_v4, %s5606_s22  ;;  %v11170_v26 = vpack.i.bf16 %v8009_v43, %v11063_v24  ;;  %v11171_v24 = vld [vmem:[#allocation38_spill] sm:$0xff]  ;;  %v11172_v43 = vld [vmem:[#allocation35_spill] sm:$0xff] }
 0x171   :  { %v4895_v36 = vpop.permute.xlu1 %4894  ;;  %5174 = vrot.lane.b32.xlu1 %v5173_v39, %s5599_s27  ;;  %v11173_v11 = vpack.i.bf16 %v11171_v24, %v11172_v43 }
 0x172   :  { %v4897_v56 = vunpack.i.h.bf16 %v4895_v36  ;;  %v4896_v44 = vunpack.i.l.bf16 %v4895_v36  ;;  %v4890_v17 = vpop.permute.xlu0 %4889 }
 0x173   :  { %v4892_v42 = vunpack.i.h.bf16 %v4890_v17  ;;  %v4891_v50 = vunpack.i.l.bf16 %v4890_v17  ;;  %v11179_v17 = vld [vmem:[#allocation93_spill] sm:$0xff] }
 0x174   :  { %5169 = vrot.lane.b32.xlu0 %v11170_v26, %s5606_s22  ;;  %v8329_v59 = vsel %vm2443_vm13, %v8147_v8, %v4896_v44  ;;  %v8333_v45 = vsel %vm2443_vm13, %v8151_v0, %v4897_v56  ;;  %v11174_v8 = vld [vmem:[#allocation39_spill] sm:$0xff]  ;;  %v11180_v26 = vld [vmem:[#allocation92_spill] sm:$0xff] }
 0x175   :  { %v8337_v3 = vsel %vm2443_vm13, %v8161_v60, %v4891_v50  ;;  %v8341_v57 = vsel %vm2443_vm13, %v8165_v41, %v4892_v42  ;;  %5184 = vrot.lane.b32.xlu1 %v11173_v11, %s5600_s28  ;;  %v4905_v39 = vpop.permute.xlu1 %4904  ;;  %v11176_v51 = vpack.i.bf16 %v11174_v8, %v11175_v14  ;;  %v11181_v42 = vpack.i.bf16 %v11179_v17, %v11180_v26  ;;  %v11183_v50 = vld [vmem:[#allocation95_spill] sm:$0xff] }
 0x176   :  { %v4907_v0 = vunpack.i.h.bf16 %v4905_v39  ;;  %v4906_v40 = vunpack.i.l.bf16 %v4905_v39  ;;  %v4900_v55 = vpop.permute.xlu0 %4899 }
 0x177   :  { %v4902_v60 = vunpack.i.h.bf16 %v4900_v55  ;;  %v4901_v4 = vunpack.i.l.bf16 %v4900_v55 }
 0x178   :  { %5179 = vrot.lane.b32.xlu0 %v11176_v51, %s5600_s28  ;;  %v8353_v41 = vsel %vm2443_vm13, %v8180_v22, %v4906_v40  ;;  %v8357_v36 = vsel %vm2443_vm13, %v8184_v7, %v4907_v0  ;;  %v11182_v22 = vld [vmem:[#allocation94_spill] sm:$0xff]  ;;  %v11187_v51 = vld [vmem:[#allocation123_spill] sm:$0xff] }
 0x179   :  { %v8361_v56 = vsel %vm2443_vm13, %v8188_v28, %v4901_v4  ;;  %v8365_v44 = vsel %vm2443_vm13, %v8192_v58, %v4902_v60  ;;  %5194 = vrot.lane.b32.xlu1 %v11181_v42, %s5601_s12  ;;  %v11184_v24 = vpack.i.bf16 %v11182_v22, %v11183_v50  ;;  %v4915_v7 = vpop.permute.xlu1 %4914  ;;  %v11188_v0 = vld [vmem:[#allocation122_spill] sm:$0xff]  ;;  %v11193_v4 = vld [vmem:[#allocation125_spill] sm:$0xff] }
 0x17a   :  { %11177 = vst [vmem:[#allocation81_spill] sm:$0xff] %v8361_v56  ;;  %11178 = vst [vmem:[#allocation80_spill] sm:$0xff] %v8365_v44  ;;  %v4917_v43 = vunpack.i.h.bf16 %v4915_v7  ;;  %v4916_v11 = vunpack.i.l.bf16 %v4915_v7  ;;  %v4910_v39 = vpop.permute.xlu0 %4909  ;;  %v11189_v40 = vpack.i.bf16 %v11187_v51, %v11188_v0  ;;  %v11195_v7 = vld [vmem:[#allocation154_spill] sm:$0xff]  ;;  %v11232_v44 = vld [vmem:[#allocation268_spill] sm:$0xff] }
 0x17b   :  { %v4912_v28 = vunpack.i.h.bf16 %v4910_v39  ;;  %v4911_v8 = vunpack.i.l.bf16 %v4910_v39  ;;  %v11200_v39 = vld [vmem:[#allocation155_spill] sm:$0xff]  ;;  %v4696_v56 = vunpack.i.l.bf16 %v11232_v44 }
 0x17c   :  { %5189 = vrot.lane.b32.xlu0 %v11184_v24, %s5601_s12  ;;  %v8377_v58 = vsel %vm2443_vm13, %v8201_v6, %v4916_v11  ;;  %v8381_v14 = vsel %vm2443_vm13, %v8205_v35, %v4917_v43  ;;  %v11192_v6 = vld [vmem:[#allocation124_spill] sm:$0xff]  ;;  %v11196_v43 = vld [vmem:[#allocation153_spill] sm:$0xff] }
 0x17d   :  { %11185 = vst [vmem:[#allocation82_spill] sm:$0xff] %v8377_v58  ;;  %11186 = vst [vmem:[#allocation83_spill] sm:$0xff] %v8381_v14  ;;  %5204 = vrot.lane.b32.xlu1 %v11189_v40, %s5602_s15  ;;  %v8389_v55 = vsel %vm2443_vm13, %v8209_v37, %v4911_v8  ;;  %v8393_v60 = vsel %vm2443_vm13, %v8213_v62, %v4912_v28  ;;  %v11194_v17 = vpack.i.bf16 %v11192_v6, %v11193_v4  ;;  %v4925_v35 = vpop.permute.xlu1 %4924  ;;  %v11201_v28 = vld [vmem:[#allocation156_spill] sm:$0xff]  ;;  %v11205_v6 = vld [vmem:[#allocation162_spill] sm:$0xff] }
 0x17e   :  { %11190 = vst [vmem:[#allocation7_spill] sm:$0xff] %v8389_v55  ;;  %11191 = vst [vmem:[#allocation15_spill] sm:$0xff] %v8393_v60  ;;  %v4927_v26 = vunpack.i.h.bf16 %v4925_v35  ;;  %v4926_v42 = vunpack.i.l.bf16 %v4925_v35  ;;  %v4920_v22 = vpop.permute.xlu0 %4919  ;;  %v11197_v37 = vpack.i.bf16 %v11195_v7, %v11196_v43  ;;  %v11202_v8 = vpack.i.bf16 %v11200_v39, %v11201_v28  ;;  %v11207_v35 = vld [vmem:[#allocation190_spill] sm:$0xff]  ;;  %v11214_v28 = vld [vmem:[#allocation161_spill] sm:$0xff] }
 0x17f   :  { %v4922_v50 = vunpack.i.h.bf16 %v4920_v22  ;;  %v4921_v24 = vunpack.i.l.bf16 %v4920_v22  ;;  %v4371_v4 = vunpack.i.l.bf16 %v11205_v6  ;;  %v11213_v7 = vld [vmem:[#allocation194_spill] sm:$0xff] }
 0x180   :  { %5199 = vrot.lane.b32.xlu0 %v11194_v17, %s5602_s15  ;;  %v8405_v62 = vsel %vm2443_vm13, %v8229_v46, %v4926_v42  ;;  %v8409_v11 = vsel %vm2443_vm13, %v8233_v27, %v4927_v26  ;;  %v4372_v27 = vunpack.i.h.bf16 %v11205_v6  ;;  %v11206_v17 = vld [vmem:[#allocation191_spill] sm:$0xff]  ;;  %v11209_v42 = vld [vmem:[#allocation168_spill] sm:$0xff]  ;;  %v4457_v43 = vunpack.i.h.bf16 %v11213_v7 }
 0x181   :  { %5214 = vrot.lane.b32.xlu1 %v11197_v37, %s5603_s18  ;;  %11198 = vst [vmem:[#allocation112_spill] sm:$0xff] %v8405_v62  ;;  %11199 = vst [vmem:[#allocation113_spill] sm:$0xff] %v8409_v11  ;;  %v8417_v51 = vsel %vm2443_vm13, %v8241_v29, %v4921_v24  ;;  %v8421_v0 = vsel %vm2443_vm13, %v8245_v25, %v4922_v50  ;;  %v8423_v40 = vpop.permute.xlu1 %4934  ;;  %v11208_v26 = vpack.i.bf16 %v11206_v17, %v11207_v35  ;;  %v11210_v25 = vld [vmem:[#allocation192_spill] sm:$0xff]  ;;  %v11211_v50 = vld [vmem:[#allocation193_spill] sm:$0xff] }
 0x182   :  { %11203 = vst [vmem:[#allocation14_spill] sm:$0xff] %v8417_v51  ;;  %11204 = vst [vmem:[#allocation143_spill] sm:$0xff] %v8421_v0  ;;  %v8425_v46 = vpop.permute.xlu0 %4929  ;;  %v4377_v29 = vunpack.i.h.bf16 %v11209_v42  ;;  %v4376_v22 = vunpack.i.l.bf16 %v11209_v42  ;;  %v11212_v24 = vpack.i.bf16 %v11210_v25, %v11211_v50  ;;  %v4456_v37 = vunpack.i.l.bf16 %v11213_v7  ;;  %v11216_v25 = vld [vmem:[#allocation197_spill] sm:$0xff]  ;;  %v11220_v62 = vld [vmem:[#allocation44_spill] sm:$0xff] }
 0x183   :  { %v2247_v35 = vsel %vm2245_vm5, %v10780_v38, %v4372_v27  ;;  %v4451_v50 = vunpack.i.l.bf16 %v11216_v25  ;;  %v11218_v11 = vld [vmem:[#allocation233_spill] sm:$0xff]  ;;  %v11221_v0 = vld [vmem:[#allocation43_spill] sm:$0xff]  ;;  %v4452_v27 = vunpack.i.h.bf16 %v11216_v25  ;;  %v11228_v25 = vld [vmem:[#allocation250_spill] sm:$0xff] }
 0x184   :  { %5209 = vrot.lane.b32.xlu0 %v11202_v8, %s5603_s18  ;;  %v5243_v8 = vpack.i.bf16 %v11221_v0, %v11220_v62  ;;  %v11222_v51 = vld [vmem:[#allocation167_spill] sm:$0xff]  ;;  %v2249_v60 = vsel %vm2245_vm5, %v5687_v10, %v4377_v29  ;;  %v2248_v38 = vsel %vm2245_vm5, %v5685_v9, %v4376_v22  ;;  %v11226_v0 = vld [vmem:[#allocation5_spill] sm:$0xff]  ;;  %v4616_v14 = vunpack.i.l.bf16 %v11228_v25 }
 0x185   :  { %5224 = vrot.lane.b32.xlu1 %v11208_v26, %s5604_s1  ;;  %v8441_v39 = vpop.permute.xlu1 %4944  ;;  %v11215_v26 = vld [vmem:[#allocation8_spill] sm:$0xff]  ;;  %v2282_v62 = vsel %vm2278_vm6, %v2249_v60, %v4457_v43  ;;  %v4537_v10 = vunpack.i.h.bf16 %v11226_v0  ;;  %v11227_v9 = vld [vmem:[#allocation223_spill] sm:$0xff]  ;;  %v11230_v43 = vld [vmem:[#allocation37_spill] sm:$0xff] }
 0x186   :  { %v8445_v17 = vpop.permute.xlu0 %4939  ;;  %v2246_v42 = vsel %vm2245_vm5, %v11215_v26, %v4371_v4  ;;  %v11223_v4 = vld [vmem:[#allocation235_spill] sm:$0xff]  ;;  %v11224_v26 = vld [vmem:[#allocation236_spill] sm:$0xff]  ;;  %v4532_v29 = vunpack.i.h.bf16 %v11227_v9  ;;  %v4531_v22 = vunpack.i.l.bf16 %v11227_v9 }
 0x187   :  { %v11225_v55 = vpack.i.bf16 %v11223_v4, %v11224_v26  ;;  %v5253_v26 = vpack.i.bf16 %v11076_v21, %v11230_v43  ;;  %v4691_v21 = vunpack.i.l.bf16 %v7763_v30 }
 0x188   :  { %5219 = vrot.lane.b32.xlu0 %v11212_v24, %s5604_s1  ;;  %v11217_v24 = vld [vmem:[#allocation234_spill] sm:$0xff] }
 0x189   :  { %v11219_v7 = vpack.i.bf16 %v11217_v24, %v11218_v11  ;;  %v2281_v24 = vsel %vm2278_vm6, %v2248_v38, %v4456_v37  ;;  %v8472_v6 = vpop.permute.xlu1 %4954  ;;  %v4617_v37 = vunpack.i.h.bf16 %v11228_v25  ;;  %v11229_v38 = vld [vmem:[#allocation76_spill] sm:$0xff]  ;;  %v11231_v11 = vld [vmem:[#allocation198_spill] sm:$0xff]  ;;  %v4692_v25 = vunpack.i.h.bf16 %v7763_v30 }
 0x18a   :  { %v8478_v4 = vpop.permute.xlu0 %4949  ;;  %v4612_v60 = vunpack.i.h.bf16 %v11229_v38  ;;  %v4611_v9 = vunpack.i.l.bf16 %v11229_v38  ;;  %v4776_v30 = vunpack.i.l.bf16 %v8056_v54 }
 0x18b   :  { %5234 = vrot.lane.b32.xlu1 %v11219_v7, %s5605_s21  ;;  %v4536_v7 = vunpack.i.l.bf16 %v11226_v0  ;;  %v2280_v0 = vsel %vm2278_vm6, %v2247_v35, %v4452_v27  ;;  %v2315_v27 = vsel %vm2311_vm8, %v2282_v62, %v4537_v10  ;;  %v4772_v10 = vunpack.i.h.bf16 %v8058_v19 }
 0x18c   :  { %5229 = vrot.lane.b32.xlu0 %v11225_v55, %s5605_s21  ;;  %v2279_v55 = vsel %vm2278_vm6, %v2246_v42, %v4451_v50  ;;  %v11233_v42 = vpack.i.bf16 %v11049_v15, %v11048_v23  ;;  %v2313_v43 = vsel %vm2311_vm8, %v2280_v0, %v4532_v29  ;;  %v2348_v15 = vsel %vm2344_vm10, %v2315_v27, %v4617_v37  ;;  %v11235_v0 = vld [vmem:[#allocation50_spill] sm:$0xff]  ;;  %v11239_v27 = vld [vmem:[#allocation53_spill] sm:$0xff] }
 0x18d   :  { %v2314_v50 = vsel %vm2311_vm8, %v2281_v24, %v4536_v7  ;;  %v8498_v35 = vpop.permute.xlu1 %4964  ;;  %v2312_v38 = vsel %vm2311_vm8, %v2279_v55, %v4531_v22  ;;  %v4777_v24 = vunpack.i.h.bf16 %v8056_v54  ;;  %v11234_v29 = vpack.i.bf16 %v8029_v52, %v11066_v31 }
 0x18e   :  { %v2347_v58 = vsel %vm2344_vm10, %v2314_v50, %v4616_v14  ;;  %v8504_v23 = vpop.permute.xlu0 %4959  ;;  %v2345_v62 = vsel %vm2344_vm10, %v2312_v38, %v4611_v9  ;;  %v4771_v14 = vunpack.i.l.bf16 %v8058_v19  ;;  %v11236_v9 = vld [vmem:[#allocation47_spill] sm:$0xff] }
 0x18f   :  { %5244 = vrot.lane.b32.xlu1 %v5243_v8, %s5599_s27  ;;  %v4697_v8 = vunpack.i.h.bf16 %v11232_v44  ;;  %v2346_v44 = vsel %vm2344_vm10, %v2313_v43, %v4612_v60  ;;  %v2380_v7 = vsel %vm2377_vm11, %v2347_v58, %v4696_v56  ;;  %v2378_v55 = vsel %vm2377_vm11, %v2345_v62, %v4691_v21  ;;  %v11238_v21 = vld [vmem:[#allocation51_spill] sm:$0xff] }
 0x190   :  { %5239 = vrot.lane.b32.xlu0 %v11233_v42, %s5606_s22  ;;  %v2379_v54 = vsel %vm2377_vm11, %v2346_v44, %v4692_v25  ;;  %v4857_v56 = vunpack.i.h.bf16 %v8247_v18  ;;  %v4856_v58 = vunpack.i.l.bf16 %v8247_v18  ;;  %v2413_v52 = vsel %vm2410_vm12, %v2380_v7, %v4776_v30 }
 0x191   :  { %v2381_v22 = vsel %vm2377_vm11, %v2348_v15, %v4697_v8  ;;  %v8522_v37 = vpop.permute.xlu1 %4974  ;;  %v4852_v60 = vunpack.i.h.bf16 %v8253_v5  ;;  %v11237_v42 = vpack.i.bf16 %v11235_v0, %v11236_v9  ;;  %v2411_v18 = vsel %vm2410_vm12, %v2378_v55, %v4771_v14  ;;  %v11242_v55 = vld [vmem:[#allocation96_spill] sm:$0xff] }
 0x192   :  { %v8526_v19 = vpop.permute.xlu0 %4969  ;;  %v2414_v31 = vsel %vm2410_vm12, %v2381_v22, %v4777_v24  ;;  %v2412_v50 = vsel %vm2410_vm12, %v2379_v54, %v4772_v10  ;;  %v4937_v8 = vunpack.i.h.bf16 %v8423_v40  ;;  %v4936_v25 = vunpack.i.l.bf16 %v8423_v40  ;;  %v11241_v22 = vld [vmem:[#allocation97_spill] sm:$0xff] }
 0x193   :  { %5254 = vrot.lane.b32.xlu1 %v5253_v26, %s5599_s27  ;;  %v4851_v26 = vunpack.i.l.bf16 %v8253_v5  ;;  %v11240_v38 = vpack.i.bf16 %v11238_v21, %v11239_v27  ;;  %v4932_v5 = vunpack.i.h.bf16 %v8425_v46  ;;  %v4931_v43 = vunpack.i.l.bf16 %v8425_v46 }
 0x194   :  { %5249 = vrot.lane.b32.xlu0 %v11234_v29, %s5606_s22  ;;  %v4957_v15 = vunpack.i.h.bf16 %v8472_v6  ;;  %v4956_v44 = vunpack.i.l.bf16 %v8472_v6  ;;  %v2446_v30 = vsel %vm2443_vm13, %v2413_v52, %v4856_v58  ;;  %v2447_v62 = vsel %vm2443_vm13, %v2414_v31, %v4857_v56  ;;  %v11244_v31 = vld [vmem:[#allocation98_spill] sm:$0xff] }
 0x195   :  { %v4952_v40 = vunpack.i.h.bf16 %v8478_v4  ;;  %v4951_v7 = vunpack.i.l.bf16 %v8478_v4  ;;  %v2444_v14 = vsel %vm2443_vm13, %v2411_v18, %v4851_v26  ;;  %v2445_v46 = vsel %vm2443_vm13, %v2412_v50, %v4852_v60  ;;  %v11245_v60 = vld [vmem:[#allocation99_spill] sm:$0xff] }
 0x196   :  { %v4985_v24 = vpop.permute.xlu1 %4984  ;;  %v4980_v10 = vpop.permute.xlu0 %4979  ;;  %v4967_v29 = vunpack.i.h.bf16 %v8498_v35  ;;  %v4966_v6 = vunpack.i.l.bf16 %v8498_v35  ;;  %v11243_v54 = vpack.i.bf16 %v11241_v22, %v11242_v55  ;;  %v2479_v56 = vsel %vm2476_vm14, %v2446_v30, %v4936_v25 }
 0x197   :  { %5264 = vrot.lane.b32.xlu1 %v11237_v42, %s5600_s28  ;;  %v2480_v58 = vsel %vm2476_vm14, %v2447_v62, %v4937_v8  ;;  %v4962_v4 = vunpack.i.h.bf16 %v8504_v23  ;;  %v4961_v52 = vunpack.i.l.bf16 %v8504_v23  ;;  %v11246_v26 = vpack.i.bf16 %v11244_v31, %v11245_v60 }
 0x198   :  { %5259 = vrot.lane.b32.xlu0 %v11240_v38, %s5600_s28  ;;  %v2477_v35 = vsel %vm2476_vm14, %v2444_v14, %v4931_v43  ;;  %v2478_v0 = vsel %vm2476_vm14, %v2445_v46, %v4932_v5  ;;  %v2512_v9 = vsel %vm2509_vm15, %v2479_v56, %v4956_v44  ;;  %v2513_v42 = vsel %vm2509_vm15, %v2480_v58, %v4957_v15  ;;  %v11247_v15 = vld [vmem:[#allocation127_spill] sm:$0xff]  ;;  %v11248_v44 = vld [vmem:[#allocation126_spill] sm:$0xff]  ;;  %v11250_v14 = vld [vmem:[#allocation128_spill] sm:$0xff] }
 0x199   :  { %v2510_v50 = vsel %vm2509_vm15, %v2477_v35, %v4951_v7  ;;  %v2511_v23 = vsel %vm2509_vm15, %v2478_v0, %v4952_v40  ;;  %v4977_v8 = vunpack.i.h.bf16 %v8522_v37  ;;  %v4976_v25 = vunpack.i.l.bf16 %v8522_v37  ;;  %v11251_v46 = vld [vmem:[#allocation129_spill] sm:$0xff]  ;;  %v11253_v0 = vld [vmem:[#allocation158_spill] sm:$0xff] }
 0x19a   :  { %v4995_v18 = vpop.permute.xlu1 %4994  ;;  %v2545_v27 = vsel %vm2542_vm0, %v2512_v9, %v4966_v6  ;;  %v2546_v38 = vsel %vm2542_vm0, %v2513_v42, %v4967_v29  ;;  %v4972_v5 = vunpack.i.h.bf16 %v8526_v19  ;;  %v4971_v43 = vunpack.i.l.bf16 %v8526_v19  ;;  %v11254_v9 = vld [vmem:[#allocation157_spill] sm:$0xff] }
 0x19b   :  { %5274 = vrot.lane.b32.xlu1 %v11243_v54, %s5601_s12  ;;  %v11249_v30 = vpack.i.bf16 %v11247_v15, %v11248_v44  ;;  %v2543_v62 = vsel %vm2542_vm0, %v2510_v50, %v4961_v52  ;;  %v2544_v40 = vsel %vm2542_vm0, %v2511_v23, %v4962_v4  ;;  %v4987_v7 = vunpack.i.h.bf16 %v4985_v24 }
 0x19c   :  { %5269 = vrot.lane.b32.xlu0 %v11246_v26, %s5601_s12  ;;  %v4986_v37 = vunpack.i.l.bf16 %v4985_v24  ;;  %v11252_v6 = vpack.i.bf16 %v11250_v14, %v11251_v46  ;;  %v4982_v29 = vunpack.i.h.bf16 %v4980_v10  ;;  %v4981_v22 = vunpack.i.l.bf16 %v4980_v10 }
 0x19d   :  { %v4997_v55 = vunpack.i.h.bf16 %v4995_v18  ;;  %v4996_v19 = vunpack.i.l.bf16 %v4995_v18  ;;  %v2578_v56 = vsel %vm2575_vm1, %v2545_v27, %v4976_v25  ;;  %v2579_v58 = vsel %vm2575_vm1, %v2546_v38, %v4977_v8  ;;  %v11256_v8 = vld [vmem:[#allocation159_spill] sm:$0xff]  ;;  %v11257_v25 = vld [vmem:[#allocation160_spill] sm:$0xff] }
 0x19e   :  { %v4990_v21 = vpop.permute.xlu0 %4989  ;;  %v2576_v4 = vsel %vm2575_vm1, %v2543_v62, %v4971_v43  ;;  %v2577_v24 = vsel %vm2575_vm1, %v2544_v40, %v4972_v5  ;;  %v11255_v10 = vpack.i.bf16 %v11253_v0, %v11254_v9  ;;  %v2611_v42 = vsel %vm2608_vm2, %v2578_v56, %v4986_v37  ;;  %v11262_v56 = vld [vmem:[#allocation199_spill] sm:$0xff]  ;;  %v11265_v9 = vld [vmem:[#allocation201_spill] sm:$0xff] }
 0x19f   :  { %5284 = vrot.lane.b32.xlu1 %v11249_v30, %s5602_s15  ;;  %v5005_v54 = vpop.permute.xlu1 %5004  ;;  %v4992_v31 = vunpack.i.h.bf16 %v4990_v21  ;;  %v4991_v52 = vunpack.i.l.bf16 %v4990_v21  ;;  %v2612_v18 = vsel %vm2608_vm2, %v2579_v58, %v4987_v7  ;;  %v11258_v21 = vpack.i.bf16 %v11256_v8, %v11257_v25  ;;  %v11263_v58 = vld [vmem:[#allocation200_spill] sm:$0xff] }
 0x1a0   :  { %5279 = vrot.lane.b32.xlu0 %v11252_v6, %s5602_s15  ;;  %v5007_v26 = vunpack.i.h.bf16 %v5005_v54  ;;  %v5006_v35 = vunpack.i.l.bf16 %v5005_v54  ;;  %v2609_v27 = vsel %vm2608_vm2, %v2576_v4, %v4981_v22  ;;  %v2610_v38 = vsel %vm2608_vm2, %v2577_v24, %v4982_v29  ;;  %v11259_v29 = vld [vmem:[#allocation196_spill] sm:$0xff]  ;;  %v11260_v22 = vld [vmem:[#allocation195_spill] sm:$0xff] }
 0x1a1   :  { %v2644_v5 = vsel %vm2641_vm3, %v2611_v42, %v4996_v19  ;;  %v2645_v43 = vsel %vm2641_vm3, %v2612_v18, %v4997_v55  ;;  %v2642_v40 = vsel %vm2641_vm3, %v2609_v27, %v4991_v52  ;;  %v2643_v7 = vsel %vm2641_vm3, %v2610_v38, %v4992_v31  ;;  %v11270_v27 = vld [vmem:[#allocation52_spill] sm:$0xff] }
 0x1a2   :  { %v5000_v60 = vpop.permute.xlu0 %4999  ;;  %v2677_v37 = vsel %vm2674_vm4, %v2644_v5, %v5006_v35  ;;  %v2678_v14 = vsel %vm2674_vm4, %v2645_v43, %v5007_v26  ;;  %v11261_v19 = vpack.i.bf16 %v11259_v29, %v11260_v22  ;;  %v11264_v52 = vpack.i.bf16 %v11262_v56, %v11263_v58  ;;  %v11280_v29 = vld [vmem:[#allocation224_spill] sm:$0xff] }
 0x1a3   :  { %5294 = vrot.lane.b32.xlu1 %v11255_v10, %s5603_s18  ;;  %v5002_v50 = vunpack.i.h.bf16 %v5000_v60  ;;  %v5001_v23 = vunpack.i.l.bf16 %v5000_v60  ;;  %v5015_v15 = vpop.permute.xlu1 %5014  ;;  %v4466_v0 = vunpack.i.l.bf16 %v11231_v11  ;;  %v4462_v10 = vunpack.i.h.bf16 %v11265_v9 }
 0x1a4   :  { %5289 = vrot.lane.b32.xlu0 %v11258_v21, %s5603_s18  ;;  %v5017_v44 = vunpack.i.h.bf16 %v5015_v15  ;;  %v5016_v30 = vunpack.i.l.bf16 %v5015_v15  ;;  %v4461_v8 = vunpack.i.l.bf16 %v11265_v9  ;;  %v11269_v21 = vld [vmem:[#allocation54_spill] sm:$0xff]  ;;  %v11271_v5 = vunpack.i.h.bf16 %v11214_v28 }
 0x1a5   :  { %v2675_v31 = vsel %vm2674_vm4, %v2642_v40, %v5001_v23  ;;  %v2676_v60 = vsel %vm2674_vm4, %v2643_v7, %v5002_v50  ;;  %v11266_v23 = vld [vmem:[#allocation239_spill] sm:$0xff]  ;;  %v11267_v50 = vld [vmem:[#allocation238_spill] sm:$0xff]  ;;  %v5323_v38 = vpack.i.bf16 %v11270_v27, %v11269_v21  ;;  %v11272_v15 = vunpack.i.l.bf16 %v11214_v28  ;;  %v11275_v7 = vld [vmem:[#allocation240_spill] sm:$0xff] }
 0x1a6   :  { %v5010_v62 = vpop.permute.xlu0 %5009  ;;  %v2710_v55 = vsel %vm10669_vm7, %v2677_v37, %v5016_v30  ;;  %v2711_v54 = vsel %vm10669_vm7, %v2678_v14, %v5017_v44  ;;  %v11268_v25 = vpack.i.bf16 %v11266_v23, %v11267_v50  ;;  %v2251_v43 = vsel %vm2245_vm5, %v10974_v47, %v11271_v5  ;;  %v11273_v44 = vld [vmem:[#allocation6_spill] sm:$0xff]  ;;  %v11276_v37 = vld [vmem:[#allocation241_spill] sm:$0xff]  ;;  %v11288_v27 = vld [vmem:[#allocation272_spill] sm:$0xff] }
 0x1a7   :  { %v5012_v46 = vunpack.i.h.bf16 %v5010_v62  ;;  %v5011_v6 = vunpack.i.l.bf16 %v5010_v62  ;;  %5304 = vrot.lane.b32.xlu1 %v11261_v19, %s5604_s1  ;;  %v8624_v4 = vpop.permute.xlu1 %5024  ;;  %v2741_v35 = vpack.c.bf16 %v2711_v54, %v2710_v55  ;;  %v2250_v30 = vsel %vm2245_vm5, %v11273_v44, %v11272_v15 }
 0x1a8   :  { %5299 = vrot.lane.b32.xlu0 %v11264_v52, %s5604_s1  ;;  %v11274_v62 = vunpack.i.h.bf16 %v11222_v51  ;;  %v11277_v14 = vpack.i.bf16 %v11275_v7, %v11276_v37  ;;  %v11279_v28 = vunpack.i.h.bf16 %v11231_v11  ;;  %v4547_v22 = vunpack.i.h.bf16 %v11280_v29  ;;  %v11282_v52 = vld [vmem:[#allocation254_spill] sm:$0xff]  ;;  %v11290_v37 = vld [vmem:[#allocation13_spill] sm:$0xff] }
 0x1a9   :  { %v2708_v24 = vsel %vm10669_vm7, %v2675_v31, %v5011_v6  ;;  %v2709_v26 = vsel %vm10669_vm7, %v2676_v60, %v5012_v46  ;;  %v11278_v46 = vunpack.i.l.bf16 %v11222_v51  ;;  %v2284_v54 = vsel %vm2278_vm6, %v2251_v43, %v4462_v10  ;;  %v11281_v51 = vld [vmem:[#allocation229_spill] sm:$0xff] }
 0x1aa   :  { %v8630_v42 = vpop.permute.xlu0 %5019  ;;  %v2740_v18 = vpack.c.bf16 %v2709_v26, %v2708_v24  ;;  %v2253_v40 = vsel %vm2245_vm5, %v10901_v61, %v11274_v62  ;;  %v4546_v61 = vunpack.i.l.bf16 %v11280_v29  ;;  %v4542_v56 = vunpack.i.h.bf16 %v11281_v51  ;;  %v11283_v24 = vld [vmem:[#allocation46_spill] sm:$0xff]  ;;  %v11284_v26 = vld [vmem:[#allocation48_spill] sm:$0xff] }
 0x1ab   :  { %5314 = vrot.lane.b32.xlu1 %v11268_v25, %s5605_s21  ;;  %v2252_v47 = vsel %vm2245_vm5, %v10902_v49, %v11278_v46  ;;  %v2286_v6 = vsel %vm2278_vm6, %v2253_v40, %v11279_v28  ;;  %v8666_v19 = vpop.permute.xlu1 %5034  ;;  %v4541_v49 = vunpack.i.l.bf16 %v11281_v51  ;;  %v2283_v11 = vsel %vm2278_vm6, %v2250_v30, %v4461_v8  ;;  %v11286_v8 = vld [vmem:[#allocation266_spill] sm:$0xff] }
 0x1ac   :  { %5309 = vrot.lane.b32.xlu0 %v11277_v14, %s5605_s21  ;;  %4320 = vmatprep.mubr.msk.bf16.mxu0 %vm2788_vm9, %v2740_v18  ;;  %v2285_v55 = vsel %vm2278_vm6, %v2252_v47, %v4466_v0  ;;  %v4627_v31 = vunpack.i.h.bf16 %v11282_v52  ;;  %v4626_v60 = vunpack.i.l.bf16 %v11282_v52  ;;  %v11285_v0 = vld [vmem:[#allocation256_spill] sm:$0xff]  ;;  %v4707_v18 = vunpack.i.h.bf16 %v7786_v12 }
 0x1ad   :  { %4321 = vmatmul.mubr.msk.bf16.vlgmr.msra.gmra.mrb[0].mxu0 %vm2788_vm9, %v2741_v35  ;;  %v5333_v35 = vpack.i.bf16 %v11284_v26, %v11283_v24  ;;  %v4622_v9 = vunpack.i.h.bf16 %v11285_v0  ;;  %v4621_v10 = vunpack.i.l.bf16 %v11285_v0  ;;  %v4706_v23 = vunpack.i.l.bf16 %v7786_v12  ;;  %v11289_v12 = vld [vmem:[#allocation22_spill] sm:$0xff] }
 0x1ae   :  { %v8672_v58 = vpop.permute.xlu0 %5029  ;;  %v11287_v50 = vpack.i.bf16 %v11071_v34, %v11286_v8  ;;  %v2318_v25 = vsel %vm2311_vm8, %v2285_v55, %v4546_v61  ;;  %v2319_v21 = vsel %vm2311_vm8, %v2286_v6, %v4547_v22  ;;  %v4701_v5 = vunpack.i.l.bf16 %v11288_v27  ;;  %v11291_v22 = vld [vmem:[#allocation23_spill] sm:$0xff]  ;;  %v11292_v61 = vld [vmem:[#allocation265_spill] sm:$0xff] }
 0x1af   :  { %5324 = vrot.lane.b32.xlu1 %v5323_v38, %s5599_s27  ;;  %v4702_v38 = vunpack.i.h.bf16 %v11288_v27  ;;  %v8692_v43 = vpop.permute.xlu1 %5044  ;;  %v2316_v15 = vsel %vm2311_vm8, %v2283_v11, %v4541_v49  ;;  %v2317_v44 = vsel %vm2311_vm8, %v2284_v54, %v4542_v56  ;;  %v4787_v30 = vunpack.i.h.bf16 %v11289_v12  ;;  %v11297_v27 = vld [vmem:[#allocation61_spill] sm:$0xff] }
 0x1b0   :  { %5319 = vrot.lane.b32.xlu0 %v11287_v50, %s5606_s22  ;;  %v4786_v62 = vunpack.i.l.bf16 %v11289_v12  ;;  %v2351_v40 = vsel %vm2344_vm10, %v2318_v25, %v4626_v60  ;;  %v2352_v7 = vsel %vm2344_vm10, %v2319_v21, %v4627_v31  ;;  %v4782_v14 = vunpack.i.h.bf16 %v11290_v37 }
 0x1b1   :  { %v4781_v46 = vunpack.i.l.bf16 %v11290_v37  ;;  %v2349_v47 = vsel %vm2344_vm10, %v2316_v15, %v4621_v10  ;;  %v2350_v28 = vsel %vm2344_vm10, %v2317_v44, %v4622_v9  ;;  %v2384_v6 = vsel %vm2377_vm11, %v2351_v40, %v4706_v23  ;;  %v11295_v23 = vld [vmem:[#allocation57_spill] sm:$0xff] }
 0x1b2   :  { %v8698_v34 = vpop.permute.xlu0 %5039  ;;  %v2385_v29 = vsel %vm2377_vm11, %v2352_v7, %v4707_v18  ;;  %v11293_v55 = vpack.i.bf16 %v11291_v22, %v11292_v61  ;;  %v2382_v54 = vsel %vm2377_vm11, %v2349_v47, %v4701_v5  ;;  %v2383_v51 = vsel %vm2377_vm11, %v2350_v28, %v4702_v38  ;;  %v11298_v38 = vld [vmem:[#allocation62_spill] sm:$0xff]  ;;  %v11301_v28 = vld [vmem:[#allocation100_spill] sm:$0xff] }
 0x1b3   :  { %5334 = vrot.lane.b32.xlu1 %v5333_v35, %s5599_s27  ;;  %v4867_v56 = vunpack.i.h.bf16 %v8267_v63  ;;  %v4866_v49 = vunpack.i.l.bf16 %v8267_v63  ;;  %v8717_v11 = vpop.permute.xlu1 %5054  ;;  %v2417_v52 = vsel %vm2410_vm12, %v2384_v6, %v4786_v62  ;;  %v2418_v31 = vsel %vm2410_vm12, %v2385_v29, %v4787_v30  ;;  %v11294_v63 = vld [vmem:[#allocation58_spill] sm:$0xff] }
 0x1b4   :  { %5329 = vrot.lane.b32.xlu0 %v11293_v55, %s5606_s22  ;;  %v4862_v60 = vunpack.i.h.bf16 %v8269_v32  ;;  %v4861_v24 = vunpack.i.l.bf16 %v8269_v32  ;;  %v2415_v0 = vsel %vm2410_vm12, %v2382_v54, %v4781_v46  ;;  %v2416_v9 = vsel %vm2410_vm12, %v2383_v51, %v4782_v14  ;;  %v11303_v55 = vld [vmem:[#allocation102_spill] sm:$0xff]  ;;  %v11304_v54 = vld [vmem:[#allocation103_spill] sm:$0xff] }
 0x1b5   :  { %v4947_v10 = vunpack.i.h.bf16 %v8441_v39  ;;  %v4946_v18 = vunpack.i.l.bf16 %v8441_v39  ;;  %v11296_v8 = vpack.i.bf16 %v11294_v63, %v11295_v23  ;;  %v4942_v50 = vunpack.i.h.bf16 %v8445_v17 }
 0x1b6   :  { %v5050_v35 = vpop.permute.xlu0 %5049  ;;  %v4941_v25 = vunpack.i.l.bf16 %v8445_v17  ;;  %v5027_v32 = vunpack.i.h.bf16 %v8624_v4  ;;  %v5026_v21 = vunpack.i.l.bf16 %v8624_v4  ;;  %v11299_v5 = vpack.i.bf16 %v11297_v27, %v11298_v38 }
 0x1b7   :  { %5344 = vrot.lane.b32.xlu1 %v11296_v8, %s5600_s28  ;;  %v2450_v39 = vsel %vm2443_vm13, %v2417_v52, %v4866_v49  ;;  %v2451_v15 = vsel %vm2443_vm13, %v2418_v31, %v4867_v56  ;;  %v5022_v44 = vunpack.i.h.bf16 %v8630_v42  ;;  %v5021_v12 = vunpack.i.l.bf16 %v8630_v42  ;;  %v8743_v30 = vpop.permute.xlu1 %5064  ;;  %v11300_v42 = vld [vmem:[#allocation101_spill] sm:$0xff] }
 0x1b8   :  { %5339 = vrot.lane.b32.xlu0 %v11299_v5, %s5600_s28  ;;  %v2448_v17 = vsel %vm2443_vm13, %v2415_v0, %v4861_v24  ;;  %v2449_v62 = vsel %vm2443_vm13, %v2416_v9, %v4862_v60  ;;  %v5037_v4 = vunpack.i.h.bf16 %v8666_v19  ;;  %v5036_v40 = vunpack.i.l.bf16 %v8666_v19  ;;  %v11310_v5 = vld [vmem:[#allocation133_spill] sm:$0xff] }
 0x1b9   :  { %v2483_v37 = vsel %vm2476_vm14, %v2450_v39, %v4946_v18  ;;  %v2484_v14 = vsel %vm2476_vm14, %v2451_v15, %v4947_v10  ;;  %v5032_v46 = vunpack.i.h.bf16 %v8672_v58  ;;  %v5031_v47 = vunpack.i.l.bf16 %v8672_v58 }
 0x1ba   :  { %v5060_v7 = vpop.permute.xlu0 %5059  ;;  %v11302_v6 = vpack.i.bf16 %v11300_v42, %v11301_v28  ;;  %v2481_v29 = vsel %vm2476_vm14, %v2448_v17, %v4941_v25  ;;  %v2482_v22 = vsel %vm2476_vm14, %v2449_v62, %v4942_v50  ;;  %v2516_v19 = vsel %vm2509_vm15, %v2483_v37, %v5026_v21  ;;  %v11306_v50 = vld [vmem:[#allocation131_spill] sm:$0xff]  ;;  %v11307_v25 = vld [vmem:[#allocation130_spill] sm:$0xff] }
 0x1bb   :  { %v2517_v61 = vsel %vm2509_vm15, %v2484_v14, %v5027_v32  ;;  %v11305_v51 = vpack.i.bf16 %v11303_v55, %v11304_v54  ;;  %v2514_v58 = vsel %vm2509_vm15, %v2481_v29, %v5021_v12  ;;  %v2515_v56 = vsel %vm2509_vm15, %v2482_v22, %v5022_v44  ;;  %v5075_v31 = vpop.permute.xlu1 %5074  ;;  %v11312_v28 = vld [vmem:[#allocation163_spill] sm:$0xff]  ;;  %v11316_v55 = vld [vmem:[#allocation166_spill] sm:$0xff] }
 0x1bc   :  { %5354 = vrot.lane.b32.xlu1 %v11302_v6, %s5601_s12  ;;  %v5042_v49 = vunpack.i.h.bf16 %v8698_v34  ;;  %v5041_v52 = vunpack.i.l.bf16 %v8698_v34  ;;  %v2549_v60 = vsel %vm2542_vm0, %v2516_v19, %v5036_v40  ;;  %v2550_v24 = vsel %vm2542_vm0, %v2517_v61, %v5037_v4 }
 0x1bd   :  { %5349 = vrot.lane.b32.xlu0 %v11305_v51, %s5601_s12  ;;  %v5052_v0 = vunpack.i.h.bf16 %v5050_v35  ;;  %v5051_v9 = vunpack.i.l.bf16 %v5050_v35  ;;  %v2547_v18 = vsel %vm2542_vm0, %v2514_v58, %v5031_v47  ;;  %v2548_v63 = vsel %vm2542_vm0, %v2515_v56, %v5032_v46  ;;  %v11309_v35 = vld [vmem:[#allocation132_spill] sm:$0xff] }
 0x1be   :  { %v5070_v10 = vpop.permute.xlu0 %5069  ;;  %v5062_v23 = vunpack.i.h.bf16 %v5060_v7  ;;  %v5061_v8 = vunpack.i.l.bf16 %v5060_v7  ;;  %v11308_v32 = vpack.i.bf16 %v11306_v50, %v11307_v25  ;;  %v5047_v34 = vunpack.i.h.bf16 %v8692_v43 }
 0x1bf   :  { %v5046_v21 = vunpack.i.l.bf16 %v8692_v43  ;;  %v5072_v27 = vunpack.i.h.bf16 %v5070_v10  ;;  %v5071_v38 = vunpack.i.l.bf16 %v5070_v10  ;;  %v11311_v39 = vpack.i.bf16 %v11309_v35, %v11310_v5  ;;  %v8787_v62 = vpop.permute.xlu1 %5084 }
 0x1c0   :  { %5364 = vrot.lane.b32.xlu1 %v11308_v32, %s5602_s15  ;;  %v2580_v15 = vsel %vm2575_vm1, %v2547_v18, %v5041_v52  ;;  %v2581_v44 = vsel %vm2575_vm1, %v2548_v63, %v5042_v49  ;;  %v5057_v12 = vunpack.i.h.bf16 %v8717_v11  ;;  %v5056_v17 = vunpack.i.l.bf16 %v8717_v11  ;;  %v11313_v11 = vld [vmem:[#allocation164_spill] sm:$0xff] }
 0x1c1   :  { %5359 = vrot.lane.b32.xlu0 %v11311_v39, %s5602_s15  ;;  %v2613_v4 = vsel %vm2608_vm2, %v2580_v15, %v5051_v9  ;;  %v2614_v43 = vsel %vm2608_vm2, %v2581_v44, %v5052_v0  ;;  %v5067_v40 = vunpack.i.h.bf16 %v8743_v30  ;;  %v5066_v7 = vunpack.i.l.bf16 %v8743_v30  ;;  %v11315_v30 = vld [vmem:[#allocation165_spill] sm:$0xff] }
 0x1c2   :  { %v5080_v37 = vpop.permute.xlu0 %5079  ;;  %v2646_v14 = vsel %vm2641_vm3, %v2613_v4, %v5061_v8  ;;  %v2647_v46 = vsel %vm2641_vm3, %v2614_v43, %v5062_v23  ;;  %v11314_v6 = vpack.i.bf16 %v11312_v28, %v11313_v11  ;;  %v5077_v29 = vunpack.i.h.bf16 %v5075_v31  ;;  %v11319_v8 = vld [vmem:[#allocation202_spill] sm:$0xff]  ;;  %v11324_v39 = vld [vmem:[#allocation49_spill] sm:$0xff]  ;;  %v11334_v28 = vld [vmem:[#allocation55_spill] sm:$0xff] }
 0x1c3   :  { %v5082_v47 = vunpack.i.h.bf16 %v5080_v37  ;;  %v5081_v42 = vunpack.i.l.bf16 %v5080_v37  ;;  %v5076_v22 = vunpack.i.l.bf16 %v5075_v31  ;;  %v2679_v19 = vsel %vm2674_vm4, %v2646_v14, %v5071_v38  ;;  %v8809_v52 = vpop.permute.xlu1 %5094  ;;  %v11326_v4 = vld [vmem:[#allocation242_spill] sm:$0xff]  ;;  %v11330_v14 = vld [vmem:[#allocation244_spill] sm:$0xff] }
 0x1c4   :  { %5374 = vrot.lane.b32.xlu1 %v11314_v6, %s5603_s18  ;;  %v2680_v61 = vsel %vm2674_vm4, %v2647_v46, %v5072_v27  ;;  %v11317_v54 = vpack.i.bf16 %v11315_v30, %v11316_v55  ;;  %v2582_v51 = vsel %vm2575_vm1, %v2549_v60, %v5046_v21  ;;  %v2583_v58 = vsel %vm2575_vm1, %v2550_v24, %v5047_v34  ;;  %v11318_v24 = vld [vmem:[#allocation203_spill] sm:$0xff]  ;;  %v11321_v34 = vld [vmem:[#allocation204_spill] sm:$0xff]  ;;  %v11322_v21 = vld [vmem:[#allocation205_spill] sm:$0xff] }
 0x1c5   :  { %v2712_v56 = vsel %vm10669_vm7, %v2679_v19, %v5081_v42  ;;  %v2713_v49 = vsel %vm10669_vm7, %v2680_v61, %v5082_v47  ;;  %v2615_v31 = vsel %vm2608_vm2, %v2582_v51, %v5056_v17  ;;  %v2616_v0 = vsel %vm2608_vm2, %v2583_v58, %v5057_v12  ;;  %v11325_v17 = vld [vmem:[#allocation243_spill] sm:$0xff]  ;;  %v11331_v46 = vld [vmem:[#allocation245_spill] sm:$0xff] }
 0x1c6   :  { %5369 = vrot.lane.b32.xlu0 %v11317_v54, %s5603_s18  ;;  %v5090_v9 = vpop.permute.xlu0 %5089  ;;  %v2742_v10 = vpack.c.bf16 %v2713_v49, %v2712_v56  ;;  %v2648_v18 = vsel %vm2641_vm3, %v2615_v31, %v5066_v7  ;;  %v2649_v63 = vsel %vm2641_vm3, %v2616_v0, %v5067_v40  ;;  %v11320_v50 = vpack.i.bf16 %v11318_v24, %v11319_v8  ;;  %v11328_v40 = vld [vmem:[#allocation64_spill] sm:$0xff]  ;;  %v11329_v7 = vld [vmem:[#allocation63_spill] sm:$0xff]  ;;  %v11333_v42 = vld [vmem:[#allocation269_spill] sm:$0xff] }
 0x1c7   :  { %v5092_v23 = vunpack.i.h.bf16 %v5090_v9  ;;  %v5091_v60 = vunpack.i.l.bf16 %v5090_v9  ;;  %v2681_v25 = vsel %vm2674_vm4, %v2648_v18, %v5076_v22  ;;  %v2682_v32 = vsel %vm2674_vm4, %v2649_v63, %v5077_v29  ;;  %v8828_v5 = vpop.permute.xlu1 %5104  ;;  %v11337_v61 = vld [vmem:[#allocation173_spill] sm:$0xff]  ;;  %v11338_v54 = vld [vmem:[#allocation56_spill] sm:$0xff]  ;;  %v11339_v51 = vld [vmem:[#allocation59_spill] sm:$0xff] }
 0x1c8   :  { %5384 = vrot.lane.b32.xlu1 %v11320_v50, %s5604_s1  ;;  %v11323_v27 = vpack.i.bf16 %v11321_v34, %v11322_v21  ;;  %4324 = vmatprep.mubr.msk.bf16.mxu0 %vm2788_vm9, %v2742_v10  ;;  %v2143_v15 = vrot.slane %v11324_v39, 7  ;;  %v11327_v43 = vpack.i.bf16 %v11325_v17, %v11326_v4  ;;  %v5403_v37 = vpack.i.bf16 %v11329_v7, %v11328_v40  ;;  %v11340_v56 = vld [vmem:[#allocation206_spill] sm:$0xff]  ;;  %v11342_v9 = vld [vmem:[#allocation231_spill] sm:$0xff]  ;;  %v11345_v34 = vld [vmem:[#allocation276_spill] sm:$0xff] }
 0x1c9   :  { %v2715_v38 = vsel %vm10669_vm7, %v2682_v32, %v5092_v23  ;;  %v2714_v35 = vsel %vm10669_vm7, %v2681_v25, %v5091_v60  ;;  %v11332_v47 = vpack.i.bf16 %v11330_v14, %v11331_v46  ;;  %v5398_v11 = vpack.i.bf16 %v11334_v28, %v11333_v42  ;;  %v11343_v23 = vld [vmem:[#allocation261_spill] sm:$0xff]  ;;  %v11344_v25 = vld [vmem:[#allocation27_spill] sm:$0xff] }
 0x1ca   :  { %5379 = vrot.lane.b32.xlu0 %v11323_v27, %s5604_s1  ;;  %v2743_v44 = vpack.c.bf16 %v2715_v38, %v2714_v35  ;;  %v8831_v12 = vpop.permute.xlu0 %5099  ;;  %v11335_v29 = vrot.slane %v11284_v26, 7  ;;  %vm11336_vm7 = vcmask 1040384   ;;  %v4392_v30 = vunpack.i.h.bf16 %v11337_v61  ;;  %v11341_v26 = vld [vmem:[#allocation267_spill] sm:$0xff] }
 0x1cb   :  { %v8846_v6 = vpop.permute.xlu1 %5114  ;;  %v4391_v55 = vunpack.i.l.bf16 %v11337_v61  ;;  %v5413_v58 = vpack.i.bf16 %v11339_v51, %v11338_v54  ;;  %v4472_v49 = vunpack.i.h.bf16 %v11340_v56  ;;  %v4471_v31 = vunpack.i.l.bf16 %v11340_v56  ;;  %v11350_v54 = vld [vmem:[#allocation72_spill] sm:$0xff] }
 0x1cc   :  { %5394 = vrot.lane.b32.xlu1 %v11327_v43, %s5605_s21  ;;  %4325 = vmatmul.mubr.msk.bf16.gmra.mrb[4].mxu0 %vm2788_vm9, %v2743_v44  ;;  %v2144_v22 = vsel %vm11336_vm7, %v11335_v29, %v2143_v15  ;;  %v4552_v10 = vunpack.i.h.bf16 %v11342_v9  ;;  %v4551_v18 = vunpack.i.l.bf16 %v11342_v9  ;;  %v4632_v60 = vunpack.i.h.bf16 %v11343_v23  ;;  %v11348_v29 = vld [vmem:[#allocation65_spill] sm:$0xff] }
 0x1cd   :  { %v5408_v0 = vpack.i.bf16 %v2144_v22, %v11341_v26  ;;  %v4631_v24 = vunpack.i.l.bf16 %v11343_v23  ;;  %v2255_v50 = vsel %vm2245_vm5, %v11122_v20, %v4392_v30  ;;  %v2254_v32 = vsel %vm2245_vm5, %v11344_v25, %v4391_v55  ;;  %v11346_v20 = vld [vmem:[#allocation12_spill] sm:$0xff] }
 0x1ce   :  { %5389 = vrot.lane.b32.xlu0 %v11332_v47, %s5605_s21  ;;  %v8851_v19 = vpop.permute.xlu0 %5109  ;;  %v4712_v21 = vunpack.i.h.bf16 %v11345_v34  ;;  %v4711_v27 = vunpack.i.l.bf16 %v11345_v34  ;;  %v2287_v38 = vsel %vm2278_vm6, %v2254_v32, %v4471_v31  ;;  %v2288_v35 = vsel %vm2278_vm6, %v2255_v50, %v4472_v49  ;;  %v11353_v50 = vld [vmem:[#allocation105_spill] sm:$0xff]  ;;  %v11354_v25 = vld [vmem:[#allocation104_spill] sm:$0xff] }
 0x1cf   :  { %v8864_v63 = vpop.permute.xlu1 %5124  ;;  %v2320_v39 = vsel %vm2311_vm8, %v2287_v38, %v4551_v18  ;;  %v2321_v15 = vsel %vm2311_vm8, %v2288_v35, %v4552_v10  ;;  %v4792_v44 = vunpack.i.h.bf16 %v11346_v20  ;;  %v4791_v17 = vunpack.i.l.bf16 %v11346_v20 }
 0x1d0   :  { %5404 = vrot.lane.b32.xlu1 %v5403_v37, %s5599_s27  ;;  %v2353_v43 = vsel %vm2344_vm10, %v2320_v39, %v4631_v24  ;;  %v2354_v40 = vsel %vm2344_vm10, %v2321_v15, %v4632_v60  ;;  %v4872_v7 = vunpack.i.h.bf16 %v8279_v53  ;;  %v4871_v37 = vunpack.i.l.bf16 %v8279_v53 }
 0x1d1   :  { %v2386_v46 = vsel %vm2377_vm11, %v2353_v43, %v4711_v27  ;;  %v2387_v47 = vsel %vm2377_vm11, %v2354_v40, %v4712_v21  ;;  %v5097_v42 = vunpack.i.h.bf16 %v8809_v52  ;;  %v5096_v28 = vunpack.i.l.bf16 %v8809_v52  ;;  %v11356_v27 = vld [vmem:[#allocation106_spill] sm:$0xff] }
 0x1d2   :  { %5399 = vrot.lane.b32.xlu0 %v5398_v11, %s5606_s22  ;;  %v8868_v8 = vpop.permute.xlu0 %5119  ;;  %v11347_v11 = vld [vmem:[#allocation66_spill] sm:$0xff]  ;;  %v5087_v61 = vunpack.i.h.bf16 %v8787_v62  ;;  %v5086_v30 = vunpack.i.l.bf16 %v8787_v62  ;;  %v5107_v53 = vunpack.i.h.bf16 %v8828_v5  ;;  %v5106_v55 = vunpack.i.l.bf16 %v8828_v5 }
 0x1d3   :  { %v8884_v4 = vpop.permute.xlu1 %5134  ;;  %v11349_v22 = vpack.i.bf16 %v11347_v11, %v11348_v29  ;;  %v2419_v52 = vsel %vm2410_vm12, %v2386_v46, %v4791_v17  ;;  %v2420_v49 = vsel %vm2410_vm12, %v2387_v47, %v4792_v44  ;;  %v5102_v31 = vunpack.i.h.bf16 %v8831_v12  ;;  %v11360_v11 = vld [vmem:[#allocation134_spill] sm:$0xff]  ;;  %vm11393_vm12 = vmmov %vm11336_vm7 }
 0x1d4   :  { %5414 = vrot.lane.b32.xlu1 %v5413_v58, %s5599_s27  ;;  %v11351_v58 = vld [vmem:[#allocation73_spill] sm:$0xff]  ;;  %v5101_v26 = vunpack.i.l.bf16 %v8831_v12  ;;  %v2452_v62 = vsel %vm2443_vm13, %v2419_v52, %v4871_v37  ;;  %v2453_v9 = vsel %vm2443_vm13, %v2420_v49, %v4872_v7  ;;  %v5117_v5 = vunpack.i.h.bf16 %v8846_v6 }
 0x1d5   :  { %v11352_v56 = vpack.i.bf16 %v11350_v54, %v11351_v58  ;;  %v5116_v10 = vunpack.i.l.bf16 %v8846_v6  ;;  %v2487_v23 = vsel %vm2476_vm14, %v8293_v13, %v5096_v28  ;;  %v2488_v60 = vsel %vm2476_vm14, %v8297_v48, %v5097_v42  ;;  %v11357_v48 = vld [vmem:[#allocation107_spill] sm:$0xff] }
 0x1d6   :  { %5409 = vrot.lane.b32.xlu0 %v5408_v0, %s5606_s22  ;;  %v5130_v14 = vpop.permute.xlu0 %5129  ;;  %v5112_v24 = vunpack.i.h.bf16 %v8851_v19  ;;  %v5111_v12 = vunpack.i.l.bf16 %v8851_v19  ;;  %v11355_v32 = vpack.i.bf16 %v11353_v50, %v11354_v25  ;;  %v2485_v34 = vsel %vm2476_vm14, %v2452_v62, %v5086_v30  ;;  %v11359_v28 = vld [vmem:[#allocation135_spill] sm:$0xff] }
 0x1d7   :  { %v8910_v0 = vpop.permute.xlu1 %5144  ;;  %v2486_v6 = vsel %vm2476_vm14, %v2453_v9, %v5087_v61  ;;  %v2520_v21 = vsel %vm2509_vm15, %v2487_v23, %v5106_v55  ;;  %v2521_v13 = vsel %vm2509_vm15, %v2488_v60, %v5107_v53  ;;  %v11358_v38 = vpack.i.bf16 %v11356_v27, %v11357_v48  ;;  %v11363_v53 = vld [vmem:[#allocation137_spill] sm:$0xff]  ;;  %v11365_v60 = vld [vmem:[#allocation170_spill] sm:$0xff] }
 0x1d8   :  { %5424 = vrot.lane.b32.xlu1 %v11349_v22, %s5600_s28  ;;  %v2518_v19 = vsel %vm2509_vm15, %v2485_v34, %v5101_v26  ;;  %v2519_v35 = vsel %vm2509_vm15, %v2486_v6, %v5102_v31  ;;  %v5122_v39 = vunpack.i.h.bf16 %v8868_v8  ;;  %v5121_v15 = vunpack.i.l.bf16 %v8868_v8  ;;  %v11369_v34 = vld [vmem:[#allocation172_spill] sm:$0xff] }
 0x1d9   :  { %v2553_v44 = vsel %vm2542_vm0, %v2520_v21, %v5116_v10  ;;  %v2554_v17 = vsel %vm2542_vm0, %v2521_v13, %v5117_v5  ;;  %v5132_v43 = vunpack.i.h.bf16 %v5130_v14  ;;  %v5131_v40 = vunpack.i.l.bf16 %v5130_v14  ;;  %v11362_v14 = vld [vmem:[#allocation136_spill] sm:$0xff] }
 0x1da   :  { %5419 = vrot.lane.b32.xlu0 %v11352_v56, %s5600_s28  ;;  %v5140_v18 = vpop.permute.xlu0 %5139  ;;  %v2551_v37 = vsel %vm2542_vm0, %v2518_v19, %v5111_v12  ;;  %v2552_v46 = vsel %vm2542_vm0, %v2519_v35, %v5112_v24  ;;  %v11361_v29 = vpack.i.bf16 %v11359_v28, %v11360_v11  ;;  %v5127_v8 = vunpack.i.h.bf16 %v8864_v63  ;;  %v11377_v28 = vld [vmem:[#allocation210_spill] sm:$0xff] }
 0x1db   :  { %v5155_v20 = vpop.permute.xlu1 %5154  ;;  %v5142_v47 = vunpack.i.h.bf16 %v5140_v18  ;;  %v5141_v42 = vunpack.i.l.bf16 %v5140_v18  ;;  %v5126_v22 = vunpack.i.l.bf16 %v8864_v63  ;;  %v11364_v55 = vpack.i.bf16 %v11362_v14, %v11363_v53 }
 0x1dc   :  { %5434 = vrot.lane.b32.xlu1 %v11355_v32, %s5601_s12  ;;  %v2584_v54 = vsel %vm2575_vm1, %v2551_v37, %v5121_v15  ;;  %v2585_v58 = vsel %vm2575_vm1, %v2552_v46, %v5122_v39  ;;  %v5137_v56 = vunpack.i.h.bf16 %v8884_v4  ;;  %v5136_v52 = vunpack.i.l.bf16 %v8884_v4  ;;  %v11366_v4 = vld [vmem:[#allocation169_spill] sm:$0xff] }
 0x1dd   :  { %v2617_v31 = vsel %vm2608_vm2, %v2584_v54, %v5131_v40  ;;  %v2618_v63 = vsel %vm2608_vm2, %v2585_v58, %v5132_v43  ;;  %v5147_v26 = vunpack.i.h.bf16 %v8910_v0  ;;  %v5146_v62 = vunpack.i.l.bf16 %v8910_v0  ;;  %v11368_v0 = vld [vmem:[#allocation171_spill] sm:$0xff]  ;;  %v11383_v54 = vld [vmem:[#allocation246_spill] sm:$0xff] }
 0x1de   :  { %5429 = vrot.lane.b32.xlu0 %v11358_v38, %s5601_s12  ;;  %v5150_v7 = vpop.permute.xlu0 %5149  ;;  %v2650_v5 = vsel %vm2641_vm3, %v2617_v31, %v5141_v42  ;;  %v2651_v10 = vsel %vm2641_vm3, %v2618_v63, %v5142_v47  ;;  %v11367_v24 = vpack.i.bf16 %v11365_v60, %v11366_v4  ;;  %v5157_v12 = vunpack.i.h.bf16 %v5155_v20  ;;  %v11376_v42 = vld [vmem:[#allocation209_spill] sm:$0xff]  ;;  %v11387_v63 = vld [vmem:[#allocation248_spill] sm:$0xff] }
 0x1df   :  { %v5152_v61 = vunpack.i.h.bf16 %v5150_v7  ;;  %v5151_v30 = vunpack.i.l.bf16 %v5150_v7  ;;  %v8956_v49 = vpop.permute.xlu1 %5164  ;;  %v5156_v50 = vunpack.i.l.bf16 %v5155_v20  ;;  %v11370_v6 = vpack.i.bf16 %v11368_v0, %v11369_v34 }
 0x1e0   :  { %5444 = vrot.lane.b32.xlu1 %v11361_v29, %s5602_s15  ;;  %v2586_v21 = vsel %vm2575_vm1, %v2553_v44, %v5126_v22  ;;  %v2587_v13 = vsel %vm2575_vm1, %v2554_v17, %v5127_v8  ;;  %vm11371_vm5 = vcmask 490496   ;;  %v11373_v44 = vld [vmem:[#allocation208_spill] sm:$0xff]  ;;  %v11374_v17 = vld [vmem:[#allocation207_spill] sm:$0xff]  ;;  %v11378_v11 = vpack.i.bf16 %v11376_v42, %v11377_v28  ;;  %v11403_v42 = vld [vmem:[#allocation70_spill] sm:$0xff] }
 0x1e1   :  { %v2683_v25 = vsel %vm2674_vm4, %v2650_v5, %v5151_v30  ;;  %v2684_v32 = vsel %vm2674_vm4, %v2651_v10, %v5152_v61  ;;  %vm11372_vm6 = vmmov %vm11371_vm5  ;;  %v2619_v19 = vsel %vm2608_vm2, %v2586_v21, %v5136_v52  ;;  %v2620_v35 = vsel %vm2608_vm2, %v2587_v13, %v5137_v56  ;;  %v11381_v61 = vld [vmem:[#allocation60_spill] sm:$0xff]  ;;  %v11385_v56 = vld [vmem:[#allocation74_spill] sm:$0xff] }
 0x1e2   :  { %5439 = vrot.lane.b32.xlu0 %v11364_v55, %s5602_s15  ;;  %v5160_v9 = vpop.permute.xlu0 %5159  ;;  %v2652_v20 = vsel %vm2641_vm3, %v2619_v19, %v5146_v62  ;;  %v2653_v43 = vsel %vm2641_vm3, %v2620_v35, %v5147_v26  ;;  %v11375_v37 = vpack.i.bf16 %v11373_v44, %v11374_v17  ;;  %vm11379_vm8 = vmmov %vm11371_vm5  ;;  %v2145_v30 = vrot.slane %v11381_v61, 7  ;;  %v11382_v55 = vld [vmem:[#allocation247_spill] sm:$0xff]  ;;  %v11388_v26 = vld [vmem:[#allocation249_spill] sm:$0xff] }
 0x1e3   :  { %v5162_v18 = vunpack.i.h.bf16 %v5160_v9  ;;  %v5161_v23 = vunpack.i.l.bf16 %v5160_v9  ;;  %v5175_v38 = vpop.permute.xlu1 %5174  ;;  %v2685_v46 = vsel %vm2674_vm4, %v2652_v20, %v5156_v50  ;;  %v2686_v47 = vsel %vm2674_vm4, %v2653_v43, %v5157_v12  ;;  %vm11380_vm11 = vmmov %vm11371_vm5  ;;  %v11386_v52 = vld [vmem:[#allocation71_spill] sm:$0xff]  ;;  %v11395_v12 = vld [vmem:[#allocation69_spill] sm:$0xff] }
 0x1e4   :  { %5454 = vrot.lane.b32.xlu1 %v11367_v24, %s5603_s18  ;;  %v11384_v58 = vpack.i.bf16 %v11382_v55, %v11383_v54  ;;  %v5483_v31 = vpack.i.bf16 %v11386_v52, %v11385_v56  ;;  %v11389_v62 = vpack.i.bf16 %v11387_v63, %v11388_v26  ;;  %v11390_v9 = vld [vmem:[#allocation271_spill] sm:$0xff]  ;;  %v11394_v24 = vld [vmem:[#allocation68_spill] sm:$0xff]  ;;  %v5177_v21 = vunpack.i.h.bf16 %v5175_v38  ;;  %v11400_v43 = vld [vmem:[#allocation78_spill] sm:$0xff] }
 0x1e5   :  { %v2716_v27 = vsel %vm11371_vm5, %v2683_v25, %v5161_v23  ;;  %v2717_v48 = vsel %vm11372_vm6, %v2684_v32, %v5162_v18  ;;  %v11391_v5 = vld [vmem:[#allocation67_spill] sm:$0xff]  ;;  %v11392_v23 = vrot.slane %v11339_v51, 7  ;;  %v5493_v50 = vpack.i.bf16 %v11395_v12, %v11394_v24  ;;  %v11396_v25 = vld [vmem:[#allocation270_spill] sm:$0xff]  ;;  %v11405_v61 = vld [vmem:[#allocation108_spill] sm:$0xff] }
 0x1e6   :  { %5449 = vrot.lane.b32.xlu0 %v11370_v6, %s5603_s18  ;;  %v2744_v39 = vpack.c.bf16 %v2717_v48, %v2716_v27  ;;  %v5170_v15 = vpop.permute.xlu0 %5169  ;;  %v5478_v10 = vpack.i.bf16 %v11391_v5, %v11390_v9  ;;  %v5176_v13 = vunpack.i.l.bf16 %v5175_v38  ;;  %v11397_v27 = vld [vmem:[#allocation77_spill] sm:$0xff]  ;;  %v11398_v48 = vld [vmem:[#allocation75_spill] sm:$0xff]  ;;  %v5167_v35 = vunpack.i.h.bf16 %v8956_v49  ;;  %v11407_v54 = vld [vmem:[#allocation110_spill] sm:$0xff] }
 0x1e7   :  { %v5172_v40 = vunpack.i.h.bf16 %v5170_v15  ;;  %v5171_v7 = vunpack.i.l.bf16 %v5170_v15  ;;  %v5185_v22 = vpop.permute.xlu1 %5184  ;;  %v2146_v60 = vsel %vm11393_vm12, %v11392_v23, %v2145_v30  ;;  %v11399_v19 = vpack.i.bf16 %v11397_v27, %v11398_v48  ;;  %v11411_v24 = vld [vmem:[#allocation138_spill] sm:$0xff]  ;;  %vm11422_vm13 = vmmov %vm11371_vm5 }
 0x1e8   :  { %5464 = vrot.lane.b32.xlu1 %v11375_v37, %s5604_s1  ;;  %4328 = vmatprep.mubr.msk.bf16.mxu0 %vm2788_vm9, %v2744_v39  ;;  %v5488_v32 = vpack.i.bf16 %v2146_v60, %v11396_v25  ;;  %v5166_v39 = vunpack.i.l.bf16 %v8956_v49  ;;  %v5187_v15 = vunpack.i.h.bf16 %v5185_v22  ;;  %v5186_v20 = vunpack.i.l.bf16 %v5185_v22  ;;  %v11404_v22 = vld [vmem:[#allocation109_spill] sm:$0xff]  ;;  %vm11423_vm7 = vmmov %vm11371_vm5 }
 0x1e9   :  { %v2719_v29 = vsel %vm11379_vm8, %v2686_v47, %v5172_v40  ;;  %v2718_v8 = vsel %vm11380_vm11, %v2685_v46, %v5171_v7  ;;  %v11401_v40 = vld [vmem:[#allocation79_spill] sm:$0xff]  ;;  %v2147_v28 = vrot.slane %v11403_v42, 7  ;;  %v2492_v49 = vsel %vm2476_vm14, %v8312_v2, %v5177_v21  ;;  %vm11431_vm5 = vmmov %vm11393_vm12  ;;  %v11437_v42 = vld [vmem:[#allocation253_spill] sm:$0xff] }
 0x1ea   :  { %5459 = vrot.lane.b32.xlu0 %v11378_v11, %s5604_s1  ;;  %v2745_v14 = vpack.c.bf16 %v2719_v29, %v2718_v8  ;;  %v5180_v53 = vpop.permute.xlu0 %5179  ;;  %v11402_v7 = vpack.i.bf16 %v11400_v43, %v11401_v40  ;;  %v2491_v11 = vsel %vm2476_vm14, %v8308_v16, %v5176_v13  ;;  %v11406_v30 = vpack.i.bf16 %v11404_v22, %v11405_v61  ;;  %v11408_v2 = vld [vmem:[#allocation111_spill] sm:$0xff]  ;;  %v11414_v13 = vld [vmem:[#allocation141_spill] sm:$0xff]  ;;  %vm11432_vm8 = vmmov %vm11372_vm6 }
 0x1eb   :  { %v5195_v18 = vpop.permute.xlu1 %5194  ;;  %v5182_v44 = vunpack.i.h.bf16 %v5180_v53  ;;  %v5181_v17 = vunpack.i.l.bf16 %v5180_v53  ;;  %v2490_v53 = vsel %vm2476_vm14, %v8320_v33, %v5167_v35  ;;  %v2524_v55 = vsel %vm2509_vm15, %v2491_v11, %v5186_v20  ;;  %v11420_v61 = vld [vmem:[#allocation177_spill] sm:$0xff]  ;;  %vm11442_vm11 = vmmov %vm11372_vm6 }
 0x1ec   :  { %5474 = vrot.lane.b32.xlu1 %v11384_v58, %s5605_s21  ;;  %4329 = vmatmul.mubr.msk.bf16.gmra.mrb[8].mxu0 %vm2788_vm9, %v2745_v14  ;;  %v5197_v38 = vunpack.i.h.bf16 %v5195_v18  ;;  %v5196_v46 = vunpack.i.l.bf16 %v5195_v18  ;;  %v2489_v14 = vsel %vm2476_vm14, %v8316_v1, %v5166_v39  ;;  %v2525_v16 = vsel %vm2509_vm15, %v2492_v49, %v5187_v15  ;;  %vm11443_vm12 = vmmov %vm11372_vm6 }
 0x1ed   :  { %v11409_v58 = vpack.i.bf16 %v11407_v54, %v11408_v2  ;;  %v2522_v56 = vsel %vm2509_vm15, %v2489_v14, %v5181_v17  ;;  %v2523_v52 = vsel %vm2509_vm15, %v2490_v53, %v5182_v44 }
 0x1ee   :  { %5469 = vrot.lane.b32.xlu0 %v11389_v62, %s5605_s21  ;;  %v5190_v4 = vpop.permute.xlu0 %5189  ;;  %v2557_v1 = vsel %vm2542_vm0, %v2524_v55, %v5196_v46  ;;  %v2558_v33 = vsel %vm2542_vm0, %v2525_v16, %v5197_v38 }
 0x1ef   :  { %v9017_v0 = vpop.permute.xlu1 %5204  ;;  %v5192_v29 = vunpack.i.h.bf16 %v5190_v4  ;;  %v5191_v8 = vunpack.i.l.bf16 %v5190_v4  ;;  %v11410_v4 = vld [vmem:[#allocation139_spill] sm:$0xff] }
 0x1f0   :  { %5484 = vrot.lane.b32.xlu1 %v5483_v31, %s5599_s27  ;;  %v5207_v25 = vunpack.i.h.bf16 %v9017_v0 }
 0x1f1   :  { %v2556_v18 = vsel %vm2542_vm0, %v2523_v52, %v5192_v29 }
 0x1f2   :  { %5479 = vrot.lane.b32.xlu0 %v5478_v10, %s5606_s22  ;;  %v5200_v34 = vpop.permute.xlu0 %5199  ;;  %v2555_v10 = vsel %vm2542_vm0, %v2522_v56, %v5191_v8  ;;  %v2591_v53 = vsel %vm2575_vm1, %v2558_v33, %v5207_v25  ;;  %v11425_v33 = vld [vmem:[#allocation211_spill] sm:$0xff] }
 0x1f3   :  { %v9021_v51 = vpop.permute.xlu1 %5214  ;;  %v5202_v31 = vunpack.i.h.bf16 %v5200_v34  ;;  %v5201_v63 = vunpack.i.l.bf16 %v5200_v34 }
 0x1f4   :  { %5494 = vrot.lane.b32.xlu1 %v5493_v50, %s5599_s27  ;;  %v11412_v50 = vpack.i.bf16 %v11410_v4, %v11411_v24  ;;  %v5217_v35 = vunpack.i.h.bf16 %v9021_v51  ;;  %v5216_v39 = vunpack.i.l.bf16 %v9021_v51  ;;  %v11417_v51 = vld [vmem:[#allocation174_spill] sm:$0xff]  ;;  %v11430_v4 = vrot.slane %v11395_v12, 7 }
 0x1f5   :  { %v2588_v48 = vsel %vm2575_vm1, %v2555_v10, %v5201_v63 }
 0x1f6   :  { %5489 = vrot.lane.b32.xlu0 %v5488_v32, %s5606_s22  ;;  %v5210_v6 = vpop.permute.xlu0 %5209  ;;  %v5206_v32 = vunpack.i.l.bf16 %v9017_v0  ;;  %v2148_v24 = vsel %vm11431_vm5, %v11430_v4, %v2147_v28  ;;  %v11440_v28 = vld [vmem:[#allocation275_spill] sm:$0xff]  ;;  %vm11448_vm5 = vmmov %vm11372_vm6 }
 0x1f7   :  { %v9033_v37 = vpop.permute.xlu1 %5224  ;;  %v5212_v62 = vunpack.i.h.bf16 %v5210_v6  ;;  %v5211_v9 = vunpack.i.l.bf16 %v5210_v6  ;;  %v11413_v6 = vld [vmem:[#allocation140_spill] sm:$0xff] }
 0x1f8   :  { %5504 = vrot.lane.b32.xlu1 %v11399_v19, %s5600_s28  ;;  %v11415_v27 = vpack.i.bf16 %v11413_v6, %v11414_v13  ;;  %v2589_v19 = vsel %vm2575_vm1, %v2556_v18, %v5202_v31  ;;  %v5227_v43 = vunpack.i.h.bf16 %v9033_v37  ;;  %v5226_v40 = vunpack.i.l.bf16 %v9033_v37  ;;  %v11419_v37 = vld [vmem:[#allocation176_spill] sm:$0xff]  ;;  %v11427_v18 = vld [vmem:[#allocation213_spill] sm:$0xff]  ;;  %v11434_v13 = vld [vmem:[#allocation251_spill] sm:$0xff] }
 0x1f9   :  { %v2621_v20 = vsel %vm2608_vm2, %v2588_v48, %v5211_v9  ;;  %v2622_v0 = vsel %vm2608_vm2, %v2589_v19, %v5212_v62  ;;  %v2590_v14 = vsel %vm2575_vm1, %v2557_v1, %v5206_v32  ;;  %v11424_v1 = vld [vmem:[#allocation212_spill] sm:$0xff]  ;;  %v11436_v48 = vld [vmem:[#allocation274_spill] sm:$0xff] }
 0x1fa   :  { %5499 = vrot.lane.b32.xlu0 %v11402_v7, %s5600_s28  ;;  %v5220_v47 = vpop.permute.xlu0 %5219  ;;  %v2623_v2 = vsel %vm2608_vm2, %v2590_v14, %v5216_v39  ;;  %v11426_v9 = vpack.i.bf16 %v11424_v1, %v11425_v33  ;;  %v11433_v6 = vld [vmem:[#allocation252_spill] sm:$0xff]  ;;  %v5563_v19 = vpack.i.bf16 %v2148_v24, %v11436_v48  ;;  %v11441_v39 = vld [vmem:[#allocation273_spill] sm:$0xff] }
 0x1fb   :  { %v5222_v23 = vunpack.i.h.bf16 %v5220_v47  ;;  %v5221_v60 = vunpack.i.l.bf16 %v5220_v47  ;;  %v11416_v47 = vld [vmem:[#allocation175_spill] sm:$0xff]  ;;  %v2656_v31 = vsel %vm2641_vm3, %v2623_v2, %v5226_v40 }
 0x1fc   :  { %5514 = vrot.lane.b32.xlu1 %v11406_v30, %s5601_s12  ;;  %v11418_v11 = vpack.i.bf16 %v11416_v47, %v11417_v51  ;;  %v11421_v30 = vpack.i.bf16 %v11419_v37, %v11420_v61 }
 0x1fd   :  { %v5235_v26 = vpop.permute.xlu1 %5234  ;;  %v2654_v44 = vsel %vm2641_vm3, %v2621_v20, %v5221_v60  ;;  %v2655_v17 = vsel %vm2641_vm3, %v2622_v0, %v5222_v23  ;;  %v11428_v23 = vld [vmem:[#allocation214_spill] sm:$0xff]  ;;  %v5558_v20 = vpack.i.bf16 %v11441_v39, %v11440_v28 }
 0x1fe   :  { %5509 = vrot.lane.b32.xlu0 %v11409_v58, %s5601_s12  ;;  %v5230_v5 = vpop.permute.xlu0 %5229  ;;  %v5237_v49 = vunpack.i.h.bf16 %v5235_v26  ;;  %v5236_v29 = vunpack.i.l.bf16 %v5235_v26  ;;  %v2624_v58 = vsel %vm2608_vm2, %v2591_v53, %v5217_v35  ;;  %v11429_v60 = vpack.i.bf16 %v11427_v18, %v11428_v23  ;;  %v11438_v35 = vld [vmem:[#allocation255_spill] sm:$0xff] }
 0x1ff   :  { %v5232_v34 = vunpack.i.h.bf16 %v5230_v5  ;;  %v5231_v21 = vunpack.i.l.bf16 %v5230_v5  ;;  %v2657_v63 = vsel %vm2641_vm3, %v2624_v58, %v5227_v43  ;;  %v11439_v12 = vpack.i.bf16 %v11437_v42, %v11438_v35 }
 0x200   :  { %5524 = vrot.lane.b32.xlu1 %v11412_v50, %s5602_s15  ;;  %v2689_v5 = vsel %vm2674_vm4, %v2656_v31, %v5236_v29  ;;  %v2690_v10 = vsel %vm2674_vm4, %v2657_v63, %v5237_v49 }
 0x201   :  { %v9074_v15 = vpop.permute.xlu1 %5244  ;;  %v2687_v8 = vsel %vm2674_vm4, %v2654_v44, %v5231_v21  ;;  %v2688_v22 = vsel %vm2674_vm4, %v2655_v17, %v5232_v34 }
 0x202   :  { %5519 = vrot.lane.b32.xlu0 %v11415_v27, %s5602_s15  ;;  %v5240_v7 = vpop.permute.xlu0 %5239  ;;  %v11435_v27 = vpack.i.bf16 %v11433_v6, %v11434_v13  ;;  %v5247_v47 = vunpack.i.h.bf16 %v9074_v15  ;;  %v5246_v51 = vunpack.i.l.bf16 %v9074_v15 }
 0x203   :  { %v5242_v38 = vunpack.i.h.bf16 %v5240_v7  ;;  %v5241_v46 = vunpack.i.l.bf16 %v5240_v7 }
 0x204   :  { %5534 = vrot.lane.b32.xlu1 %v11418_v11, %s5603_s18  ;;  %v2494_v15 = vsel %vm2476_vm14, %v8341_v57, %v5247_v47 }
 0x205   :  { %v2720_v55 = vsel %vm11422_vm13, %v2687_v8, %v5241_v46  ;;  %v2721_v16 = vsel %vm11423_vm7, %v2688_v22, %v5242_v38  ;;  %v5255_v54 = vpop.permute.xlu1 %5254  ;;  %vm11444_vm13 = vmmov %vm11372_vm6 }
 0x206   :  { %5529 = vrot.lane.b32.xlu0 %v11421_v30, %s5603_s18  ;;  %v2746_v56 = vpack.c.bf16 %v2721_v16, %v2720_v55  ;;  %v5250_v52 = vpop.permute.xlu0 %5249  ;;  %v5257_v38 = vunpack.i.h.bf16 %v5255_v54  ;;  %v5256_v46 = vunpack.i.l.bf16 %v5255_v54  ;;  %v2493_v54 = vsel %vm2476_vm14, %v8337_v3, %v5246_v51  ;;  %vm11445_vm7 = vmmov %vm11372_vm6 }
 0x207   :  { %v5252_v26 = vunpack.i.h.bf16 %v5250_v52  ;;  %v5251_v62 = vunpack.i.l.bf16 %v5250_v52 }
 0x208   :  { %5544 = vrot.lane.b32.xlu1 %v11426_v9, %s5604_s1  ;;  %4332 = vmatprep.mubr.msk.bf16.mxu0 %vm2788_vm9, %v2746_v56  ;;  %v2495_v14 = vsel %vm2476_vm14, %v8329_v59, %v5256_v46  ;;  %v2496_v53 = vsel %vm2476_vm14, %v8333_v45, %v5257_v38 }
 0x209   :  { %v2723_v50 = vsel %vm11372_vm6, %v2690_v10, %v5252_v26  ;;  %v2722_v25 = vsel %vm11432_vm8, %v2689_v5, %v5251_v62  ;;  %v5265_v32 = vpop.permute.xlu1 %5264  ;;  %vm11449_vm6 = vmmov %vm11448_vm5 }
 0x20a   :  { %5539 = vrot.lane.b32.xlu0 %v11429_v60, %s5604_s1  ;;  %v2747_v34 = vpack.c.bf16 %v2723_v50, %v2722_v25  ;;  %v5260_v21 = vpop.permute.xlu0 %5259  ;;  %v5267_v11 = vunpack.i.h.bf16 %v5265_v32  ;;  %v5266_v49 = vunpack.i.l.bf16 %v5265_v32  ;;  %vm11450_vm8 = vmmov %vm11448_vm5 }
 0x20b   :  { %v5262_v29 = vunpack.i.h.bf16 %v5260_v21  ;;  %v5261_v8 = vunpack.i.l.bf16 %v5260_v21 }
 0x20c   :  { %5554 = vrot.lane.b32.xlu1 %v11435_v27, %s5605_s21  ;;  %4333 = vmatmul.mubr.msk.bf16.gmra.mrb[12].mxu0 %vm2788_vm9, %v2747_v34  ;;  %v2528_v2 = vsel %vm2509_vm15, %v2495_v14, %v5266_v49  ;;  %v2529_v58 = vsel %vm2509_vm15, %v2496_v53, %v5267_v11 }
 0x20d   :  { %v5275_v0 = vpop.permute.xlu1 %5274  ;;  %v2526_v56 = vsel %vm2509_vm15, %v2493_v54, %v5261_v8  ;;  %v2527_v52 = vsel %vm2509_vm15, %v2494_v15, %v5262_v29 }
 0x20e   :  { %5549 = vrot.lane.b32.xlu0 %v11439_v12, %s5605_s21  ;;  %v5270_v43 = vpop.permute.xlu0 %5269  ;;  %v5277_v37 = vunpack.i.h.bf16 %v5275_v0  ;;  %v5276_v61 = vunpack.i.l.bf16 %v5275_v0 }
 0x20f   :  { %v5272_v55 = vunpack.i.h.bf16 %v5270_v43  ;;  %v5271_v16 = vunpack.i.l.bf16 %v5270_v43 }
 0x210   :  { %5564 = vrot.lane.b32.xlu1 %v5563_v19, %s5606_s22  ;;  %v2561_v45 = vsel %vm2542_vm0, %v2528_v2, %v5276_v61  ;;  %v2562_v26 = vsel %vm2542_vm0, %v2529_v58, %v5277_v37 }
 0x211   :  { %v9132_v40 = vpop.permute.xlu1 %5284  ;;  %v2559_v57 = vsel %vm2542_vm0, %v2526_v56, %v5271_v16  ;;  %v2560_v33 = vsel %vm2542_vm0, %v2527_v52, %v5272_v55 }
 0x212   :  { %5559 = vrot.lane.b32.xlu0 %v5558_v20, %s5606_s22  ;;  %v5280_v7 = vpop.permute.xlu0 %5279  ;;  %v5287_v10 = vunpack.i.h.bf16 %v9132_v40  ;;  %v5286_v18 = vunpack.i.l.bf16 %v9132_v40 }
 0x213   :  { %v5282_v59 = vunpack.i.h.bf16 %v5280_v7  ;;  %v5281_v31 = vunpack.i.l.bf16 %v5280_v7 }
 0x214   :  { %v2594_v0 = vsel %vm2575_vm1, %v2561_v45, %v5286_v18  ;;  %v2595_v43 = vsel %vm2575_vm1, %v2562_v26, %v5287_v10 }
 0x215   :  { %v9134_v44 = vpop.permute.xlu1 %5294  ;;  %v2592_v4 = vsel %vm2575_vm1, %v2559_v57, %v5281_v31  ;;  %v2593_v24 = vsel %vm2575_vm1, %v2560_v33, %v5282_v59 }
 0x216   :  { %v5290_v17 = vpop.permute.xlu0 %5289  ;;  %v5297_v50 = vunpack.i.h.bf16 %v9134_v44  ;;  %v5296_v25 = vunpack.i.l.bf16 %v9134_v44 }
 0x217   :  { %v5292_v62 = vunpack.i.h.bf16 %v5290_v17  ;;  %v5291_v3 = vunpack.i.l.bf16 %v5290_v17 }
 0x218   :  { %v2627_v17 = vsel %vm2608_vm2, %v2594_v0, %v5296_v25  ;;  %v2628_v38 = vsel %vm2608_vm2, %v2595_v43, %v5297_v50 }
 0x219   :  { %v5305_v22 = vpop.permute.xlu1 %5304  ;;  %v2625_v34 = vsel %vm2608_vm2, %v2592_v4, %v5291_v3  ;;  %v2626_v21 = vsel %vm2608_vm2, %v2593_v24, %v5292_v62  ;;  %v11447_v4 = vld [vmem:[#allocation80_spill] sm:$0xff] }
 0x21a   :  { %v5300_v30 = vpop.permute.xlu0 %5299  ;;  %v5307_v6 = vunpack.i.h.bf16 %v5305_v22  ;;  %v5306_v13 = vunpack.i.l.bf16 %v5305_v22 }
 0x21b   :  { %v5302_v9 = vunpack.i.h.bf16 %v5300_v30  ;;  %v5301_v5 = vunpack.i.l.bf16 %v5300_v30 }
 0x21c   :  { %v2660_v51 = vsel %vm2641_vm3, %v2627_v17, %v5306_v13  ;;  %v2661_v11 = vsel %vm2641_vm3, %v2628_v38, %v5307_v6 }
 0x21d   :  { %v5315_v63 = vpop.permute.xlu1 %5314  ;;  %v2658_v48 = vsel %vm2641_vm3, %v2625_v34, %v5301_v5  ;;  %v2659_v19 = vsel %vm2641_vm3, %v2626_v21, %v5302_v9 }
 0x21e   :  { %v5310_v1 = vpop.permute.xlu0 %5309  ;;  %v5317_v12 = vunpack.i.h.bf16 %v5315_v63  ;;  %v5316_v28 = vunpack.i.l.bf16 %v5315_v63 }
 0x21f   :  { %v5312_v23 = vunpack.i.h.bf16 %v5310_v1  ;;  %v5311_v60 = vunpack.i.l.bf16 %v5310_v1 }
 0x220   :  { %v2693_v8 = vsel %vm2674_vm4, %v2660_v51, %v5316_v28  ;;  %v2694_v22 = vsel %vm2674_vm4, %v2661_v11, %v5317_v12 }
 0x221   :  { %v5325_v32 = vpop.permute.xlu1 %5324  ;;  %v2691_v39 = vsel %vm2674_vm4, %v2658_v48, %v5311_v60  ;;  %v2692_v20 = vsel %vm2674_vm4, %v2659_v19, %v5312_v23  ;;  %v11446_v23 = vld [vmem:[#allocation81_spill] sm:$0xff] }
 0x222   :  { %v5320_v27 = vpop.permute.xlu0 %5319  ;;  %v5327_v59 = vunpack.i.h.bf16 %v5325_v32  ;;  %v5326_v31 = vunpack.i.l.bf16 %v5325_v32 }
 0x223   :  { %v5322_v42 = vunpack.i.h.bf16 %v5320_v27  ;;  %v5321_v35 = vunpack.i.l.bf16 %v5320_v27 }
 0x224   :  { %v2497_v60 = vsel %vm2476_vm14, %v11446_v23, %v5326_v31  ;;  %v2498_v24 = vsel %vm2476_vm14, %v11447_v4, %v5327_v59 }
 0x225   :  { %v2724_v40 = vsel %vm11442_vm11, %v2691_v39, %v5321_v35  ;;  %v2725_v7 = vsel %vm11443_vm12, %v2692_v20, %v5322_v42  ;;  %v5335_v44 = vpop.permute.xlu1 %5334  ;;  %vm11451_vm11 = vmmov %vm11448_vm5 }
 0x226   :  { %v2748_v46 = vpack.c.bf16 %v2725_v7, %v2724_v40  ;;  %v5330_v47 = vpop.permute.xlu0 %5329  ;;  %v5337_v56 = vunpack.i.h.bf16 %v5335_v44  ;;  %v5336_v52 = vunpack.i.l.bf16 %v5335_v44  ;;  %vm11456_vm12 = vmmov %vm11448_vm5 }
 0x227   :  { %v5332_v49 = vunpack.i.h.bf16 %v5330_v47  ;;  %v5331_v29 = vunpack.i.l.bf16 %v5330_v47 }
 0x228   :  { %4336 = vmatprep.mubr.msk.bf16.mxu0 %vm2788_vm9, %v2748_v46  ;;  %v2499_v9 = vsel %vm2476_vm14, %v8353_v41, %v5336_v52  ;;  %v2500_v5 = vsel %vm2476_vm14, %v8357_v36, %v5337_v56 }
 0x229   :  { %v2727_v37 = vsel %vm11444_vm13, %v2694_v22, %v5332_v49  ;;  %v2726_v61 = vsel %vm11445_vm7, %v2693_v8, %v5331_v29  ;;  %v5345_v30 = vpop.permute.xlu1 %5344  ;;  %vm11457_vm13 = vmmov %vm11448_vm5 }
 0x22a   :  { %v2749_v14 = vpack.c.bf16 %v2727_v37, %v2726_v61  ;;  %v5340_v53 = vpop.permute.xlu0 %5339  ;;  %v5347_v63 = vunpack.i.h.bf16 %v5345_v30  ;;  %v5346_v45 = vunpack.i.l.bf16 %v5345_v30  ;;  %vm11458_vm7 = vmmov %vm11448_vm5 }
 0x22b   :  { %v5342_v26 = vunpack.i.h.bf16 %v5340_v53  ;;  %v5341_v62 = vunpack.i.l.bf16 %v5340_v53 }
 0x22c   :  { %4337 = vmatmul.mubr.msk.bf16.gmra.mrb[16].mxu0 %vm2788_vm9, %v2749_v14  ;;  %v2532_v50 = vsel %vm2509_vm15, %v2499_v9, %v5346_v45  ;;  %v2533_v25 = vsel %vm2509_vm15, %v2500_v5, %v5347_v63 }
 0x22d   :  { %v2530_v32 = vsel %vm2509_vm15, %v2497_v60, %v5341_v62  ;;  %v2531_v34 = vsel %vm2509_vm15, %v2498_v24, %v5342_v26 }
 0x22e   :  { %v5355_v55 = vpop.permute.xlu1 %5354 }
 0x22f   :  { %v5350_v16 = vpop.permute.xlu0 %5349  ;;  %v5357_v1 = vunpack.i.h.bf16 %v5355_v55  ;;  %v5356_v57 = vunpack.i.l.bf16 %v5355_v55 }
 0x230   :  { %v5352_v10 = vunpack.i.h.bf16 %v5350_v16  ;;  %v5351_v18 = vunpack.i.l.bf16 %v5350_v16 }
 0x231   :  { %v2565_v36 = vsel %vm2542_vm0, %v2532_v50, %v5356_v57  ;;  %v2566_v13 = vsel %vm2542_vm0, %v2533_v25, %v5357_v1 }
 0x232   :  { %v9180_v54 = vpop.permute.xlu1 %5364  ;;  %v2563_v42 = vsel %vm2542_vm0, %v2530_v32, %v5351_v18  ;;  %v2564_v35 = vsel %vm2542_vm0, %v2531_v34, %v5352_v10 }
 0x233   :  { %v5360_v15 = vpop.permute.xlu0 %5359  ;;  %v5367_v39 = vunpack.i.h.bf16 %v9180_v54  ;;  %v5366_v20 = vunpack.i.l.bf16 %v9180_v54 }
 0x234   :  { %v5362_v41 = vunpack.i.h.bf16 %v5360_v15  ;;  %v5361_v21 = vunpack.i.l.bf16 %v5360_v15 }
 0x235   :  { %v2598_v55 = vsel %vm2575_vm1, %v2565_v36, %v5366_v20  ;;  %v2599_v16 = vsel %vm2575_vm1, %v2566_v13, %v5367_v39 }
 0x236   :  { %v9182_v2 = vpop.permute.xlu1 %5374  ;;  %v2596_v40 = vsel %vm2575_vm1, %v2563_v42, %v5361_v21  ;;  %v2597_v7 = vsel %vm2575_vm1, %v2564_v35, %v5362_v41  ;;  %v11452_v42 = vld [vmem:[#allocation82_spill] sm:$0xff] }
 0x237   :  { %v5377_v44 = vunpack.i.h.bf16 %v9182_v2  ;;  %v5376_v17 = vunpack.i.l.bf16 %v9182_v2 }
 0x238   :  { %v5370_v58 = vpop.permute.xlu0 %5369 }
 0x239   :  { %v5372_v27 = vunpack.i.h.bf16 %v5370_v58  ;;  %v5371_v48 = vunpack.i.l.bf16 %v5370_v58  ;;  %v2631_v58 = vsel %vm2608_vm2, %v2598_v55, %v5376_v17  ;;  %v2632_v56 = vsel %vm2608_vm2, %v2599_v16, %v5377_v44 }
 0x23a   :  { %v5385_v3 = vpop.permute.xlu1 %5384 }
 0x23b   :  { %v2629_v46 = vsel %vm2608_vm2, %v2596_v40, %v5371_v48  ;;  %v2630_v47 = vsel %vm2608_vm2, %v2597_v7, %v5372_v27  ;;  %v5387_v51 = vunpack.i.h.bf16 %v5385_v3  ;;  %v5386_v11 = vunpack.i.l.bf16 %v5385_v3  ;;  %v11455_v40 = vld [vmem:[#allocation15_spill] sm:$0xff] }
 0x23c   :  { %v5380_v33 = vpop.permute.xlu0 %5379 }
 0x23d   :  { %v5382_v12 = vunpack.i.h.bf16 %v5380_v33  ;;  %v5381_v28 = vunpack.i.l.bf16 %v5380_v33  ;;  %v2664_v31 = vsel %vm2641_vm3, %v2631_v58, %v5386_v11  ;;  %v2665_v63 = vsel %vm2641_vm3, %v2632_v56, %v5387_v51 }
 0x23e   :  { %v5395_v6 = vpop.permute.xlu1 %5394 }
 0x23f   :  { %v2662_v29 = vsel %vm2641_vm3, %v2629_v46, %v5381_v28  ;;  %v2663_v8 = vsel %vm2641_vm3, %v2630_v47, %v5382_v12  ;;  %v5397_v61 = vunpack.i.h.bf16 %v5395_v6  ;;  %v5396_v30 = vunpack.i.l.bf16 %v5395_v6  ;;  %v11453_v12 = vld [vmem:[#allocation83_spill] sm:$0xff] }
 0x240   :  { %v5390_v19 = vpop.permute.xlu0 %5389 }
 0x241   :  { %v5392_v0 = vunpack.i.h.bf16 %v5390_v19  ;;  %v5391_v43 = vunpack.i.l.bf16 %v5390_v19  ;;  %v2697_v62 = vsel %vm2674_vm4, %v2664_v31, %v5396_v30  ;;  %v2698_v3 = vsel %vm2674_vm4, %v2665_v63, %v5397_v61 }
 0x242   :  { %v5405_v38 = vpop.permute.xlu1 %5404 }
 0x243   :  { %v2695_v14 = vsel %vm2674_vm4, %v2662_v29, %v5391_v43  ;;  %v2696_v53 = vsel %vm2674_vm4, %v2663_v8, %v5392_v0  ;;  %v5407_v32 = vunpack.i.h.bf16 %v5405_v38  ;;  %v5406_v34 = vunpack.i.l.bf16 %v5405_v38  ;;  %v11454_v0 = vld [vmem:[#allocation7_spill] sm:$0xff] }
 0x244   :  { %v5400_v49 = vpop.permute.xlu0 %5399 }
 0x245   :  { %v5402_v22 = vunpack.i.h.bf16 %v5400_v49  ;;  %v5401_v37 = vunpack.i.l.bf16 %v5400_v49  ;;  %v2501_v43 = vsel %vm2476_vm14, %v11454_v0, %v5406_v34  ;;  %v2502_v7 = vsel %vm2476_vm14, %v11455_v40, %v5407_v32 }
 0x246   :  { %v5415_v2 = vpop.permute.xlu1 %5414 }
 0x247   :  { %v2728_v54 = vsel %vm11448_vm5, %v2695_v14, %v5401_v37  ;;  %v2729_v15 = vsel %vm11449_vm6, %v2696_v53, %v5402_v22  ;;  %v5417_v50 = vunpack.i.h.bf16 %v5415_v2  ;;  %v5416_v25 = vunpack.i.l.bf16 %v5415_v2 }
 0x248   :  { %v2750_v52 = vpack.c.bf16 %v2729_v15, %v2728_v54  ;;  %v5410_v59 = vpop.permute.xlu0 %5409  ;;  %vm3818_vm6 = vcmask 1045509  }
 0x249   :  { %v5412_v45 = vunpack.i.h.bf16 %v5410_v59  ;;  %v5411_v26 = vunpack.i.l.bf16 %v5410_v59  ;;  %v2503_v35 = vsel %vm2476_vm14, %v11452_v42, %v5416_v25  ;;  %v2504_v28 = vsel %vm2476_vm14, %v11453_v12, %v5417_v50 }
 0x24a   :  { %4340 = vmatprep.mubr.msk.bf16.mxu0 %vm2788_vm9, %v2750_v52  ;;  %v5425_v33 = vpop.permute.xlu1 %5424 }
 0x24b   :  { %v2731_v1 = vsel %vm11450_vm8, %v2698_v3, %v5412_v45  ;;  %v2730_v57 = vsel %vm11451_vm11, %v2697_v62, %v5411_v26  ;;  %v5427_v41 = vunpack.i.h.bf16 %v5425_v33  ;;  %v5426_v21 = vunpack.i.l.bf16 %v5425_v33 }
 0x24c   :  { %v2751_v9 = vpack.c.bf16 %v2731_v1, %v2730_v57  ;;  %v5420_v5 = vpop.permute.xlu0 %5419  ;;  %vm3821_vm8 = vcmask 1046534   ;;  %vm3824_vm11 = vcmask 1047559  }
 0x24d   :  { %v5422_v6 = vunpack.i.h.bf16 %v5420_v5  ;;  %v5421_v36 = vunpack.i.l.bf16 %v5420_v5  ;;  %v2536_v44 = vsel %vm2509_vm15, %v2503_v35, %v5426_v21  ;;  %v2537_v17 = vsel %vm2509_vm15, %v2504_v28, %v5427_v41 }
 0x24e   :  { %4341 = vmatmul.mubr.msk.bf16.gmra.mrb[20].mxu0 %vm2788_vm9, %v2751_v9  ;;  %v5435_v10 = vpop.permute.xlu1 %5434 }
 0x24f   :  { %v5437_v27 = vunpack.i.h.bf16 %v5435_v10  ;;  %v5436_v48 = vunpack.i.l.bf16 %v5435_v10  ;;  %v2534_v38 = vsel %vm2509_vm15, %v2501_v43, %v5421_v36  ;;  %v2535_v46 = vsel %vm2509_vm15, %v2502_v7, %v5422_v6 }
 0x250   :  { %v5430_v18 = vpop.permute.xlu0 %5429 }
 0x251   :  { %v5432_v39 = vunpack.i.h.bf16 %v5430_v18  ;;  %v5431_v20 = vunpack.i.l.bf16 %v5430_v18  ;;  %v2569_v49 = vsel %vm2542_vm0, %v2536_v44, %v5436_v48  ;;  %v2570_v29 = vsel %vm2542_vm0, %v2537_v17, %v5437_v27 }
 0x252   :  { %v9226_v23 = vpop.permute.xlu1 %5444 }
 0x253   :  { %v2567_v61 = vsel %vm2542_vm0, %v2534_v38, %v5431_v20  ;;  %v2568_v30 = vsel %vm2542_vm0, %v2535_v46, %v5432_v39  ;;  %v5447_v55 = vunpack.i.h.bf16 %v9226_v23  ;;  %v5446_v16 = vunpack.i.l.bf16 %v9226_v23 }
 0x254   :  { %v5440_v60 = vpop.permute.xlu0 %5439 }
 0x255   :  { %v5442_v47 = vunpack.i.h.bf16 %v5440_v60  ;;  %v5441_v51 = vunpack.i.l.bf16 %v5440_v60  ;;  %v2602_v23 = vsel %vm2575_vm1, %v2569_v49, %v5446_v16  ;;  %v2603_v60 = vsel %vm2575_vm1, %v2570_v29, %v5447_v55  ;;  %v11461_v55 = vld [vmem:[#allocation112_spill] sm:$0xff] }
 0x256   :  { %v9228_v4 = vpop.permute.xlu1 %5454 }
 0x257   :  { %v2600_v2 = vsel %vm2575_vm1, %v2567_v61, %v5441_v51  ;;  %v2601_v58 = vsel %vm2575_vm1, %v2568_v30, %v5442_v47  ;;  %v5457_v56 = vunpack.i.h.bf16 %v9228_v4  ;;  %v5456_v52 = vunpack.i.l.bf16 %v9228_v4  ;;  %v11459_v61 = vld [vmem:[#allocation14_spill] sm:$0xff] }
 0x258   :  { %v5450_v24 = vpop.permute.xlu0 %5449 }
 0x259   :  { %v5452_v8 = vunpack.i.h.bf16 %v5450_v24  ;;  %v5451_v22 = vunpack.i.l.bf16 %v5450_v24  ;;  %v2635_v25 = vsel %vm2608_vm2, %v2602_v23, %v5456_v52  ;;  %v2636_v32 = vsel %vm2608_vm2, %v2603_v60, %v5457_v56 }
 0x25a   :  { %v5465_v13 = vpop.permute.xlu1 %5464 }
 0x25b   :  { %v2633_v31 = vsel %vm2608_vm2, %v2600_v2, %v5451_v22  ;;  %v2634_v63 = vsel %vm2608_vm2, %v2601_v58, %v5452_v8  ;;  %v5467_v45 = vunpack.i.h.bf16 %v5465_v13  ;;  %v5466_v26 = vunpack.i.l.bf16 %v5465_v13 }
 0x25c   :  { %v5460_v19 = vpop.permute.xlu0 %5459 }
 0x25d   :  { %v5462_v14 = vunpack.i.h.bf16 %v5460_v19  ;;  %v5461_v53 = vunpack.i.l.bf16 %v5460_v19  ;;  %v2668_v21 = vsel %vm2641_vm3, %v2635_v25, %v5466_v26  ;;  %v2669_v6 = vsel %vm2641_vm3, %v2636_v32, %v5467_v45 }
 0x25e   :  { %v5475_v11 = vpop.permute.xlu1 %5474 }
 0x25f   :  { %v2666_v3 = vsel %vm2641_vm3, %v2633_v31, %v5461_v53  ;;  %v2667_v1 = vsel %vm2641_vm3, %v2634_v63, %v5462_v14  ;;  %v5477_v9 = vunpack.i.h.bf16 %v5475_v11  ;;  %v5476_v5 = vunpack.i.l.bf16 %v5475_v11  ;;  %v11460_v14 = vld [vmem:[#allocation143_spill] sm:$0xff] }
 0x260   :  { %v5470_v37 = vpop.permute.xlu0 %5469 }
 0x261   :  { %v5472_v54 = vunpack.i.h.bf16 %v5470_v37  ;;  %v5471_v15 = vunpack.i.l.bf16 %v5470_v37  ;;  %v2701_v27 = vsel %vm2674_vm4, %v2668_v21, %v5476_v5  ;;  %v2702_v48 = vsel %vm2674_vm4, %v2669_v6, %v5477_v9 }
 0x262   :  { %v5485_v59 = vpop.permute.xlu1 %5484 }
 0x263   :  { %v2699_v10 = vsel %vm2674_vm4, %v2666_v3, %v5471_v15  ;;  %v2700_v18 = vsel %vm2674_vm4, %v2667_v1, %v5472_v54  ;;  %v5487_v40 = vunpack.i.h.bf16 %v5485_v59  ;;  %v5486_v7 = vunpack.i.l.bf16 %v5485_v59  ;;  %v11462_v54 = vld [vmem:[#allocation113_spill] sm:$0xff] }
 0x264   :  { %v5480_v62 = vpop.permute.xlu0 %5479 }
 0x265   :  { %v5482_v57 = vunpack.i.h.bf16 %v5480_v62  ;;  %v5481_v33 = vunpack.i.l.bf16 %v5480_v62  ;;  %v2505_v30 = vsel %vm2476_vm14, %v11459_v61, %v5486_v7  ;;  %v2506_v53 = vsel %vm2476_vm14, %v11460_v14, %v5487_v40 }
 0x266   :  { %v5495_v50 = vpop.permute.xlu1 %5494 }
 0x267   :  { %v2732_v4 = vsel %vm11456_vm12, %v2699_v10, %v5481_v33  ;;  %v2733_v24 = vsel %vm11457_vm13, %v2700_v18, %v5482_v57  ;;  %v5497_v44 = vunpack.i.h.bf16 %v5495_v50  ;;  %v5496_v17 = vunpack.i.l.bf16 %v5495_v50 }
 0x268   :  { %v2752_v34 = vpack.c.bf16 %v2733_v24, %v2732_v4  ;;  %v5490_v41 = vpop.permute.xlu0 %5489  ;;  %vm3895_vm12 = vcmask 123904  }
 0x269   :  { %v5492_v36 = vunpack.i.h.bf16 %v5490_v41  ;;  %v5491_v13 = vunpack.i.l.bf16 %v5490_v41  ;;  %v2507_v16 = vsel %vm2476_vm14, %v11461_v55, %v5496_v17  ;;  %v2508_v15 = vsel %vm2476_vm14, %v11462_v54, %v5497_v44  ;;  %vm11463_vm14 = vmmov %vm11448_vm5 }
 0x26a   :  { %4344 = vmatprep.mubr.msk.bf16.mxu0 %vm2788_vm9, %v2752_v34  ;;  %v5505_v35 = vpop.permute.xlu1 %5504 }
 0x26b   :  { %v2735_v19 = vsel %vm11458_vm7, %v2702_v48, %v5492_v36  ;;  %v2734_v42 = vsel %vm11448_vm5, %v2701_v27, %v5491_v13  ;;  %v5507_v38 = vunpack.i.h.bf16 %v5505_v35  ;;  %v5506_v46 = vunpack.i.l.bf16 %v5505_v35 }
 0x26c   :  { %v2753_v12 = vpack.c.bf16 %v2735_v19, %v2734_v42  ;;  %v5500_v28 = vpop.permute.xlu0 %5499 }
 0x26d   :  { %v5502_v47 = vunpack.i.h.bf16 %v5500_v28  ;;  %v5501_v51 = vunpack.i.l.bf16 %v5500_v28  ;;  %v2540_v2 = vsel %vm2509_vm15, %v2507_v16, %v5506_v46  ;;  %v2541_v58 = vsel %vm2509_vm15, %v2508_v15, %v5507_v38 }
 0x26e   :  { %4345 = vmatmul.mubr.msk.bf16.gmra.mrb[24].mxu0 %vm2788_vm9, %v2753_v12  ;;  %v5515_v39 = vpop.permute.xlu1 %5514 }
 0x26f   :  { %v5517_v49 = vunpack.i.h.bf16 %v5515_v39  ;;  %v5516_v29 = vunpack.i.l.bf16 %v5515_v39  ;;  %v2538_v56 = vsel %vm2509_vm15, %v2505_v30, %v5501_v51  ;;  %v2539_v52 = vsel %vm2509_vm15, %v2506_v53, %v5502_v47  ;;  %vm11464_vm15 = vmmov %vm11448_vm5 }
 0x270   :  { %v5510_v20 = vpop.permute.xlu0 %5509 }
 0x271   :  { %v5512_v22 = vunpack.i.h.bf16 %v5510_v20  ;;  %v5511_v37 = vunpack.i.l.bf16 %v5510_v20  ;;  %v2573_v31 = vsel %vm2542_vm0, %v2540_v2, %v5516_v29  ;;  %v2574_v63 = vsel %vm2542_vm0, %v2541_v58, %v5517_v49 }
 0x272   :  { %v5525_v0 = vpop.permute.xlu1 %5524 }
 0x273   :  { %v5527_v45 = vunpack.i.h.bf16 %v5525_v0  ;;  %v5526_v26 = vunpack.i.l.bf16 %v5525_v0  ;;  %v2571_v3 = vsel %vm2542_vm0, %v2538_v56, %v5511_v37  ;;  %v2572_v1 = vsel %vm2542_vm0, %v2539_v52, %v5512_v22  ;;  %vm11465_vm0 = vmmov %vm11448_vm5 }
 0x274   :  { %v5520_v43 = vpop.permute.xlu0 %5519 }
 0x275   :  { %v5522_v57 = vunpack.i.h.bf16 %v5520_v43  ;;  %v5521_v33 = vunpack.i.l.bf16 %v5520_v43  ;;  %v2606_v25 = vsel %vm2575_vm1, %v2573_v31, %v5526_v26  ;;  %v2607_v32 = vsel %vm2575_vm1, %v2574_v63, %v5527_v45 }
 0x276   :  { %v5535_v11 = vpop.permute.xlu1 %5534 }
 0x277   :  { %v5537_v9 = vunpack.i.h.bf16 %v5535_v11  ;;  %v5536_v5 = vunpack.i.l.bf16 %v5535_v11  ;;  %v2604_v6 = vsel %vm2575_vm1, %v2571_v3, %v5521_v33  ;;  %v2605_v36 = vsel %vm2575_vm1, %v2572_v1, %v5522_v57  ;;  %vm11466_vm1 = vmmov %vm11465_vm0 }
 0x278   :  { %v5530_v8 = vpop.permute.xlu0 %5529 }
 0x279   :  { %v5532_v10 = vunpack.i.h.bf16 %v5530_v8  ;;  %v5531_v18 = vunpack.i.l.bf16 %v5530_v8  ;;  %v2639_v48 = vsel %vm2608_vm2, %v2606_v25, %v5536_v5  ;;  %v2640_v19 = vsel %vm2608_vm2, %v2607_v32, %v5537_v9 }
 0x27a   :  { %v5545_v59 = vpop.permute.xlu1 %5544 }
 0x27b   :  { %v5547_v23 = vunpack.i.h.bf16 %v5545_v59  ;;  %v5546_v60 = vunpack.i.l.bf16 %v5545_v59  ;;  %v2637_v42 = vsel %vm2608_vm2, %v2604_v6, %v5531_v18  ;;  %v2638_v35 = vsel %vm2608_vm2, %v2605_v36, %v5532_v10 }
 0x27c   :  { %v5540_v62 = vpop.permute.xlu0 %5539  ;;  %vm3809_vm2 = vcmask 1042434  }
 0x27d   :  { %v5542_v4 = vunpack.i.h.bf16 %v5540_v62  ;;  %v5541_v24 = vunpack.i.l.bf16 %v5540_v62  ;;  %v2672_v28 = vsel %vm2641_vm3, %v2639_v48, %v5546_v60  ;;  %v2673_v39 = vsel %vm2641_vm3, %v2640_v19, %v5547_v23 }
 0x27e   :  { %v5555_v50 = vpop.permute.xlu1 %5554 }
 0x27f   :  { %v5557_v34 = vunpack.i.h.bf16 %v5555_v50  ;;  %v5556_v41 = vunpack.i.l.bf16 %v5555_v50  ;;  %v2670_v20 = vsel %vm2641_vm3, %v2637_v42, %v5541_v24  ;;  %v2671_v0 = vsel %vm2641_vm3, %v2638_v35, %v5542_v4 }
 0x280   :  { %v5550_v21 = vpop.permute.xlu0 %5549  ;;  %v9296_v12 = vpop.f32.mrb[0].mxu0  ;;  %vm3812_vm3 = vcmask 1043459  }
 0x281   :  { %v5552_v13 = vunpack.i.h.bf16 %v5550_v21  ;;  %v5551_v27 = vunpack.i.l.bf16 %v5550_v21  ;;  %v9302_v43 = vpop.f32.mrb[1].mxu0  ;;  %v2705_v7 = vsel %vm2674_vm4, %v2672_v28, %v5556_v41  ;;  %v2706_v44 = vsel %vm2674_vm4, %v2673_v39, %v5557_v34 }
 0x282   :  { %v5565_v40 = vpop.permute.xlu1 %5564  ;;  %v9306_v47 = vpop.f32.mrb[2].mxu0  ;;  %v2998_v22 = vsel %vm2344_vm10, %v9302_v43, 0.0  ;;  %v3069_v37 = vmul.f32 %v9302_v43, %v9302_v43  ;;  %v3071_v54 = vmul.f32 %v9296_v12, %v9296_v12  ;;  %v3001_v56 = vsel %vm2344_vm10, %v9296_v12, 0.0 }
 0x283   :  { %v5567_v17 = vunpack.i.h.bf16 %v5565_v40  ;;  %v5566_v38 = vunpack.i.l.bf16 %v5565_v40  ;;  %v2703_v51 = vsel %vm2674_vm4, %v2670_v20, %v5551_v27  ;;  %v2704_v11 = vsel %vm2674_vm4, %v2671_v0, %v5552_v13  ;;  %v9310_v8 = vpop.f32.mrb[3].mxu0 }
 0x284   :  { %v5560_v46 = vpop.permute.xlu0 %5559  ;;  %v2999_v16 = vsel %vm2344_vm10, %v9310_v8, 0.0  ;;  %v3070_v58 = vmul.f32 %v9310_v8, %v9310_v8  ;;  %v3101_v52 = vsel %vm2344_vm10, %v3069_v37, 0.0  ;;  %v3072_v59 = vmul.f32 %v9306_v47, %v9306_v47 }
 0x285   :  { %v5562_v49 = vunpack.i.h.bf16 %v5560_v46  ;;  %v5561_v29 = vunpack.i.l.bf16 %v5560_v46  ;;  %v2738_v61 = vsel %vm11463_vm14, %v2705_v7, %v5566_v38  ;;  %v2739_v30 = vsel %vm11464_vm15, %v2706_v44, %v5567_v17 }
 0x286   :  { %v2755_v14 = vpack.c.bf16 %v2739_v30, %v2738_v61  ;;  %v3000_v2 = vadd.f32 %v2999_v16, %v2998_v22  ;;  %v3102_v63 = vsel %vm2344_vm10, %v3070_v58, 0.0  ;;  %v3003_v45 = vsel %vm2344_vm10, %v9306_v47, 0.0  ;;  %v5572_v58 = vld [vmem:[%s10308_s6 + $0x40] sm:$0xff]  }
 0x287   :  { %v2736_v53 = vsel %vm11465_vm0, %v2703_v51, %v5561_v29  ;;  %v2737_v55 = vsel %vm11466_vm1, %v2704_v11, %v5562_v49  ;;  %v3103_v26 = vadd.f32 %v3102_v63, %v3101_v52  ;;  %v3104_v62 = vsel %vm2344_vm10, %v3071_v54, 0.0  ;;  %v5573_v52 = vld [vmem:[%s10308_s6] sm:$0xff]   ;;  %4290 = vmatprep.subr.bf16.mxu1 %v5572_v58  ;;  %v5576_v63 = vld [vmem:[%s10308_s6 + $0x50] sm:$0xff]  }
 0x288   :  { %v2754_v15 = vpack.c.bf16 %v2737_v55, %v2736_v53  ;;  %v3002_v31 = vadd.f32 %v3001_v56, %v3000_v2  ;;  %v3106_v57 = vsel %vm2344_vm10, %v3072_v59, 0.0  ;;  %v5574_v59 = vld [vmem:[%s10308_s6 + $0x48] sm:$0xff]   ;;  %4291 = vmatpush3.bf16.msra.mxu1 %v5573_v52  ;;  %vm3815_vm4 = vcmask 1044484  }
 0x289   :  { %v3105_v1 = vadd.f32 %v3104_v62, %v3103_v26  ;;  %4292 = vmatprep.subr.bf16.mxu1 %v5574_v59 }
 0x28a   :  { %4348 = vmatprep.mubr.msk.bf16.mxu0 %vm2788_vm9, %v2754_v15  ;;  %v3004_v3 = vadd.f32 %v3003_v45, %v3002_v31  ;;  %v5575_v31 = vld [vmem:[%s10308_s6 + $0x8] sm:$0xff]   ;;  %v5577_v45 = vld [vmem:[%s10308_s6 + $0x10] sm:$0xff]  }
 0x28b   :  { %4349 = vmatmul.mubr.msk.bf16.gmra.mrb[28].mxu0 %vm2788_vm9, %v2755_v14  ;;  %v3107_v33 = vadd.f32 %v3106_v57, %v3105_v1  ;;  %vm3806_vm9 = vcmask 1041409  }
 0x28c   :  { %4293 = vmatpush3.bf16.msra.mxu1 %v5575_v31 }
 0x28d   :  { %4294 = vmatprep.subr.bf16.mxu1 %v5576_v63 }
 0x290   :  { %4295 = vmatpush3.bf16.msra.mxu1 %v5577_v45 }
 0x29f   :  { %v9338_v9 = vpop.f32.mrb[4].mxu0 }
 0x2a0   :  { %v9340_v5 = vpop.f32.mrb[5].mxu0  ;;  %v3075_v24 = vmul.f32 %v9338_v9, %v9338_v9  ;;  %v3009_v21 = vsel %vm2344_vm10, %v9338_v9, 0.0 }
 0x2a1   :  { %v3005_v10 = vsel %vm2344_vm10, %v9340_v5, 0.0  ;;  %v3073_v18 = vmul.f32 %v9340_v5, %v9340_v5  ;;  %v9346_v23 = vpop.f32.mrb[6].mxu0 }
 0x2a2   :  { %v3006_v60 = vadd.f32 %v3005_v10, %v3004_v3  ;;  %v9348_v4 = vpop.f32.mrb[7].mxu0  ;;  %v3076_v6 = vmul.f32 %v9346_v23, %v9346_v23  ;;  %v3112_v48 = vsel %vm2344_vm10, %v3075_v24, 0.0  ;;  %v3011_v19 = vsel %vm2344_vm10, %v9346_v23, 0.0 }
 0x2a3   :  { %v3108_v50 = vsel %vm2344_vm10, %v3073_v18, 0.0  ;;  %v3007_v25 = vsel %vm2344_vm10, %v9348_v4, 0.0  ;;  %v3074_v32 = vmul.f32 %v9348_v4, %v9348_v4 }
 0x2a4   :  { %v3109_v34 = vadd.f32 %v3108_v50, %v3107_v33  ;;  %v3008_v41 = vadd.f32 %v3007_v25, %v3006_v60  ;;  %v3114_v28 = vsel %vm2344_vm10, %v3076_v6, 0.0 }
 0x2a5   :  { %v3110_v36 = vsel %vm2344_vm10, %v3074_v32, 0.0 }
 0x2a6   :  { %v3010_v13 = vadd.f32 %v3009_v21, %v3008_v41  ;;  %v3111_v27 = vadd.f32 %v3110_v36, %v3109_v34 }
 0x2a8   :  { %v3113_v42 = vadd.f32 %v3112_v48, %v3111_v27  ;;  %v3012_v35 = vadd.f32 %v3011_v19, %v3010_v13 }
 0x2aa   :  { %v3115_v39 = vadd.f32 %v3114_v28, %v3113_v42 }
 0x2bf   :  { %v9366_v20 = vpop.f32.mrb[8].mxu0 }
 0x2c0   :  { %v9368_v0 = vpop.f32.mrb[9].mxu0  ;;  %v3079_v46 = vmul.f32 %v9366_v20, %v9366_v20  ;;  %v3017_v37 = vsel %vm2344_vm10, %v9366_v20, 0.0 }
 0x2c1   :  { %v3013_v40 = vsel %vm2344_vm10, %v9368_v0, 0.0  ;;  %v3077_v7 = vmul.f32 %v9368_v0, %v9368_v0  ;;  %v9374_v44 = vpop.f32.mrb[10].mxu0 }
 0x2c2   :  { %v3014_v17 = vadd.f32 %v3013_v40, %v3012_v35  ;;  %v9376_v38 = vpop.f32.mrb[11].mxu0  ;;  %v3080_v61 = vmul.f32 %v9374_v44, %v9374_v44  ;;  %v3120_v55 = vsel %vm2344_vm10, %v3079_v46, 0.0  ;;  %v3019_v16 = vsel %vm2344_vm10, %v9374_v44, 0.0 }
 0x2c3   :  { %v3116_v51 = vsel %vm2344_vm10, %v3077_v7, 0.0  ;;  %v3015_v11 = vsel %vm2344_vm10, %v9376_v38, 0.0  ;;  %v3078_v49 = vmul.f32 %v9376_v38, %v9376_v38 }
 0x2c4   :  { %v3117_v29 = vadd.f32 %v3116_v51, %v3115_v39  ;;  %v3016_v22 = vadd.f32 %v3015_v11, %v3014_v17  ;;  %v3122_v2 = vsel %vm2344_vm10, %v3080_v61, 0.0 }
 0x2c5   :  { %v3118_v30 = vsel %vm2344_vm10, %v3078_v49, 0.0 }
 0x2c6   :  { %v3018_v14 = vadd.f32 %v3017_v37, %v3016_v22  ;;  %v3119_v53 = vadd.f32 %v3118_v30, %v3117_v29 }
 0x2c8   :  { %v3121_v54 = vadd.f32 %v3120_v55, %v3119_v53  ;;  %v3020_v15 = vadd.f32 %v3019_v16, %v3018_v14 }
 0x2ca   :  { %v3123_v56 = vadd.f32 %v3122_v2, %v3121_v54 }
 0x2df   :  { %v9412_v26 = vpop.f32.mrb[12].mxu0 }
 0x2e0   :  { %v9414_v62 = vpop.f32.mrb[13].mxu0  ;;  %v3083_v18 = vmul.f32 %v9412_v26, %v9412_v26  ;;  %v3025_v34 = vsel %vm2344_vm10, %v9412_v26, 0.0 }
 0x2e1   :  { %v3021_v3 = vsel %vm2344_vm10, %v9414_v62, 0.0  ;;  %v3081_v1 = vmul.f32 %v9414_v62, %v9414_v62  ;;  %v9420_v57 = vpop.f32.mrb[14].mxu0 }
 0x2e2   :  { %v3022_v33 = vadd.f32 %v3021_v3, %v3020_v15  ;;  %v9422_v10 = vpop.f32.mrb[15].mxu0  ;;  %v3084_v41 = vmul.f32 %v9420_v57, %v9420_v57  ;;  %v3128_v13 = vsel %vm2344_vm10, %v3083_v18, 0.0  ;;  %v3027_v27 = vsel %vm2344_vm10, %v9420_v57, 0.0 }
 0x2e3   :  { %v3124_v60 = vsel %vm2344_vm10, %v3081_v1, 0.0  ;;  %v3023_v24 = vsel %vm2344_vm10, %v9422_v10, 0.0  ;;  %v3082_v50 = vmul.f32 %v9422_v10, %v9422_v10 }
 0x2e4   :  { %v3125_v25 = vadd.f32 %v3124_v60, %v3123_v56  ;;  %v3024_v32 = vadd.f32 %v3023_v24, %v3022_v33  ;;  %v3130_v42 = vsel %vm2344_vm10, %v3084_v41, 0.0 }
 0x2e5   :  { %v3126_v21 = vsel %vm2344_vm10, %v3082_v50, 0.0 }
 0x2e6   :  { %v3026_v6 = vadd.f32 %v3025_v34, %v3024_v32  ;;  %v3127_v36 = vadd.f32 %v3126_v21, %v3125_v25 }
 0x2e8   :  { %v3129_v48 = vadd.f32 %v3128_v13, %v3127_v36  ;;  %v3028_v19 = vadd.f32 %v3027_v27, %v3026_v6 }
 0x2ea   :  { %v3131_v35 = vadd.f32 %v3130_v42, %v3129_v48 }
 0x2ff   :  { %v9440_v28 = vpop.f32.mrb[16].mxu0 }
 0x300   :  { %v9442_v39 = vpop.f32.mrb[17].mxu0  ;;  %v3087_v11 = vmul.f32 %v9440_v28, %v9440_v28  ;;  %v3033_v30 = vsel %vm2344_vm10, %v9440_v28, 0.0 }
 0x301   :  { %v3029_v40 = vsel %vm2344_vm10, %v9442_v39, 0.0  ;;  %v3085_v7 = vmul.f32 %v9442_v39, %v9442_v39  ;;  %v9448_v17 = vpop.f32.mrb[18].mxu0 }
 0x302   :  { %v3030_v46 = vadd.f32 %v3029_v40, %v3028_v19  ;;  %v9450_v51 = vpop.f32.mrb[19].mxu0  ;;  %v3088_v14 = vmul.f32 %v9448_v17, %v9448_v17  ;;  %v3136_v54 = vsel %vm2344_vm10, %v3087_v11, 0.0  ;;  %v3035_v15 = vsel %vm2344_vm10, %v9448_v17, 0.0  ;;  %v5578_v40 = vld [vmem:[%s10308_s6 + $0x58] sm:$0xff]   ;;  %v5581_v11 = vld [vmem:[%s10308_s6 + $0x20] sm:$0xff]  }
 0x303   :  { %v3132_v49 = vsel %vm2344_vm10, %v3085_v7, 0.0  ;;  %v3031_v29 = vsel %vm2344_vm10, %v9450_v51, 0.0  ;;  %v3086_v22 = vmul.f32 %v9450_v51, %v9450_v51  ;;  %v5579_v7 = vld [vmem:[%s10308_s6 + $0x18] sm:$0xff]   ;;  %4296 = vmatprep.subr.bf16.mxu1 %v5578_v40 }
 0x304   :  { %v3133_v37 = vadd.f32 %v3132_v49, %v3131_v35  ;;  %v3032_v61 = vadd.f32 %v3031_v29, %v3030_v46  ;;  %v3138_v56 = vsel %vm2344_vm10, %v3088_v14, 0.0  ;;  %4297 = vmatpush3.bf16.msra.mxu1 %v5579_v7  ;;  %v5580_v46 = vld [vmem:[%s10308_s6 + $0x60] sm:$0xff]   ;;  %v5582_v49 = vld [vmem:[%s10308_s6 + $0x68] sm:$0xff]  }
 0x305   :  { %v3134_v53 = vsel %vm2344_vm10, %v3086_v22, 0.0  ;;  %4298 = vmatprep.subr.bf16.mxu1 %v5580_v46  ;;  %v5583_v29 = vld [vmem:[%s10308_s6 + $0x28] sm:$0xff]   ;;  %v5584_v22 = vld [vmem:[%s10308_s6 + $0x70] sm:$0xff]  }
 0x306   :  { %v3034_v55 = vadd.f32 %v3033_v30, %v3032_v61  ;;  %v3135_v16 = vadd.f32 %v3134_v53, %v3133_v37  ;;  %v5585_v61 = vld [vmem:[%s10308_s6 + $0x30] sm:$0xff]   ;;  %v5607_v30 = vmov 1966171168   ;;  %v3944_v53 = vlaneseq }
 0x307   :  { %v3942_v14 = vunpack.c.l.s4 %v5607_v30 }
 0x308   :  { %v3137_v2 = vadd.f32 %v3136_v54, %v3135_v16  ;;  %v3036_v58 = vadd.f32 %v3035_v15, %v3034_v55  ;;  %4299 = vmatpush3.bf16.msra.mxu1 %v5581_v11 }
 0x309   :  { %4300 = vmatprep.subr.bf16.mxu1 %v5582_v49 }
 0x30a   :  { %v3139_v52 = vadd.f32 %v3138_v56, %v3137_v2  ;;  %v3943_v2 = vunpack.c.0.s8 %v3942_v14 }
 0x30c   :  { %4301 = vmatpush3.bf16.msra.mxu1 %v5583_v29 }
 0x30d   :  { %4302 = vmatprep.subr.bf16.mxu1 %v5584_v22 }
 0x310   :  { %4303 = vmatpush3.bf16.msra.mxu1 %v5585_v61 }
 0x321   :  { %v9468_v59 = vpop.f32.mrb[20].mxu0 }
 0x322   :  { %v9470_v31 = vpop.f32.mrb[21].mxu0  ;;  %v3091_v18 = vmul.f32 %v9468_v59, %v9468_v59  ;;  %v3041_v34 = vsel %vm2344_vm10, %v9468_v59, 0.0 }
 0x323   :  { %v3037_v63 = vsel %vm2344_vm10, %v9470_v31, 0.0  ;;  %v3089_v45 = vmul.f32 %v9470_v31, %v9470_v31  ;;  %v9476_v3 = vpop.f32.mrb[22].mxu0 }
 0x324   :  { %v3038_v1 = vadd.f32 %v3037_v63, %v3036_v58  ;;  %v9478_v33 = vpop.f32.mrb[23].mxu0  ;;  %v3092_v41 = vmul.f32 %v9476_v3, %v9476_v3  ;;  %v3144_v13 = vsel %vm2344_vm10, %v3091_v18, 0.0  ;;  %v3043_v27 = vsel %vm2344_vm10, %v9476_v3, 0.0 }
 0x325   :  { %v3140_v60 = vsel %vm2344_vm10, %v3089_v45, 0.0  ;;  %v3039_v24 = vsel %vm2344_vm10, %v9478_v33, 0.0  ;;  %v3090_v50 = vmul.f32 %v9478_v33, %v9478_v33  ;;  %v3945_v58 = vshrl.u32 %v3944_v53, 7  ;;  %v5586_v45 = vld [vmem:[%s10308_s6 + $0x78] sm:$0xff]  }
 0x326   :  { %v3141_v25 = vadd.f32 %v3140_v60, %v3139_v52  ;;  %v3040_v32 = vadd.f32 %v3039_v24, %v3038_v1  ;;  %v3146_v42 = vsel %vm2344_vm10, %v3092_v41, 0.0  ;;  %v5587_v24 = vld [vmem:[%s10308_s6 + $0x38] sm:$0xff]   ;;  %4304 = vmatprep.subr.bf16.mxu1 %v5586_v45 }
 0x327   :  { %v3142_v21 = vsel %vm2344_vm10, %v3090_v50, 0.0  ;;  %v3946_v50 = vsub.s32 %v3943_v2, %v3945_v58  ;;  %4305 = vmatpush3.bf16.msra.mxu1 %v5587_v24 }
 0x328   :  { %v3042_v6 = vadd.f32 %v3041_v34, %v3040_v32  ;;  %v3143_v36 = vadd.f32 %v3142_v21, %v3141_v25  ;;  %v4133_v34 = vld.sshfl [vmem:[%s10309_s5] sm:$0x11 pattern:$0x75316420] }
 0x32a   :  { %v3145_v48 = vadd.f32 %v3144_v13, %v3143_v36  ;;  %v3044_v19 = vadd.f32 %v3043_v27, %v3042_v6  ;;  %v3940_v36 = vcombine.high %v4133_v34, %v4133_v34 }
 0x32c   :  { %v3147_v35 = vadd.f32 %v3146_v42, %v3145_v48  ;;  %v3947_v48 = vrot.slane %v4133_v34, %v3946_v50 }
 0x341   :  { %v9517_v37 = vpop.f32.mrb[24].mxu0 }
 0x342   :  { %v9522_v55 = vpop.f32.mrb[25].mxu0  ;;  %v3095_v56 = vmul.f32 %v9517_v37, %v9517_v37  ;;  %v3049_v41 = vsel %vm2344_vm10, %v9517_v37, 0.0 }
 0x343   :  { %v3045_v16 = vsel %vm2344_vm10, %v9522_v55, 0.0  ;;  %v3093_v54 = vmul.f32 %v9522_v55, %v9522_v55  ;;  %v9528_v15 = vpop.f32.mrb[26].mxu0 }
 0x344   :  { %v3046_v52 = vadd.f32 %v3045_v16, %v3044_v19  ;;  %v9532_v63 = vpop.f32.mrb[27].mxu0  ;;  %v3096_v21 = vmul.f32 %v9528_v15, %v9528_v15  ;;  %v3152_v19 = vsel %vm2344_vm10, %v3095_v56, 0.0  ;;  %v3051_v42 = vsel %vm2344_vm10, %v9528_v15, 0.0 }
 0x345   :  { %v3148_v1 = vsel %vm2344_vm10, %v3093_v54, 0.0  ;;  %v3047_v18 = vsel %vm2344_vm10, %v9532_v63, 0.0  ;;  %v3094_v60 = vmul.f32 %v9532_v63, %v9532_v63 }
 0x346   :  { %v3149_v25 = vadd.f32 %v3148_v1, %v3147_v35  ;;  %v3048_v32 = vadd.f32 %v3047_v18, %v3046_v52  ;;  %v3954_v35 = vrot.slane %v3940_v36, %v3946_v50  ;;  %v3154_v46 = vsel %vm2344_vm10, %v3096_v21, 0.0 }
 0x347   :  { %v3150_v6 = vsel %vm2344_vm10, %v3094_v60, 0.0 }
 0x348   :  { %v3050_v13 = vadd.f32 %v3049_v41, %v3048_v32  ;;  %v3151_v27 = vadd.f32 %v3150_v6, %v3149_v25  ;;  %4085 = vmatprep.mubr.bf16.mxu1 %v3954_v35 }
 0x349   :  { %4086 = vmatmul.mubr.bf16.vlgmr.msra.gmra.mrb[0].mxu1 %v3947_v48 }
 0x34a   :  { %v3153_v40 = vadd.f32 %v3152_v19, %v3151_v27  ;;  %v3052_v7 = vadd.f32 %v3051_v42, %v3050_v13 }
 0x34c   :  { %v3155_v11 = vadd.f32 %v3154_v46, %v3153_v40  ;;  %v9593_v46 = vld [vmem:[%s10310_s4] sm:$0xff] }
 0x35e   :  { %v9557_v49 = vpop.f32.mrb[28].mxu0 }
 0x35f   :  { %v9559_v29 = vpop.f32.mrb[29].mxu0  ;;  %v3099_v16 = vmul.f32 %v9557_v49, %v9557_v49  ;;  %v3057_v45 = vsel %vm2344_vm10, %v9557_v49, 0.0 }
 0x360   :  { %v3053_v22 = vsel %vm2344_vm10, %v9559_v29, 0.0  ;;  %v3097_v61 = vmul.f32 %v9559_v29, %v9559_v29  ;;  %v9565_v30 = vpop.f32.mrb[30].mxu0 }
 0x361   :  { %v3054_v14 = vadd.f32 %v3053_v22, %v3052_v7  ;;  %v9567_v53 = vpop.f32.mrb[31].mxu0  ;;  %v3100_v1 = vmul.f32 %v9565_v30, %v9565_v30  ;;  %v3160_v50 = vsel %vm2344_vm10, %v3099_v16, 0.0  ;;  %v3059_v25 = vsel %vm2344_vm10, %v9565_v30, 0.0  ;;  %v9588_v7 = vld [vmem:[%s10311_s8] sm:$0xff]  ;;  %v9660_v16 = vld [vmem:[%s10311_s8 + $0x8] sm:$0xff] }
 0x362   :  { %v3156_v54 = vsel %vm2344_vm10, %v3097_v61, 0.0  ;;  %v3055_v2 = vsel %vm2344_vm10, %v9567_v53, 0.0  ;;  %v3098_v58 = vmul.f32 %v9567_v53, %v9567_v53 }
 0x363   :  { %v3157_v56 = vadd.f32 %v3156_v54, %v3155_v11  ;;  %v3056_v52 = vadd.f32 %v3055_v2, %v3054_v14  ;;  %v3162_v41 = vsel %vm2344_vm10, %v3100_v1, 0.0 }
 0x364   :  { %v3158_v18 = vsel %vm2344_vm10, %v3098_v58, 0.0 }
 0x365   :  { %v3058_v60 = vadd.f32 %v3057_v45, %v3056_v52  ;;  %v3159_v24 = vadd.f32 %v3158_v18, %v3157_v56 }
 0x367   :  { %v3060_v32 = vadd.f32 %v3059_v25, %v3058_v60  ;;  %v3161_v34 = vadd.f32 %v3160_v50, %v3159_v24 }
 0x369   :  { %v3061_v21 = vrot.slane %v3060_v32, 4  ;;  %v3163_v6 = vadd.f32 %v3162_v41, %v3161_v34 }
 0x36b   :  { %v3062_v36 = vadd.f32 %v3061_v21, %v3060_v32  ;;  %v3164_v13 = vrot.slane %v3163_v6, 4 }
 0x36d   :  { %v3063_v27 = vrot.slane %v3062_v36, 2  ;;  %v3165_v48 = vadd.f32 %v3164_v13, %v3163_v6 }
 0x36f   :  { %v3064_v19 = vadd.f32 %v3063_v27, %v3062_v36  ;;  %v3166_v42 = vrot.slane %v3165_v48, 2 }
 0x371   :  { %v3065_v35 = vrot.slane %v3064_v19, 1  ;;  %v3167_v40 = vadd.f32 %v3166_v42, %v3165_v48 }
 0x373   :  { %v3066_v11 = vadd.f32 %v3065_v35, %v3064_v19  ;;  %v3168_v22 = vrot.slane %v3167_v40, 1 }
 0x375   :  { %v9595_v61 = vmul.f32 0.00390625, %v3066_v11  ;;  %v3169_v14 = vadd.f32 %v3168_v22, %v3167_v40  ;;  %v9690_v22 = vld [vmem:[%s10311_s8 + $0x10] sm:$0xff]  ;;  %v9724_v40 = vld [vmem:[%s10312_s2] ss:$0 sm:$0xff] }
 0x376   :  { %v9745_v11 = vld [vmem:[%s10313_s3] ss:$0 sm:$0xff] }
 0x377   :  { %v3170_v56 = vmul.f32 0.00390625, %v3169_v14  ;;  %v3171_v52 = vmul.f32 %v9595_v61, %v9595_v61  ;;  %v3203_v45 = vsub.f32 %v9567_v53, %v9595_v61  ;;  %v3174_v1 = vsub.f32 %v9302_v43, %v9595_v61 }
 0x378   :  { %v3175_v18 = vsub.f32 %v9310_v8, %v9595_v61  ;;  %v3176_v60 = vsub.f32 %v9296_v12, %v9595_v61  ;;  %v3177_v24 = vsub.f32 %v9306_v47, %v9595_v61  ;;  %v3178_v50 = vsub.f32 %v9340_v5, %v9595_v61 }
 0x379   :  { %v3172_v25 = vsub.f32 %v3170_v56, %v3171_v52  ;;  %v3179_v32 = vsub.f32 %v9348_v4, %v9595_v61  ;;  %v3180_v34 = vsub.f32 %v9338_v9, %v9595_v61  ;;  %v3181_v41 = vsub.f32 %v9346_v23, %v9595_v61  ;;  %v9703_v56 = vld [vmem:[%s10311_s8 + $0x18] sm:$0xff] }
 0x37a   :  { %v3182_v21 = vsub.f32 %v9368_v0, %v9595_v61  ;;  %v3183_v6 = vsub.f32 %v9376_v38, %v9595_v61  ;;  %v3184_v36 = vsub.f32 %v9366_v20, %v9595_v61  ;;  %v3185_v13 = vsub.f32 %v9374_v44, %v9595_v61 }
 0x37b   :  { %v3173_v27 = vmax.f32 %v3172_v25, 0.0  ;;  %v3186_v48 = vsub.f32 %v9414_v62, %v9595_v61  ;;  %v9665_v25 = vld [vmem:[%s10310_s4 + $0x8] sm:$0xff]  ;;  %v3600_v52 = vrot.slane %v9690_v22, 4  ;;  %v3608_v58 = vrot.slane %v9703_v56, 5 }
 0x37c   :  { %v11467_v0 = vsub.f32 %v9422_v10, %v9595_v61  ;;  %v11468_v38 = vsub.f32 %v9412_v26, %v9595_v61  ;;  %v11469_v20 = vsub.f32 %v9420_v57, %v9595_v61  ;;  %v11470_v44 = vsub.f32 %v9442_v39, %v9595_v61 }
 0x37d   :  { %v3206_v14 = vadd.f32 1e-05, %v3173_v27  ;;  %v11471_v62 = vsub.f32 %v9450_v51, %v9595_v61  ;;  %v11472_v10 = vsub.f32 %v9440_v28, %v9595_v61  ;;  %v11473_v26 = vsub.f32 %v9448_v17, %v9595_v61 }
 0x37e   :  { %v11474_v57 = vsub.f32 %v9470_v31, %v9595_v61  ;;  %v11475_v39 = vsub.f32 %v9478_v33, %v9595_v61  ;;  %v11476_v51 = vsub.f32 %v9468_v59, %v9595_v61  ;;  %v11477_v28 = vsub.f32 %v9476_v3, %v9595_v61 }
 0x37f   :  { %5588 = vrsqrt.f32 %v3206_v14  ;;  %v11480_v33 = vsub.f32 %v9517_v37, %v9595_v61  ;;  %v11481_v59 = vsub.f32 %v9528_v15, %v9595_v61  ;;  %v11482_v3 = vsub.f32 %v9559_v29, %v9595_v61 }
 0x389   :  { %v5589_v19 = vpop.eup %5588 }
 0x38a   :  { %v3237_v27 = vmul.f32 %v5589_v19, %v3203_v45  ;;  %v3208_v2 = vmul.f32 %v5589_v19, %v3174_v1  ;;  %v3209_v35 = vmul.f32 %v5589_v19, %v3175_v18  ;;  %v3210_v14 = vmul.f32 %v5589_v19, %v3176_v60 }
 0x38b   :  { %v3211_v53 = vmul.f32 %v5589_v19, %v3177_v24  ;;  %v3212_v43 = vmul.f32 %v5589_v19, %v3178_v50  ;;  %v3213_v8 = vmul.f32 %v5589_v19, %v3179_v32  ;;  %v3214_v12 = vmul.f32 %v5589_v19, %v3180_v34 }
 0x38c   :  { %v3276_v45 = vmul.f32 %v9724_v40, %v3237_v27  ;;  %v3215_v1 = vmul.f32 %v5589_v19, %v3181_v41  ;;  %v3216_v47 = vmul.f32 %v5589_v19, %v3182_v21  ;;  %v3217_v5 = vmul.f32 %v5589_v19, %v3183_v6 }
 0x38d   :  { %v3218_v4 = vmul.f32 %v5589_v19, %v3184_v36  ;;  %v3219_v9 = vmul.f32 %v5589_v19, %v3185_v13  ;;  %v3220_v23 = vmul.f32 %v5589_v19, %v3186_v48  ;;  %v3221_v18 = vmul.f32 %v5589_v19, %v11467_v0 }
 0x38e   :  { %v3315_v60 = vadd.f32 %v9745_v11, %v3276_v45  ;;  %v3222_v24 = vmul.f32 %v5589_v19, %v11468_v38  ;;  %v3223_v50 = vmul.f32 %v5589_v19, %v11469_v20  ;;  %v3224_v32 = vmul.f32 %v5589_v19, %v11470_v44 }
 0x38f   :  { %v3225_v34 = vmul.f32 %v5589_v19, %v11471_v62  ;;  %v3226_v41 = vmul.f32 %v5589_v19, %v11472_v10  ;;  %v3227_v21 = vmul.f32 %v5589_v19, %v11473_v26  ;;  %v3228_v6 = vmul.f32 %v5589_v19, %v11474_v57 }
 0x390   :  { %v3521_v36 = vsel %vm2344_vm10, %v3315_v60, 0.0  ;;  %v3229_v13 = vmul.f32 %v5589_v19, %v11475_v39  ;;  %v3230_v48 = vmul.f32 %v5589_v19, %v11476_v51  ;;  %v3231_v27 = vmul.f32 %v5589_v19, %v11477_v28 }
 0x391   :  { %v3522_v17 = vrot.slane %v3521_v36, 4  ;;  %v11478_v45 = vsub.f32 %v9522_v55, %v9595_v61  ;;  %v11479_v0 = vsub.f32 %v9532_v63, %v9595_v61  ;;  %v3234_v38 = vmul.f32 %v5589_v19, %v11480_v33 }
 0x392   :  { %v3235_v20 = vmul.f32 %v5589_v19, %v11481_v59  ;;  %v3236_v44 = vmul.f32 %v5589_v19, %v11482_v3  ;;  %v11483_v55 = vsub.f32 %v9557_v49, %v9595_v61  ;;  %v11484_v63 = vsub.f32 %v9565_v30, %v9595_v61 }
 0x393   :  { %v3232_v31 = vmul.f32 %v5589_v19, %v11478_v45  ;;  %v3233_v60 = vmul.f32 %v5589_v19, %v11479_v0  ;;  %v3523_v26 = vadd.f32 %v3522_v17, %v3521_v36  ;;  %v3247_v37 = vmul.f32 %v9724_v40, %v3208_v2 }
 0x394   :  { %v3238_v62 = vmul.f32 %v5589_v19, %v11483_v55  ;;  %v3239_v10 = vmul.f32 %v5589_v19, %v11484_v63  ;;  %v3248_v57 = vmul.f32 %v9724_v40, %v3209_v35  ;;  %v3249_v15 = vmul.f32 %v9724_v40, %v3210_v14 }
 0x395   :  { %v3250_v39 = vmul.f32 %v9724_v40, %v3211_v53  ;;  %v3251_v29 = vmul.f32 %v9724_v40, %v3212_v43  ;;  %v3252_v51 = vmul.f32 %v9724_v40, %v3213_v8  ;;  %v3253_v49 = vmul.f32 %v9724_v40, %v3214_v12 }
 0x396   :  { %v3524_v28 = vrot.slane %v3523_v26, 2  ;;  %v3254_v45 = vmul.f32 %v9724_v40, %v3215_v1  ;;  %v3255_v30 = vmul.f32 %v9724_v40, %v3216_v47  ;;  %v3256_v61 = vmul.f32 %v9724_v40, %v3217_v5 }
 0x397   :  { %v3257_v2 = vmul.f32 %v9724_v40, %v3218_v4  ;;  %v3258_v19 = vmul.f32 %v9724_v40, %v3219_v9  ;;  %v3259_v35 = vmul.f32 %v9724_v40, %v3220_v23  ;;  %v3260_v14 = vmul.f32 %v9724_v40, %v3221_v18 }
 0x398   :  { %v3525_v53 = vadd.f32 %v3524_v28, %v3523_v26  ;;  %v3261_v43 = vmul.f32 %v9724_v40, %v3222_v24  ;;  %v3262_v8 = vmul.f32 %v9724_v40, %v3223_v50  ;;  %v3263_v12 = vmul.f32 %v9724_v40, %v3224_v32 }
 0x399   :  { %v3264_v1 = vmul.f32 %v9724_v40, %v3225_v34  ;;  %v3265_v47 = vmul.f32 %v9724_v40, %v3226_v41  ;;  %v3266_v5 = vmul.f32 %v9724_v40, %v3227_v21  ;;  %v3267_v4 = vmul.f32 %v9724_v40, %v3228_v6 }
 0x39a   :  { %v3526_v9 = vrot.slane %v3525_v53, 1  ;;  %v3268_v23 = vmul.f32 %v9724_v40, %v3229_v13  ;;  %v3269_v18 = vmul.f32 %v9724_v40, %v3230_v48  ;;  %v3270_v36 = vmul.f32 %v9724_v40, %v3231_v27 }
 0x39b   :  { %v3271_v24 = vmul.f32 %v9724_v40, %v3232_v31  ;;  %v3272_v50 = vmul.f32 %v9724_v40, %v3233_v60  ;;  %v3273_v32 = vmul.f32 %v9724_v40, %v3234_v38  ;;  %v3274_v34 = vmul.f32 %v9724_v40, %v3235_v20 }
 0x39c   :  { %v3527_v41 = vadd.f32 %v3526_v9, %v3525_v53  ;;  %v3275_v21 = vmul.f32 %v9724_v40, %v3236_v44  ;;  %v3277_v6 = vmul.f32 %v9724_v40, %v3238_v62  ;;  %v3278_v17 = vmul.f32 %v9724_v40, %v3239_v10 }
 0x39d   :  { %v3286_v13 = vadd.f32 %v9745_v11, %v3247_v37  ;;  %v3287_v48 = vadd.f32 %v9745_v11, %v3248_v57  ;;  %v3288_v27 = vadd.f32 %v9745_v11, %v3249_v15  ;;  %v3289_v31 = vadd.f32 %v9745_v11, %v3250_v39 }
 0x39e   :  { %v3572_v0 = vmul.f32 0.125, %v3527_v41  ;;  %v3290_v60 = vadd.f32 %v9745_v11, %v3251_v29  ;;  %v3291_v33 = vadd.f32 %v9745_v11, %v3252_v51  ;;  %v3292_v38 = vadd.f32 %v9745_v11, %v3253_v49 }
 0x39f   :  { %v3293_v59 = vadd.f32 %v9745_v11, %v3254_v45  ;;  %v9874_v20 = vadd.f32 %v9745_v11, %v3255_v30  ;;  %v9877_v40 = vadd.f32 %v9745_v11, %v3256_v61  ;;  %v9880_v3 = vadd.f32 %v9745_v11, %v3257_v2 }
 0x3a0   :  { %v3672_v44 = vmul.f32 %v3608_v58, %v3572_v0  ;;  %v9885_v55 = vadd.f32 %v9745_v11, %v3258_v19  ;;  %v9888_v62 = vadd.f32 %v9745_v11, %v3259_v35  ;;  %v9891_v63 = vadd.f32 %v9745_v11, %v3260_v14 }
 0x3a1   :  { %v9894_v10 = vadd.f32 %v9745_v11, %v3261_v43  ;;  %v9897_v26 = vadd.f32 %v9745_v11, %v3262_v8  ;;  %v9900_v37 = vadd.f32 %v9745_v11, %v3263_v12  ;;  %v9903_v58 = vadd.f32 %v9745_v11, %v3264_v1 }
 0x3a2   :  { %v3704_v57 = vmul.f32 2.0, %v3672_v44  ;;  %v9906_v15 = vadd.f32 %v9745_v11, %v3265_v47  ;;  %v9909_v39 = vadd.f32 %v9745_v11, %v3266_v5  ;;  %v9912_v29 = vadd.f32 %v9745_v11, %v3267_v4 }
 0x3a3   :  { %v9915_v51 = vadd.f32 %v9745_v11, %v3268_v23  ;;  %v9918_v49 = vadd.f32 %v9745_v11, %v3269_v18  ;;  %v9921_v28 = vadd.f32 %v9745_v11, %v3270_v36  ;;  %v9924_v45 = vadd.f32 %v9745_v11, %v3271_v24 }
 0x3a4   :  { %v11485_v30 = vrot.slane %v9665_v25, 5  ;;  %v9931_v2 = vadd.f32 %v9745_v11, %v3272_v50  ;;  %v9934_v19 = vadd.f32 %v9745_v11, %v3273_v32  ;;  %v9937_v35 = vadd.f32 %v9745_v11, %v3274_v34 }
 0x3a5   :  { %v9940_v14 = vadd.f32 %v9745_v11, %v3275_v21  ;;  %v9943_v53 = vadd.f32 %v9745_v11, %v3277_v6  ;;  %v9946_v43 = vadd.f32 %v9745_v11, %v3278_v17  ;;  %v3318_v8 = vsel %vm2344_vm10, %v3286_v13, 0.0 }
 0x3a6   :  { %v9928_v61 = vmul.f32 %v11485_v30, %v3704_v57  ;;  %v3319_v1 = vrot.slane %v3318_v8, 4  ;;  %v3325_v47 = vsel %vm2344_vm10, %v3287_v48, 0.0  ;;  %v3332_v5 = vsel %vm2344_vm10, %v3288_v27, 0.0 }
 0x3a7   :  { %v3326_v4 = vrot.slane %v3325_v47, 4  ;;  %v3333_v9 = vrot.slane %v3332_v5, 4  ;;  %v3339_v23 = vsel %vm2344_vm10, %v3289_v31, 0.0  ;;  %v3346_v18 = vsel %vm2344_vm10, %v3290_v60, 0.0 }
 0x3a8   :  { %v3320_v36 = vadd.f32 %v3319_v1, %v3318_v8  ;;  %v3340_v24 = vrot.slane %v3339_v23, 4  ;;  %v3347_v50 = vrot.slane %v3346_v18, 4  ;;  %v3353_v11 = vsel %vm2344_vm10, %v3291_v33, 0.0 }
 0x3a9   :  { %v3327_v32 = vadd.f32 %v3326_v4, %v3325_v47  ;;  %v3334_v34 = vadd.f32 %v3333_v9, %v3332_v5  ;;  %v3354_v41 = vrot.slane %v3353_v11, 4  ;;  %v3360_v21 = vsel %vm2344_vm10, %v3292_v38, 0.0 }
 0x3aa   :  { %v3321_v6 = vrot.slane %v3320_v36, 2  ;;  %v3341_v17 = vadd.f32 %v3340_v24, %v3339_v23  ;;  %v3348_v13 = vadd.f32 %v3347_v50, %v3346_v18  ;;  %v3361_v48 = vrot.slane %v3360_v21, 4 }
 0x3ab   :  { %v3328_v27 = vrot.slane %v3327_v32, 2  ;;  %v3335_v0 = vrot.slane %v3334_v34, 2  ;;  %v3355_v44 = vadd.f32 %v3354_v41, %v3353_v11  ;;  %v3367_v31 = vsel %vm2344_vm10, %v3293_v59, 0.0 }
 0x3ac   :  { %v3322_v60 = vadd.f32 %v3321_v6, %v3320_v36  ;;  %v3342_v57 = vrot.slane %v3341_v17, 2  ;;  %v3349_v30 = vrot.slane %v3348_v13, 2  ;;  %v3362_v8 = vadd.f32 %v3361_v48, %v3360_v21 }
 0x3ad   :  { %v3329_v1 = vadd.f32 %v3328_v27, %v3327_v32  ;;  %v3336_v33 = vadd.f32 %v3335_v0, %v3334_v34  ;;  %v3356_v47 = vrot.slane %v3355_v44, 2  ;;  %v3368_v5 = vrot.slane %v3367_v31, 4 }
 0x3ae   :  { %v3323_v4 = vrot.slane %v3322_v60, 1  ;;  %v3343_v9 = vadd.f32 %v3342_v57, %v3341_v17  ;;  %v3350_v38 = vadd.f32 %v3349_v30, %v3348_v13  ;;  %v3363_v12 = vrot.slane %v3362_v8, 2 }
 0x3af   :  { %v3330_v23 = vrot.slane %v3329_v1, 1  ;;  %v3337_v18 = vrot.slane %v3336_v33, 1  ;;  %v3357_v24 = vadd.f32 %v3356_v47, %v3355_v44  ;;  %v3369_v50 = vadd.f32 %v3368_v5, %v3367_v31 }
 0x3b0   :  { %v9957_v54 = vadd.f32 %v3323_v4, %v3322_v60  ;;  %v3344_v11 = vrot.slane %v3343_v9, 1  ;;  %v3351_v59 = vrot.slane %v3350_v38, 1  ;;  %v3364_v36 = vadd.f32 %v3363_v12, %v3362_v8 }
 0x3b1   :  { %v9959_v41 = vadd.f32 %v3330_v23, %v3329_v1  ;;  %v9961_v21 = vadd.f32 %v3337_v18, %v3336_v33  ;;  %v3358_v32 = vrot.slane %v3357_v24, 1  ;;  %v3370_v34 = vrot.slane %v3369_v50, 2 }
 0x3b2   :  { %v9963_v6 = vadd.f32 %v3344_v11, %v3343_v9  ;;  %v9965_v17 = vadd.f32 %v3351_v59, %v3350_v38  ;;  %v3365_v13 = vrot.slane %v3364_v36, 1  ;;  %v3374_v48 = vsel %vm2344_vm10, %v9874_v20, 0.0 }
 0x3b3   :  { %v9969_v27 = vadd.f32 %v3358_v32, %v3357_v24  ;;  %v3371_v0 = vadd.f32 %v3370_v34, %v3369_v50  ;;  %v3375_v44 = vrot.slane %v3374_v48, 4  ;;  %v3381_v12 = vsel %vm2344_vm10, %v9877_v40, 0.0 }
 0x3b4   :  { %v9973_v31 = vadd.f32 %v3365_v13, %v3364_v36  ;;  %v3382_v60 = vrot.slane %v3381_v12, 4  ;;  %v3388_v57 = vsel %vm2344_vm10, %v9880_v3, 0.0  ;;  %v3395_v30 = vsel %vm2344_vm10, %v9885_v55, 0.0 }
 0x3b5   :  { %v3372_v8 = vrot.slane %v3371_v0, 1  ;;  %v3376_v1 = vadd.f32 %v3375_v44, %v3374_v48  ;;  %v3389_v33 = vrot.slane %v3388_v57, 4  ;;  %v3396_v20 = vrot.slane %v3395_v30, 4 }
 0x3b6   :  { %v3383_v47 = vadd.f32 %v3382_v60, %v3381_v12  ;;  %v3402_v5 = vsel %vm2344_vm10, %v9888_v62, 0.0  ;;  %v3409_v40 = vsel %vm2344_vm10, %v9891_v63, 0.0  ;;  %v3416_v4 = vsel %vm2344_vm10, %v9894_v10, 0.0 }
 0x3b7   :  { %v9985_v9 = vadd.f32 %v3372_v8, %v3371_v0  ;;  %v3377_v3 = vrot.slane %v3376_v1, 2  ;;  %v3390_v38 = vadd.f32 %v3389_v33, %v3388_v57  ;;  %v3397_v23 = vadd.f32 %v3396_v20, %v3395_v30 }
 0x3b8   :  { %v3384_v55 = vrot.slane %v3383_v47, 2  ;;  %v3403_v18 = vrot.slane %v3402_v5, 4  ;;  %v3410_v24 = vrot.slane %v3409_v40, 4  ;;  %v3417_v50 = vrot.slane %v3416_v4, 4 }
 0x3b9   :  { %v3378_v11 = vadd.f32 %v3377_v3, %v3376_v1  ;;  %v3391_v59 = vrot.slane %v3390_v38, 2  ;;  %v3398_v36 = vrot.slane %v3397_v23, 2  ;;  %v3423_v62 = vsel %vm2344_vm10, %v9897_v26, 0.0 }
 0x3ba   :  { %v3385_v32 = vadd.f32 %v3384_v55, %v3383_v47  ;;  %v3404_v63 = vadd.f32 %v3403_v18, %v3402_v5  ;;  %v3411_v34 = vadd.f32 %v3410_v24, %v3409_v40  ;;  %v3418_v13 = vadd.f32 %v3417_v50, %v3416_v4 }
 0x3bb   :  { %v3379_v10 = vrot.slane %v3378_v11, 1  ;;  %v3392_v48 = vadd.f32 %v3391_v59, %v3390_v38  ;;  %v3399_v0 = vadd.f32 %v3398_v36, %v3397_v23  ;;  %v3424_v44 = vrot.slane %v3423_v62, 4 }
 0x3bc   :  { %v3386_v12 = vrot.slane %v3385_v32, 1  ;;  %v3405_v60 = vrot.slane %v3404_v63, 2  ;;  %v3412_v57 = vrot.slane %v3411_v34, 2  ;;  %v3419_v30 = vrot.slane %v3418_v13, 2 }
 0x3bd   :  { %v9989_v8 = vadd.f32 %v3379_v10, %v3378_v11  ;;  %v3393_v1 = vrot.slane %v3392_v48, 1  ;;  %v3400_v33 = vrot.slane %v3399_v0, 1  ;;  %v3425_v20 = vadd.f32 %v3424_v44, %v3423_v62 }
 0x3be   :  { %v9991_v3 = vadd.f32 %v3386_v12, %v3385_v32  ;;  %v3406_v26 = vadd.f32 %v3405_v60, %v3404_v63  ;;  %v3413_v47 = vadd.f32 %v3412_v57, %v3411_v34  ;;  %v3420_v5 = vadd.f32 %v3419_v30, %v3418_v13 }
 0x3bf   :  { %v9993_v40 = vadd.f32 %v3393_v1, %v3392_v48  ;;  %v9995_v4 = vadd.f32 %v3400_v33, %v3399_v0  ;;  %v3426_v38 = vrot.slane %v3425_v20, 2  ;;  %v3430_v23 = vsel %vm2344_vm10, %v9900_v37, 0.0 }
 0x3c0   :  { %v3407_v55 = vrot.slane %v3406_v26, 1  ;;  %v3414_v18 = vrot.slane %v3413_v47, 1  ;;  %v3421_v24 = vrot.slane %v3420_v5, 1  ;;  %v3431_v50 = vrot.slane %v3430_v23, 4 }
 0x3c1   :  { %v3427_v11 = vadd.f32 %v3426_v38, %v3425_v20  ;;  %v3437_v59 = vsel %vm2344_vm10, %v9903_v58, 0.0  ;;  %v3444_v36 = vsel %vm2344_vm10, %v9906_v15, 0.0  ;;  %v3451_v62 = vsel %vm2344_vm10, %v9909_v39, 0.0 }
 0x3c2   :  { %v10005_v32 = vadd.f32 %v3407_v55, %v3406_v26  ;;  %v10007_v63 = vadd.f32 %v3414_v18, %v3413_v47  ;;  %v10009_v34 = vadd.f32 %v3421_v24, %v3420_v5  ;;  %v3432_v37 = vadd.f32 %v3431_v50, %v3430_v23 }
 0x3c3   :  { %v3428_v13 = vrot.slane %v3427_v11, 1  ;;  %v3438_v10 = vrot.slane %v3437_v59, 4  ;;  %v3445_v48 = vrot.slane %v3444_v36, 4  ;;  %v3452_v0 = vrot.slane %v3451_v62, 4 }
 0x3c4   :  { %v3433_v44 = vrot.slane %v3432_v37, 2  ;;  %v3458_v58 = vsel %vm2344_vm10, %v9912_v29, 0.0  ;;  %v3465_v15 = vsel %vm2344_vm10, %v9915_v51, 0.0  ;;  %v3472_v39 = vsel %vm2344_vm10, %v9918_v49, 0.0 }
 0x3c5   :  { %v10017_v12 = vadd.f32 %v3428_v13, %v3427_v11  ;;  %v3439_v60 = vadd.f32 %v3438_v10, %v3437_v59  ;;  %v3446_v57 = vadd.f32 %v3445_v48, %v3444_v36  ;;  %v3453_v30 = vadd.f32 %v3452_v0, %v3451_v62 }
 0x3c6   :  { %v3434_v1 = vadd.f32 %v3433_v44, %v3432_v37  ;;  %v3459_v33 = vrot.slane %v3458_v58, 4  ;;  %v3466_v20 = vrot.slane %v3465_v15, 4  ;;  %v3473_v26 = vrot.slane %v3472_v39, 4 }
 0x3c7   :  { %v3440_v47 = vrot.slane %v3439_v60, 2  ;;  %v3447_v5 = vrot.slane %v3446_v57, 2  ;;  %v3454_v38 = vrot.slane %v3453_v30, 2  ;;  %v3479_v29 = vsel %vm2344_vm10, %v9921_v28, 0.0 }
 0x3c8   :  { %v3435_v23 = vrot.slane %v3434_v1, 1  ;;  %v3460_v51 = vadd.f32 %v3459_v33, %v3458_v58  ;;  %v3467_v55 = vadd.f32 %v3466_v20, %v3465_v15  ;;  %v3474_v18 = vadd.f32 %v3473_v26, %v3472_v39 }
 0x3c9   :  { %v3441_v49 = vadd.f32 %v3440_v47, %v3439_v60  ;;  %v3448_v24 = vadd.f32 %v3447_v5, %v3446_v57  ;;  %v3455_v50 = vadd.f32 %v3454_v38, %v3453_v30  ;;  %v3480_v11 = vrot.slane %v3479_v29, 4 }
 0x3ca   :  { %v10021_v59 = vadd.f32 %v3435_v23, %v3434_v1  ;;  %v3461_v36 = vrot.slane %v3460_v51, 2  ;;  %v3468_v62 = vrot.slane %v3467_v55, 2  ;;  %v3475_v37 = vrot.slane %v3474_v18, 2 }
 0x3cb   :  { %v3442_v13 = vrot.slane %v3441_v49, 1  ;;  %v3449_v10 = vrot.slane %v3448_v24, 1  ;;  %v3456_v48 = vrot.slane %v3455_v50, 1  ;;  %v3481_v0 = vadd.f32 %v3480_v11, %v3479_v29 }
 0x3cc   :  { %v3462_v44 = vadd.f32 %v3461_v36, %v3460_v51  ;;  %v3469_v42 = vadd.f32 %v3468_v62, %v3467_v55  ;;  %v3476_v28 = vadd.f32 %v3475_v37, %v3474_v18  ;;  %v3486_v58 = vsel %vm2344_vm10, %v9924_v45, 0.0 }
 0x3cd   :  { %v10025_v15 = vadd.f32 %v3442_v13, %v3441_v49  ;;  %v10027_v39 = vadd.f32 %v3449_v10, %v3448_v24  ;;  %v10029_v60 = vadd.f32 %v3456_v48, %v3455_v50  ;;  %v3482_v57 = vrot.slane %v3481_v0, 2 }
 0x3ce   :  { %v3463_v30 = vrot.slane %v3462_v44, 1  ;;  %v3470_v1 = vrot.slane %v3469_v42, 1  ;;  %v3477_v33 = vrot.slane %v3476_v28, 1  ;;  %v3487_v20 = vrot.slane %v3486_v58, 4 }
 0x3cf   :  { %v3483_v26 = vadd.f32 %v3482_v57, %v3481_v0  ;;  %v3493_v47 = vsel %vm2344_vm10, %v9931_v2, 0.0  ;;  %v3500_v5 = vsel %vm2344_vm10, %v9934_v19, 0.0  ;;  %v3507_v45 = vsel %vm2344_vm10, %v9937_v35, 0.0 }
 0x3d0   :  { %v10037_v38 = vadd.f32 %v3463_v30, %v3462_v44  ;;  %v10039_v29 = vadd.f32 %v3470_v1, %v3469_v42  ;;  %v10041_v23 = vadd.f32 %v3477_v33, %v3476_v28  ;;  %v3488_v51 = vadd.f32 %v3487_v20, %v3486_v58 }
 0x3d1   :  { %v3484_v55 = vrot.slane %v3483_v26, 1  ;;  %v3494_v18 = vrot.slane %v3493_v47, 4  ;;  %v3501_v49 = vrot.slane %v3500_v5, 4  ;;  %v3508_v24 = vrot.slane %v3507_v45, 4 }
 0x3d2   :  { %v3489_v50 = vrot.slane %v3488_v51, 2  ;;  %v3514_v2 = vsel %vm2344_vm10, %v9940_v14, 0.0  ;;  %v3528_v19 = vsel %vm2344_vm10, %v9943_v53, 0.0  ;;  %v3535_v35 = vsel %vm2344_vm10, %v9946_v43, 0.0 }
 0x3d3   :  { %v3485_v11 = vadd.f32 %v3484_v55, %v3483_v26  ;;  %v3495_v42 = vadd.f32 %v3494_v18, %v3493_v47  ;;  %v3502_v36 = vadd.f32 %v3501_v49, %v3500_v5  ;;  %v3509_v62 = vadd.f32 %v3508_v24, %v3507_v45 }
 0x3d4   :  { %v3490_v37 = vadd.f32 %v3489_v50, %v3488_v51  ;;  %v3515_v13 = vrot.slane %v3514_v2, 4  ;;  %v3529_v10 = vrot.slane %v3528_v19, 4  ;;  %v3536_v48 = vrot.slane %v3535_v35, 4 }
 0x3d5   :  { %v3496_v0 = vrot.slane %v3495_v42, 2  ;;  %v3503_v44 = vrot.slane %v3502_v36, 2  ;;  %v3510_v28 = vrot.slane %v3509_v62, 2  ;;  %v3543_v58 = vmul.f32 0.125, %v9957_v54 }
 0x3d6   :  { %v3491_v14 = vrot.slane %v3490_v37, 1  ;;  %v3516_v57 = vadd.f32 %v3515_v13, %v3514_v2  ;;  %v3530_v30 = vadd.f32 %v3529_v10, %v3528_v19  ;;  %v3537_v53 = vadd.f32 %v3536_v48, %v3535_v35 }
 0x3d7   :  { %v3497_v1 = vadd.f32 %v3496_v0, %v3495_v42  ;;  %v3504_v33 = vadd.f32 %v3503_v44, %v3502_v36  ;;  %v3511_v43 = vadd.f32 %v3510_v28, %v3509_v62  ;;  %v3544_v20 = vmul.f32 0.125, %v9959_v41 }
 0x3d8   :  { %v3492_v26 = vadd.f32 %v3491_v14, %v3490_v37  ;;  %v3517_v47 = vrot.slane %v3516_v57, 2  ;;  %v3531_v5 = vrot.slane %v3530_v30, 2  ;;  %v3538_v45 = vrot.slane %v3537_v53, 2 }
 0x3d9   :  { %v3498_v51 = vrot.slane %v3497_v1, 1  ;;  %v3505_v55 = vrot.slane %v3504_v33, 1  ;;  %v3512_v18 = vrot.slane %v3511_v43, 1  ;;  %v3545_v49 = vmul.f32 0.125, %v9961_v21 }
 0x3da   :  { %v3518_v24 = vadd.f32 %v3517_v47, %v3516_v57  ;;  %v3532_v54 = vadd.f32 %v3531_v5, %v3530_v30  ;;  %v3539_v50 = vadd.f32 %v3538_v45, %v3537_v53  ;;  %v3546_v2 = vmul.f32 0.125, %v9963_v6 }
 0x3db   :  { %v3499_v19 = vadd.f32 %v3498_v51, %v3497_v1  ;;  %v3506_v35 = vadd.f32 %v3505_v55, %v3504_v33  ;;  %v3513_v42 = vadd.f32 %v3512_v18, %v3511_v43  ;;  %v3547_v36 = vmul.f32 0.125, %v9965_v17 }
 0x3dc   :  { %v3519_v41 = vrot.slane %v3518_v24, 1  ;;  %v3533_v62 = vrot.slane %v3532_v54, 1  ;;  %v3540_v37 = vrot.slane %v3539_v50, 1  ;;  %v3548_v13 = vmul.f32 0.125, %v9969_v27 }
 0x3dd   :  { %v3549_v10 = vmul.f32 0.125, %v9973_v31  ;;  %v3550_v48 = vmul.f32 0.125, %v9985_v9  ;;  %v3551_v21 = vmul.f32 0.125, %v9989_v8  ;;  %v3552_v0 = vmul.f32 0.125, %v9991_v3 }
 0x3de   :  { %v3520_v44 = vadd.f32 %v3519_v41, %v3518_v24  ;;  %v3534_v6 = vadd.f32 %v3533_v62, %v3532_v54  ;;  %v3541_v28 = vadd.f32 %v3540_v37, %v3539_v50  ;;  %v3553_v14 = vmul.f32 0.125, %v9993_v40 }
 0x3df   :  { %v3554_v17 = vmul.f32 0.125, %v9995_v4  ;;  %v3555_v57 = vmul.f32 0.125, %v10005_v32  ;;  %v3556_v30 = vmul.f32 0.125, %v10007_v63  ;;  %v3557_v27 = vmul.f32 0.125, %v10009_v34 }
 0x3e0   :  { %v3558_v31 = vmul.f32 0.125, %v10017_v12  ;;  %v3559_v9 = vmul.f32 0.125, %v10021_v59  ;;  %v3560_v8 = vmul.f32 0.125, %v10025_v15  ;;  %v3561_v3 = vmul.f32 0.125, %v10027_v39 }
 0x3e1   :  { %v3562_v53 = vmul.f32 0.125, %v10029_v60  ;;  %v3563_v40 = vmul.f32 0.125, %v10037_v38  ;;  %v3564_v4 = vmul.f32 0.125, %v10039_v29  ;;  %v3565_v32 = vmul.f32 0.125, %v10041_v23 }
 0x3e2   :  { %v3566_v1 = vmul.f32 0.125, %v3485_v11  ;;  %v3567_v63 = vmul.f32 0.125, %v3492_v26  ;;  %v3568_v33 = vmul.f32 0.125, %v3499_v19  ;;  %v3569_v34 = vmul.f32 0.125, %v3506_v35 }
 0x3e3   :  { %v3570_v43 = vmul.f32 0.125, %v3513_v42  ;;  %v3571_v12 = vmul.f32 0.125, %v3520_v44  ;;  %v3573_v47 = vmul.f32 0.125, %v3534_v6  ;;  %v3574_v59 = vmul.f32 0.125, %v3541_v28 }
 0x3e4   :  { %v3643_v15 = vmul.f32 %v9588_v7, %v3543_v58  ;;  %v11486_v39 = vrot.slane %v9588_v7, 1  ;;  %v11487_v60 = vrot.slane %v9588_v7, 2  ;;  %v11488_v29 = vrot.slane %v9588_v7, 3 }
 0x3e5   :  { %v11489_v23 = vrot.slane %v9588_v7, 4  ;;  %v11490_v26 = vrot.slane %v9588_v7, 5  ;;  %v11491_v55 = vrot.slane %v9588_v7, 6  ;;  %v11492_v58 = vrot.slane %v9588_v7, 7 }
 0x3e6   :  { %v3644_v5 = vmul.f32 %v11486_v39, %v3544_v20  ;;  %v3645_v38 = vmul.f32 %v11487_v60, %v3545_v49  ;;  %v3646_v45 = vmul.f32 %v11488_v29, %v3546_v2  ;;  %v3651_v20 = vmul.f32 %v9660_v16, %v3551_v21 }
 0x3e7   :  { %v3647_v11 = vmul.f32 %v11489_v23, %v3547_v36  ;;  %v3648_v51 = vmul.f32 %v11490_v26, %v3548_v13  ;;  %v3649_v18 = vmul.f32 %v11491_v55, %v3549_v10  ;;  %v3650_v24 = vmul.f32 %v11492_v58, %v3550_v48 }
 0x3e8   :  { %v11493_v54 = vrot.slane %v9660_v16, 1  ;;  %v11494_v50 = vrot.slane %v9660_v16, 2  ;;  %v11495_v19 = vrot.slane %v9660_v16, 3  ;;  %v11496_v42 = vrot.slane %v9660_v16, 4 }
 0x3e9   :  { %v11497_v41 = vrot.slane %v9660_v16, 5  ;;  %v11498_v7 = vrot.slane %v9660_v16, 6  ;;  %v11499_v13 = vrot.slane %v9660_v16, 7  ;;  %v3659_v48 = vmul.f32 %v9690_v22, %v3559_v9 }
 0x3ea   :  { %v3652_v49 = vmul.f32 %v11493_v54, %v3552_v0  ;;  %v3653_v2 = vmul.f32 %v11494_v50, %v3553_v14  ;;  %v3654_v35 = vmul.f32 %v11495_v19, %v3554_v17  ;;  %v3655_v36 = vmul.f32 %v11496_v42, %v3555_v57 }
 0x3eb   :  { %v3656_v62 = vmul.f32 %v11497_v41, %v3556_v30  ;;  %v3657_v37 = vmul.f32 %v11498_v7, %v3557_v27  ;;  %v3658_v10 = vmul.f32 %v11499_v13, %v3558_v31  ;;  %v11500_v21 = vrot.slane %v9690_v22, 1 }
 0x3ec   :  { %v11501_v44 = vrot.slane %v9690_v22, 2  ;;  %v11502_v28 = vrot.slane %v9690_v22, 3  ;;  %v3663_v17 = vmul.f32 %v3600_v52, %v3563_v40  ;;  %v11503_v57 = vrot.slane %v9690_v22, 5 }
 0x3ed   :  { %v3660_v0 = vmul.f32 %v11500_v21, %v3560_v8  ;;  %v11504_v16 = vrot.slane %v9690_v22, 6  ;;  %v11505_v31 = vrot.slane %v9690_v22, 7  ;;  %v3667_v8 = vmul.f32 %v9703_v56, %v3567_v63 }
 0x3ee   :  { %v3661_v6 = vmul.f32 %v11501_v44, %v3561_v3  ;;  %v3662_v14 = vmul.f32 %v11502_v28, %v3562_v53  ;;  %v3664_v30 = vmul.f32 %v11503_v57, %v3564_v4  ;;  %v11506_v39 = vrot.slane %v9703_v56, 1 }
 0x3ef   :  { %v3665_v27 = vmul.f32 %v11504_v16, %v3565_v32  ;;  %v3666_v9 = vmul.f32 %v11505_v31, %v3566_v1  ;;  %v11507_v60 = vrot.slane %v9703_v56, 2  ;;  %v11508_v29 = vrot.slane %v9703_v56, 3 }
 0x3f0   :  { %v3668_v3 = vmul.f32 %v11506_v39, %v3568_v33  ;;  %v11509_v40 = vrot.slane %v9703_v56, 4  ;;  %v11510_v23 = vrot.slane %v9703_v56, 6  ;;  %v11511_v22 = vrot.slane %v9703_v56, 7 }
 0x3f1   :  { %v3669_v53 = vmul.f32 %v11507_v60, %v3569_v34  ;;  %v3670_v52 = vmul.f32 %v11508_v29, %v3570_v43  ;;  %v10130_v26 = vmul.f32 2.0, %v3643_v15  ;;  %v10132_v63 = vmul.f32 2.0, %v3644_v5 }
 0x3f2   :  { %v3671_v4 = vmul.f32 %v11509_v40, %v3571_v12  ;;  %v3673_v32 = vmul.f32 %v11510_v23, %v3573_v47  ;;  %v3674_v1 = vmul.f32 %v11511_v22, %v3574_v59  ;;  %v3677_v33 = vmul.f32 2.0, %v3645_v38 }
 0x3f3   :  { %v3678_v55 = vmul.f32 2.0, %v3646_v45  ;;  %v3679_v58 = vmul.f32 2.0, %v3647_v11  ;;  %v3680_v34 = vmul.f32 2.0, %v3648_v51  ;;  %v3681_v54 = vmul.f32 2.0, %v3649_v18 }
 0x3f4   :  { %v10134_v50 = vmul.f32 2.0, %v3650_v24  ;;  %v10136_v43 = vmul.f32 2.0, %v3651_v20  ;;  %v10138_v12 = vmul.f32 2.0, %v3652_v49  ;;  %v3685_v19 = vmul.f32 2.0, %v3653_v2 }
 0x3f5   :  { %v3686_v47 = vmul.f32 2.0, %v3654_v35  ;;  %v3687_v42 = vmul.f32 2.0, %v3655_v36  ;;  %v3688_v56 = vmul.f32 2.0, %v3656_v62  ;;  %v3689_v59 = vmul.f32 2.0, %v3657_v37 }
 0x3f6   :  { %v3690_v15 = vmul.f32 2.0, %v3658_v10  ;;  %v3691_v41 = vmul.f32 2.0, %v3659_v48  ;;  %v3692_v5 = vmul.f32 2.0, %v3660_v0  ;;  %v3693_v7 = vmul.f32 2.0, %v3661_v6 }
 0x3f7   :  { %v3694_v38 = vmul.f32 2.0, %v3662_v14  ;;  %v3695_v45 = vmul.f32 2.0, %v3663_v17  ;;  %v3696_v11 = vmul.f32 2.0, %v3664_v30  ;;  %v3697_v51 = vmul.f32 2.0, %v3665_v27 }
 0x3f8   :  { %v3698_v18 = vmul.f32 2.0, %v3666_v9  ;;  %v3699_v24 = vmul.f32 2.0, %v3667_v8  ;;  %v3700_v13 = vmul.f32 2.0, %v3668_v3  ;;  %v3701_v20 = vmul.f32 2.0, %v3669_v53 }
 0x3f9   :  { %v3702_v21 = vmul.f32 2.0, %v3670_v52  ;;  %v3703_v49 = vmul.f32 2.0, %v3671_v4  ;;  %v3705_v44 = vmul.f32 2.0, %v3673_v32  ;;  %v3706_v2 = vmul.f32 2.0, %v3674_v1 }
 0x3fa   :  { %v11512_v35 = vrot.slane %v9593_v46, 2  ;;  %v11513_v62 = vrot.slane %v9593_v46, 3  ;;  %v11514_v10 = vrot.slane %v9593_v46, 4  ;;  %v11515_v0 = vrot.slane %v9593_v46, 5 }
 0x3fb   :  { %v11516_v28 = vrot.slane %v9593_v46, 6  ;;  %v11517_v17 = vrot.slane %v9665_v25, 2  ;;  %v11518_v30 = vrot.slane %v9665_v25, 3  ;;  %v11519_v27 = vrot.slane %v9665_v25, 4 }
 0x3fc   :  { %v10142_v36 = vmul.f32 %v11512_v35, %v3677_v33  ;;  %v10146_v37 = vmul.f32 %v11513_v62, %v3678_v55  ;;  %v10150_v48 = vmul.f32 %v11514_v10, %v3679_v58  ;;  %v10154_v6 = vmul.f32 %v11515_v0, %v3680_v34 }
 0x3fd   :  { %v10158_v14 = vmul.f32 %v11516_v28, %v3681_v54  ;;  %v10162_v57 = vmul.f32 %v11517_v17, %v3685_v19  ;;  %v10166_v16 = vmul.f32 %v11518_v30, %v3686_v47  ;;  %v10170_v31 = vmul.f32 %v11519_v27, %v3687_v42 }
 0x3fe   :  { %v11520_v9 = vrot.slane %v9665_v25, 5  ;;  %v11521_v39 = vrot.slane %v9665_v25, 6  ;;  %v11522_v60 = vmov %v11512_v35  ;;  %v11523_v29 = vmov %v11513_v62 }
 0x3ff   :  { %v10182_v53 = vmul.f32 %v11522_v60, %v3693_v7  ;;  %v10186_v52 = vmul.f32 %v11523_v29, %v3694_v38  ;;  %v11524_v40 = vmov %v11514_v10  ;;  %v11525_v23 = vmov %v11515_v0 }
 0x400   :  { %v10174_v8 = vmul.f32 %v11520_v9, %v3688_v56  ;;  %v10178_v3 = vmul.f32 %v11521_v39, %v3689_v59  ;;  %v10190_v4 = vmul.f32 %v11524_v40, %v3695_v45  ;;  %v10194_v32 = vmul.f32 %v11525_v23, %v3696_v11 }
 0x401   :  { %v11526_v22 = vmov %v11516_v28  ;;  %v11527_v33 = vmov %v11517_v17  ;;  %v11528_v58 = vmov %v11518_v30  ;;  %v11529_v54 = vmov %v11519_v27  ;;  %v5591_v17 = vld [vmem:[%s10310_s4 + $0x8] sm:$0xff] }
 0x402   :  { %v10198_v1 = vmul.f32 %v11526_v22, %v3697_v51  ;;  %v10202_v55 = vmul.f32 %v11527_v33, %v3701_v20  ;;  %v10206_v34 = vmul.f32 %v11528_v58, %v3702_v21  ;;  %v10210_v19 = vmul.f32 %v11529_v54, %v3703_v49 }
 0x403   :  { %v11530_v47 = vmov %v11521_v39  ;;  %v3811_v56 = vrot.slane %v10146_v37, 5  ;;  %v3814_v59 = vrot.slane %v10150_v48, 4  ;;  %v3817_v7 = vrot.slane %v10154_v6, 3  ;;  %v5590_v37 = vld [vmem:[%s10310_s4] sm:$0xff] }
 0x404   :  { %v10214_v42 = vmul.f32 %v11530_v47, %v3705_v44  ;;  %v3830_v38 = vrot.slane %v10166_v16, 5  ;;  %v3832_v45 = vrot.slane %v10170_v31, 4  ;;  %v3834_v11 = vrot.slane %v10174_v8, 3 }
 0x405   :  { %v3844_v51 = vrot.slane %v10186_v52, 5  ;;  %v3846_v20 = vrot.slane %v10190_v4, 4  ;;  %v3848_v21 = vrot.slane %v10194_v32, 3  ;;  %v3850_v49 = vrot.slane %v10198_v1, 2 }
 0x406   :  { %v3858_v44 = vrot.slane %v10206_v34, 5  ;;  %v3860_v35 = vrot.slane %v10210_v19, 4  ;;  %v3864_v62 = vrot.slane %v10214_v42, 2  ;;  %v3741_v10 = vmul.f32 %v5590_v37, %v10130_v26 }
 0x407   :  { %v11531_v48 = vrot.slane %v9593_v46, 1  ;;  %v11532_v6 = vrot.slane %v9593_v46, 7  ;;  %v3749_v30 = vmul.f32 %v5591_v17, %v10136_v43  ;;  %v11533_v16 = vrot.slane %v9665_v25, 1 }
 0x408   :  { %v11534_v26 = vrot.slane %v9665_v25, 7  ;;  %v3757_v9 = vmul.f32 %v5590_v37, %v3691_v41  ;;  %v3765_v60 = vmul.f32 %v5591_v17, %v3699_v24  ;;  %v3820_v23 = vrot.slane %v10158_v14, 2 }
 0x409   :  { %v3742_v0 = vmul.f32 %v11531_v48, %v10132_v63  ;;  %v3748_v28 = vmul.f32 %v11532_v6, %v10134_v50  ;;  %v3750_v27 = vmul.f32 %v11533_v16, %v10138_v12  ;;  %v11535_v63 = vmov %v11531_v48 }
 0x40a   :  { %v3756_v31 = vmul.f32 %v11534_v26, %v3690_v15  ;;  %v3758_v8 = vmul.f32 %v11535_v63, %v3692_v5  ;;  %v11536_v39 = vmov %v11532_v6  ;;  %v11537_v29 = vmov %v11533_v16 }
 0x40b   :  { %v3764_v50 = vmul.f32 %v11536_v39, %v3698_v18  ;;  %v3766_v52 = vmul.f32 %v11537_v29, %v3700_v13  ;;  %v11538_v43 = vmov %v11534_v26  ;;  %v3805_v4 = vrot.slane %v3742_v0, 7 }
 0x40c   :  { %v3772_v40 = vmul.f32 %v11538_v43, %v3706_v2  ;;  %v3808_v12 = vrot.slane %v10142_v36, 6  ;;  %v3823_v15 = vrot.slane %v3748_v28, 1  ;;  %v3826_v41 = vrot.slane %v3750_v27, 7 }
 0x40d   :  { %v3828_v32 = vrot.slane %v10162_v57, 6  ;;  %v3807_v5 = vsel %vm3806_vm9, %v3805_v4, %v3741_v10  ;;  %v3836_v46 = vrot.slane %v10178_v3, 2  ;;  %v3838_v18 = vrot.slane %v3756_v31, 1 }
 0x40e   :  { %v3840_v24 = vrot.slane %v3758_v8, 7  ;;  %v3810_v13 = vsel %vm3809_vm2, %v3808_v12, %v3807_v5  ;;  %v3827_v25 = vsel %vm3806_vm9, %v3826_v41, %v3749_v30  ;;  %v3842_v2 = vrot.slane %v10182_v53, 6 }
 0x40f   :  { %v3852_v22 = vrot.slane %v3764_v50, 1  ;;  %v3813_v36 = vsel %vm3812_vm3, %v3811_v56, %v3810_v13  ;;  %v3829_v14 = vsel %vm3809_vm2, %v3828_v32, %v3827_v25  ;;  %v3854_v57 = vrot.slane %v3766_v52, 7 }
 0x410   :  { %v3841_v1 = vsel %vm3806_vm9, %v3840_v24, %v3757_v9  ;;  %v3816_v33 = vsel %vm3815_vm4, %v3814_v59, %v3813_v36  ;;  %v3831_v3 = vsel %vm3812_vm3, %v3830_v38, %v3829_v14  ;;  %v3856_v34 = vrot.slane %v10202_v55, 6  ;;  %v4102_v24 = vld [vmem:[%s10315_s9] sm:$0x3] }
 0x411   :  { %v3843_v58 = vsel %vm3809_vm2, %v3842_v2, %v3841_v1  ;;  %v3819_v54 = vsel %vm3818_vm6, %v3817_v7, %v3816_v33  ;;  %v3833_v53 = vsel %vm3815_vm4, %v3832_v45, %v3831_v3  ;;  %v3855_v47 = vsel %vm3806_vm9, %v3854_v57, %v3765_v60 }
 0x412   :  { %v3845_v19 = vsel %vm3812_vm3, %v3844_v51, %v3843_v58  ;;  %v3822_v42 = vsel %vm3821_vm8, %v3820_v23, %v3819_v54  ;;  %v3835_v56 = vsel %vm3818_vm6, %v3834_v11, %v3833_v53  ;;  %v3857_v38 = vsel %vm3809_vm2, %v3856_v34, %v3855_v47 }
 0x413   :  { %v3847_v59 = vsel %vm3815_vm4, %v3846_v20, %v3845_v19  ;;  %v3825_v37 = vsel %vm3824_vm11, %v3823_v15, %v3822_v42  ;;  %v3837_v55 = vsel %vm3821_vm8, %v3836_v46, %v3835_v56  ;;  %v3859_v45 = vsel %vm3812_vm3, %v3858_v44, %v3857_v38 }
 0x414   :  { %v3849_v7 = vsel %vm3818_vm6, %v3848_v21, %v3847_v59  ;;  %v3839_v51 = vsel %vm3824_vm11, %v3838_v18, %v3837_v55  ;;  %v3861_v48 = vsel %vm3815_vm4, %v3860_v35, %v3859_v45  ;;  %v3866_v0 = vrot.slane %v3772_v40, 1 }
 0x415   :  { %v3851_v10 = vsel %vm3821_vm8, %v3850_v49, %v3849_v7  ;;  %v11539_v20 = vrot.slane %v9928_v61, 3  ;;  %v3872_v28 = vsel %vm2344_vm10, %v3825_v37, 0.0  ;;  %v3873_v17 = vsel %vm2344_vm10, %v3839_v51, 0.0 }
 0x416   :  { %v3853_v11 = vsel %vm3824_vm11, %v3852_v22, %v3851_v10  ;;  %v3874_v44 = vadd.f32 %v3873_v17, %v3872_v28  ;;  %v15_v35 = vstv %s10314_s7 }
 0x417   :  { %v3863_v6 = vsel %vm3818_vm6, %v11539_v20, %v3861_v48  ;;  %v3881_v30 = vsel %vm2344_vm10, %v3853_v11, 0.0  ;;  %16 = vst [vmem:[#allocation2] sm:$0x1] %v15_v35 }
 0x418   :  { %v3865_v21 = vsel %vm3821_vm8, %v3864_v62, %v3863_v6  ;;  %v3875_v16 = vrot.slane %v3874_v44, 4 }
 0x419   :  { %v3867_v49 = vsel %vm3824_vm11, %v3866_v0, %v3865_v21 }
 0x41a   :  { %v3882_v61 = vsel %vm2344_vm10, %v3867_v49, 0.0  ;;  %v3876_v26 = vadd.f32 %v3875_v16, %v3874_v44  ;;  %vm4105_vm10 = vcmask 1024  }
 0x41b   :  { %v3883_v27 = vadd.f32 %v3882_v61, %v3881_v30 }
 0x41c   :  { %v3877_v9 = vrot.slane %v3876_v26, 2  ;;  %v4306_v12 = vpop.f32.mrb[0].mxu1 }
 0x41d   :  { %v3884_v31 = vrot.slane %v3883_v27, 4  ;;  %v4307_v23 = vpop.f32.mrb[1].mxu1 }
 0x41e   :  { %v3878_v8 = vadd.f32 %v3877_v9, %v3876_v26  ;;  %v4308_v15 = vadd.f32 %v4307_v23, %v4306_v12  ;;  %v4309_v41 = vpop.f32.mrb[2].mxu1  ;;  %v4150_v5 = vld [vmem:[#allocation2] ss:$0 sm:$0xff] }
 0x41f   :  { %v3885_v63 = vadd.f32 %v3884_v31, %v3883_v27  ;;  %v4310_v32 = vpop.f32.mrb[3].mxu1 }
 0x420   :  { %v3879_v50 = vrot.slane %v3878_v8, 1 }
 0x421   :  { %v3886_v62 = vrot.slane %v3885_v63, 2 }
 0x422   :  { %v3880_v52 = vadd.f32 %v3879_v50, %v3878_v8 }
 0x423   :  { %v3887_v39 = vadd.f32 %v3886_v62, %v3885_v63 }
 0x425   :  { %v3888_v60 = vrot.slane %v3887_v39, 1 }
 0x427   :  { %v3889_v29 = vadd.f32 %v3888_v60, %v3887_v39 }
 0x429   :  { %v3892_v43 = vrot.slane %v3889_v29, 7 }
 0x42b   :  { %v3893_v40 = vsel %vm3806_vm9, %v3892_v43, %v3880_v52 }
 0x42c   :  { %v3896_v4 = vsel %vm3895_vm12, %v3893_v40, 0.0 }
 0x42d   :  { %3897 = vadd.xlane.f32.xlu0 %v3896_v4 }
 0x4ba   :  { %v3898_v46 = vpop.xlane.xlu0 %3897 }
 0x4bb   :  { %v4093_v18 = vadd.f32 %v4308_v15, %v3898_v46 }
 0x4bd   :  { %v4101_v13 = vadd.f32 %v4150_v5, %v4093_v18 }
 0x4bf   :  { %v4103_v25 = vmul.f32 %v4102_v24, %v4101_v13 }
 0x4c1   :  { %v4104_v2 = vmul.f32 2.0, %v4103_v25 }
 0x4c3   :  { %4106 = vst.msk [vmem:[%s10316_s10] sm:$0x3] %vm4105_vm10, %v4104_v2 }

</bundles_post_ra>
